<compile_context>
chip_gen: v7x
topology: tpu7x:2x2x1
jax: 0.10.0
libtpu: 0.0.40
codegen_flags: <defaults>
</compile_context>

<pallas_src>
import functools

import numpy as np
import jax
import jax.numpy as jnp
from jax.experimental import pallas as pl
from jax.experimental.pallas import tpu as pltpu


_KK = 9  # 3x3 taps


# ----------------------------------------------------------------------------
# Trace-time constants: conv gather matrices (encode pad + stride) & upsample
# ----------------------------------------------------------------------------
def _conv_gather_mats(Hin, Win, KH, KW, stride, pad):
    """g[k, q, p] = 1 iff input pixel q feeds output pixel p through tap k
    (zero rows implement the zero padding)."""
    Ho = (Hin + 2 * pad - KH) // stride + 1
    Wo = (Win + 2 * pad - KW) // stride + 1
    g = np.zeros((KH * KW, Hin * Win, Ho * Wo), np.float32)
    for kh in range(KH):
        for kw in range(KW):
            k = kh * KW + kw
            for oh in range(Ho):
                ih = stride * oh + kh - pad
                if ih < 0 or ih >= Hin:
                    continue
                for ow in range(Wo):
                    iw = stride * ow + kw - pad
                    if 0 <= iw < Win:
                        g[k, ih * Win + iw, oh * Wo + ow] = 1.0
    return g, Ho, Wo


def _upsample2_mat(Hin, Win):
    """u[q, p] = 1 iff low-res pixel q is the nearest neighbour of hi-res pixel p."""
    Ho, Wo = 2 * Hin, 2 * Win
    u = np.zeros((Hin * Win, Ho * Wo), np.float32)
    for oh in range(Ho):
        for ow in range(Wo):
            u[(oh // 2) * Win + (ow // 2), oh * Wo + ow] = 1.0
    return u


# ----------------------------------------------------------------------------
# Host-side parameter packing (pure layout glue, done at trace time)
# ----------------------------------------------------------------------------
def _prep_conv3x3(w, b, Hin, Win, stride, pad=1, fold_upsample2=False):
    """Pack a 3x3 conv into:
         w_cat : (Cout, KK*Cin) bf16   -- taps concatenated along the contraction axis
         bias  : (Cout, 1)      f32    -- seeds the accumulator
         g_wide: (Pin, KK*Pout) bf16   -- 0/1 gather, all taps side-by-side on lanes
       Optionally composes a nearest 2x upsample into g (exact: still 0/1 selection).
    """
    KH, KW, Cin, Cout = w.shape
    KK = KH * KW
    g, Ho, Wo = _conv_gather_mats(Hin, Win, KH, KW, stride, pad)       # (KK, Pin, Po)
    if fold_upsample2:
        g = g @ _upsample2_mat(Ho, Wo)                                 # (KK, Pin, 4*Po)
        Ho, Wo = 2 * Ho, 2 * Wo
    Pin = Hin * Win
    Pout = Ho * Wo
    g_wide = np.transpose(g, (1, 0, 2)).reshape(Pin, KK * Pout)        # lanes = (tap, pout)

    w_cat = jnp.transpose(w.reshape(KK, Cin, Cout), (2, 0, 1))         # (Cout, KK, Cin)
    w_cat = w_cat.reshape(Cout, KK * Cin).astype(jnp.bfloat16)
    return (w_cat, b.reshape(Cout, 1), jnp.asarray(g_wide, jnp.bfloat16)), Ho, Wo


def _prep_conv1x1(w, b):
    _, _, Cin, Cout = w.shape
    w2 = jnp.transpose(w.reshape(Cin, Cout), (1, 0)).astype(jnp.bfloat16)   # (Cout, Cin)
    return w2, b.reshape(Cout, 1)


def _const_spec(a):
    zeros = (0,) * a.ndim
    return pl.BlockSpec(a.shape, lambda n, _z=zeros: _z)


# ----------------------------------------------------------------------------
# The single fused Pallas kernel (Nb batch elements per grid step)
# ----------------------------------------------------------------------------
def _fused_fpn_kernel(
    x_ref,
    stem_w_ref, stem_b_ref, stem_g_ref,
    enc2_w_ref, enc2_b_ref, enc2_g_ref,
    enc3_w_ref, enc3_b_ref, enc3_g_ref,
    lat3_w_ref, lat3_b_ref,
    lat2_w_ref, lat2_b_ref,
    lat1_w_ref, lat1_b_ref,
    head_w_ref, head_b_ref, head_g_ref,
    up3_ref, up2_ref,
    o_ref,
):
    f32 = jnp.float32
    bf16 = jnp.bfloat16

    def conv3x3(A, w_ref, b_ref, g_ref, act=None):
        # A: (Cin, Pin) f32.  g_ref: (Pin, KK*Pout) bf16 0/1 (pad+stride[+2x up] folded).
        Pout = g_ref.shape[1] // _KK
        # Push 1: all KK tap gathers at once (taps stacked along lanes).
        ag = jnp.dot(A.astype(bf16), g_ref[...], preferred_element_type=f32)  # (Cin, KK*Pout)
        # Lane -> contraction repack (im2col layout). Gather is 0/1 selection, so the
        # bf16 re-cast below is lossless.
        im2col = jnp.concatenate(
            [ag[:, k * Pout:(k + 1) * Pout] for k in range(_KK)], axis=0
        ).astype(bf16)                                                         # (KK*Cin, Pout)
        # Push 2: all taps x channels contracted together; bias seeds the f32 acc.
        acc = b_ref[...] + jnp.dot(w_ref[...], im2col, preferred_element_type=f32)
        if act == "relu":
            acc = jnp.maximum(acc, 0.0)
        elif act == "sigmoid":
            acc = jax.nn.sigmoid(acc)
        return acc                                                             # (Cout, Pout)

    def conv1x1(A, w_ref, b_ref, residual=None):
        acc = b_ref[...] + jnp.dot(w_ref[...], A.astype(bf16), preferred_element_type=f32)
        if residual is not None:
            acc = acc + residual                       # fused FPN top-down add (f32)
        return acc

    def upsample2(A, u_ref):
        # nearest 2x upsample as a matmul with a 0/1 replication matrix (bf16, exact)
        return jnp.dot(A.astype(bf16), u_ref[...], preferred_element_type=f32)

    Nb = x_ref.shape[0]
    for nb in range(Nb):                               # static unroll: independent chains
        x = x_ref[nb]                                  # (3, 256) NCHW slab, f32

        c1 = conv3x3(x, stem_w_ref, stem_b_ref, stem_g_ref, act="relu")    # (8, 64)
        c2 = conv3x3(c1, enc2_w_ref, enc2_b_ref, enc2_g_ref, act="relu")   # (16, 16)
        c3 = conv3x3(c2, enc3_w_ref, enc3_b_ref, enc3_g_ref, act="relu")   # (32, 4)

        p3 = conv1x1(c3, lat3_w_ref, lat3_b_ref)                                   # (32, 4)
        p2 = conv1x1(c2, lat2_w_ref, lat2_b_ref, residual=upsample2(p3, up3_ref))  # (32, 16)
        p1 = conv1x1(c1, lat1_w_ref, lat1_b_ref, residual=upsample2(p2, up2_ref))  # (32, 64)

        # Head conv has the final 2x upsample pre-folded into its gather matrix, so
        # this directly produces the full-resolution, lane-dense NCHW slab.
        seg = conv3x3(p1, head_w_ref, head_b_ref, head_g_ref, act="sigmoid")       # (2, 256)
        o_ref[nb] = seg.astype(o_ref.dtype)


# ----------------------------------------------------------------------------
# Forward pass: single fused pallas_call, grid = batch blocks (parallel)
# ----------------------------------------------------------------------------
def unet_with_classification_forward(params, x_nchw, batch_block=2):
    N, Cin, H, W = x_nchw.shape
    classes = params["head"][0].shape[-1]

    (stem_w, stem_b, stem_g), H1, W1 = _prep_conv3x3(*params["stem"], H, W, stride=2)
    (enc2_w, enc2_b, enc2_g), H2, W2 = _prep_conv3x3(*params["enc2"], H1, W1, stride=2)
    (enc3_w, enc3_b, enc3_g), H3, W3 = _prep_conv3x3(*params["enc3"], H2, W2, stride=2)
    (head_w, head_b, head_g), Hh, Wh = _prep_conv3x3(
        *params["head"], H1, W1, stride=1, fold_upsample2=True)
    lat3_w, lat3_b = _prep_conv1x1(*params["lat3"])
    lat2_w, lat2_b = _prep_conv1x1(*params["lat2"])
    lat1_w, lat1_b = _prep_conv1x1(*params["lat1"])

    up3 = jnp.asarray(_upsample2_mat(H3, W3), jnp.bfloat16)      # (P3, P2)
    up2 = jnp.asarray(_upsample2_mat(H2, W2), jnp.bfloat16)      # (P2, P1)

    x2 = x_nchw.reshape(N, Cin, H * W)                           # contiguous NCHW slab
    Pout = Hh * Wh                                               # final resolution (= H*W)

    Nb = batch_block if (batch_block and N % batch_block == 0) else 1

    args = [
        x2,
        stem_w, stem_b, stem_g,
        enc2_w, enc2_b, enc2_g,
        enc3_w, enc3_b, enc3_g,
        lat3_w, lat3_b,
        lat2_w, lat2_b,
        lat1_w, lat1_b,
        head_w, head_b, head_g,
        up3, up2,
    ]
    in_specs = [pl.BlockSpec((Nb, Cin, H * W), lambda n: (n, 0, 0))]
    in_specs += [_const_spec(a) for a in args[1:]]

    out = pl.pallas_call(
        _fused_fpn_kernel,
        out_shape=jax.ShapeDtypeStruct((N, classes, Pout), x_nchw.dtype),
        grid=(N // Nb,),
        in_specs=in_specs,
        out_specs=pl.BlockSpec((Nb, classes, Pout), lambda n: (n, 0, 0)),
        compiler_params=pltpu.CompilerParams(
            dimension_semantics=("parallel",),
            vmem_limit_bytes=32 * 1024 * 1024,
        ),
    )(*args)
    return out.reshape(N, classes, Hh, Wh)                       # already NCHW


# ----------------------------------------------------------------------------
# Deterministic parameter init (same compact FPN stand-in as before)
# ----------------------------------------------------------------------------
def _conv_init(key, kh, kw, cin, cout):
    kw_key, kb_key = jax.random.split(key)
    fan_in = kh * kw * cin
    w = jax.random.normal(kw_key, (kh, kw, cin, cout), jnp.float32) / jnp.sqrt(
        jnp.float32(fan_in)
    )
    b = 0.01 * jax.random.normal(kb_key, (cout,), jnp.float32)
    return w, b


def init_params(key, classes=2):
    keys = jax.random.split(key, 7)
    return {
        "stem": _conv_init(keys[0], 3, 3, 3, 8),     # encoder stage 1 (stride 2)
        "enc2": _conv_init(keys[1], 3, 3, 8, 16),    # encoder stage 2 (stride 2)
        "enc3": _conv_init(keys[2], 3, 3, 16, 32),   # encoder stage 3 (stride 2)
        "lat3": _conv_init(keys[3], 1, 1, 32, 32),   # FPN lateral 1x1
        "lat2": _conv_init(keys[4], 1, 1, 16, 32),
        "lat1": _conv_init(keys[5], 1, 1, 8, 32),
        "head": _conv_init(keys[6], 3, 3, 32, classes),  # segmentation head
    }


# ----------------------------------------------------------------------------
# Pure-JAX reference (lax.conv, f32) for a correctness cross-check
# ----------------------------------------------------------------------------
def _reference_forward(params, x_nchw):
    x = jnp.transpose(x_nchw, (0, 2, 3, 1))

    def conv(v, w, b, stride=1, pad=0, act=None, residual=None):
        y = jax.lax.conv_general_dilated(
            v, w, window_strides=(stride, stride),
            padding=[(pad, pad), (pad, pad)],
            dimension_numbers=("NHWC", "HWIO", "NHWC"),
            precision=jax.lax.Precision.HIGHEST,
        ) + b
        if residual is not None:
            y = y + residual
        if act == "relu":
            y = jnp.maximum(y, 0.0)
        elif act == "sigmoid":
            y = jax.nn.sigmoid(y)
        return y

    up = lambda t: jnp.repeat(jnp.repeat(t, 2, axis=1), 2, axis=2)
    c1 = conv(x, *params["stem"], stride=2, pad=1, act="relu")
    c2 = conv(c1, *params["enc2"], stride=2, pad=1, act="relu")
    c3 = conv(c2, *params["enc3"], stride=2, pad=1, act="relu")
    p3 = conv(c3, *params["lat3"])
    p2 = conv(c2, *params["lat2"], residual=up(p3))
    p1 = conv(c1, *params["lat1"], residual=up(p2))
    seg = conv(p1, *params["head"], stride=1, pad=1, act="sigmoid")
    return jnp.transpose(up(seg), (0, 3, 1, 2))


if __name__ == "__main__":
    key = jax.random.PRNGKey(0)
    pkey, xkey = jax.random.split(key)
    params = init_params(pkey, classes=2)
    x = jax.random.normal(xkey, (2, 3, 16, 16), jnp.float32)  # NCHW, like PyTorch

    fwd = jax.jit(functools.partial(unet_with_classification_forward, params))
    y = jax.block_until_ready(fwd(x))

    y_ref = jax.block_until_ready(
        jax.jit(functools.partial(_reference_forward, params))(x)
    )

    assert y.shape == (2, 2, 16, 16), y.shape
    assert bool(jnp.all(jnp.isfinite(y)))
    assert bool(jnp.all((y >= 0.0) & (y <= 1.0)))  # sigmoid activation range
    max_err = float(jnp.max(jnp.abs(y - y_ref)))
    assert max_err < 5e-2, max_err
    print("KERNEL_OK")
</pallas_src>

<mosaic_0001>
module attributes {stable_mosaic.version = 11 : i64} {
  func.func @_fused_fpn_kernel(%arg0: i32, %arg1: memref<2x3x256xf32, #tpu.memory_space<vmem>>, %arg2: memref<8x27xbf16, #tpu.memory_space<vmem>>, %arg3: memref<8x1xf32, #tpu.memory_space<vmem>>, %arg4: memref<256x576xbf16, #tpu.memory_space<vmem>>, %arg5: memref<16x72xbf16, #tpu.memory_space<vmem>>, %arg6: memref<16x1xf32, #tpu.memory_space<vmem>>, %arg7: memref<64x144xbf16, #tpu.memory_space<vmem>>, %arg8: memref<32x144xbf16, #tpu.memory_space<vmem>>, %arg9: memref<32x1xf32, #tpu.memory_space<vmem>>, %arg10: memref<16x36xbf16, #tpu.memory_space<vmem>>, %arg11: memref<32x32xbf16, #tpu.memory_space<vmem>>, %arg12: memref<32x1xf32, #tpu.memory_space<vmem>>, %arg13: memref<32x16xbf16, #tpu.memory_space<vmem>>, %arg14: memref<32x1xf32, #tpu.memory_space<vmem>>, %arg15: memref<32x8xbf16, #tpu.memory_space<vmem>>, %arg16: memref<32x1xf32, #tpu.memory_space<vmem>>, %arg17: memref<2x288xbf16, #tpu.memory_space<vmem>>, %arg18: memref<2x1xf32, #tpu.memory_space<vmem>>, %arg19: memref<64x2304xbf16, #tpu.memory_space<vmem>>, %arg20: memref<4x16xbf16, #tpu.memory_space<vmem>>, %arg21: memref<16x64xbf16, #tpu.memory_space<vmem>>, %arg22: memref<2x2x256xf32, #tpu.memory_space<vmem>>) attributes {dimension_semantics = [#tpu.dimension_semantics<parallel>], iteration_bounds = array<i64: 1>, scalar_prefetch = 0 : i64, scratch_operands = 0 : i64, tpu.core_type = #tpu.core_type<tc>, window_params = [{transform_indices = @transform_0, window_bounds = array<i64: 2, 3, 256>}, {pipeline_mode = #tpu.pipeline_mode<synchronous>, transform_indices = @transform_1, window_bounds = array<i64: 8, 27>}, {pipeline_mode = #tpu.pipeline_mode<synchronous>, transform_indices = @transform_2, window_bounds = array<i64: 8, 1>}, {pipeline_mode = #tpu.pipeline_mode<synchronous>, transform_indices = @transform_3, window_bounds = array<i64: 256, 576>}, {pipeline_mode = #tpu.pipeline_mode<synchronous>, transform_indices = @transform_4, window_bounds = array<i64: 16, 72>}, {pipeline_mode = #tpu.pipeline_mode<synchronous>, transform_indices = @transform_5, window_bounds = array<i64: 16, 1>}, {pipeline_mode = #tpu.pipeline_mode<synchronous>, transform_indices = @transform_6, window_bounds = array<i64: 64, 144>}, {pipeline_mode = #tpu.pipeline_mode<synchronous>, transform_indices = @transform_7, window_bounds = array<i64: 32, 144>}, {pipeline_mode = #tpu.pipeline_mode<synchronous>, transform_indices = @transform_8, window_bounds = array<i64: 32, 1>}, {pipeline_mode = #tpu.pipeline_mode<synchronous>, transform_indices = @transform_9, window_bounds = array<i64: 16, 36>}, {pipeline_mode = #tpu.pipeline_mode<synchronous>, transform_indices = @transform_10, window_bounds = array<i64: 32, 32>}, {pipeline_mode = #tpu.pipeline_mode<synchronous>, transform_indices = @transform_11, window_bounds = array<i64: 32, 1>}, {pipeline_mode = #tpu.pipeline_mode<synchronous>, transform_indices = @transform_12, window_bounds = array<i64: 32, 16>}, {pipeline_mode = #tpu.pipeline_mode<synchronous>, transform_indices = @transform_13, window_bounds = array<i64: 32, 1>}, {pipeline_mode = #tpu.pipeline_mode<synchronous>, transform_indices = @transform_14, window_bounds = array<i64: 32, 8>}, {pipeline_mode = #tpu.pipeline_mode<synchronous>, transform_indices = @transform_15, window_bounds = array<i64: 32, 1>}, {pipeline_mode = #tpu.pipeline_mode<synchronous>, transform_indices = @transform_16, window_bounds = array<i64: 2, 288>}, {pipeline_mode = #tpu.pipeline_mode<synchronous>, transform_indices = @transform_17, window_bounds = array<i64: 2, 1>}, {pipeline_mode = #tpu.pipeline_mode<synchronous>, transform_indices = @transform_18, window_bounds = array<i64: 64, 2304>}, {pipeline_mode = #tpu.pipeline_mode<synchronous>, transform_indices = @transform_19, window_bounds = array<i64: 4, 16>}, {pipeline_mode = #tpu.pipeline_mode<synchronous>, transform_indices = @transform_20, window_bounds = array<i64: 16, 64>}, {transform_indices = @transform_21, window_bounds = array<i64: 2, 2, 256>}]} {
    %c0 = arith.constant 0 : index
    %c0_0 = arith.constant 0 : index
    %c0_1 = arith.constant 0 : index
    %0 = vector.load %arg1[%c0, %c0_0, %c0_1] : memref<2x3x256xf32, #tpu.memory_space<vmem>>, vector<1x3x256xf32>
    %1 = vector.shape_cast %0 : vector<1x3x256xf32> to vector<3x256xf32>
    %2 = arith.truncf %1 : vector<3x256xf32> to vector<3x256xbf16>
    %c0_2 = arith.constant 0 : index
    %c0_3 = arith.constant 0 : index
    %3 = vector.load %arg4[%c0_2, %c0_3] : memref<256x576xbf16, #tpu.memory_space<vmem>>, vector<256x576xbf16>
    %cst = arith.constant dense<0.000000e+00> : vector<3x576xf32>
    %4 = tpu.matmul %2, %3, %cst {dimension_numbers = #tpu.dot_dimension_numbers<[1], [0], [0], [1], [0, 0, 1, 1], [], []>} : vector<3x256xbf16>, vector<256x576xbf16>, vector<3x576xf32> -> vector<3x576xf32>
    %5 = vector.extract_strided_slice %4 {offsets = [0, 0], sizes = [3, 64], strides = [1, 1]} : vector<3x576xf32> to vector<3x64xf32>
    %6 = vector.extract_strided_slice %4 {offsets = [0, 64], sizes = [3, 64], strides = [1, 1]} : vector<3x576xf32> to vector<3x64xf32>
    %7 = vector.extract_strided_slice %4 {offsets = [0, 128], sizes = [3, 64], strides = [1, 1]} : vector<3x576xf32> to vector<3x64xf32>
    %8 = vector.extract_strided_slice %4 {offsets = [0, 192], sizes = [3, 64], strides = [1, 1]} : vector<3x576xf32> to vector<3x64xf32>
    %9 = vector.extract_strided_slice %4 {offsets = [0, 256], sizes = [3, 64], strides = [1, 1]} : vector<3x576xf32> to vector<3x64xf32>
    %10 = vector.extract_strided_slice %4 {offsets = [0, 320], sizes = [3, 64], strides = [1, 1]} : vector<3x576xf32> to vector<3x64xf32>
    %11 = vector.extract_strided_slice %4 {offsets = [0, 384], sizes = [3, 64], strides = [1, 1]} : vector<3x576xf32> to vector<3x64xf32>
    %12 = vector.extract_strided_slice %4 {offsets = [0, 448], sizes = [3, 64], strides = [1, 1]} : vector<3x576xf32> to vector<3x64xf32>
    %13 = vector.extract_strided_slice %4 {offsets = [0, 512], sizes = [3, 64], strides = [1, 1]} : vector<3x576xf32> to vector<3x64xf32>
    %14 = tpu.concatenate %5, %6, %7, %8, %9, %10, %11, %12, %13 in 0 : vector<3x64xf32>, vector<3x64xf32>, vector<3x64xf32>, vector<3x64xf32>, vector<3x64xf32>, vector<3x64xf32>, vector<3x64xf32>, vector<3x64xf32>, vector<3x64xf32> -> vector<27x64xf32>
    %15 = arith.truncf %14 : vector<27x64xf32> to vector<27x64xbf16>
    %c0_4 = arith.constant 0 : index
    %c0_5 = arith.constant 0 : index
    %16 = vector.load %arg3[%c0_4, %c0_5] : memref<8x1xf32, #tpu.memory_space<vmem>>, vector<8x1xf32>
    %c0_6 = arith.constant 0 : index
    %c0_7 = arith.constant 0 : index
    %17 = vector.load %arg2[%c0_6, %c0_7] : memref<8x27xbf16, #tpu.memory_space<vmem>>, vector<8x27xbf16>
    %cst_8 = arith.constant dense<0.000000e+00> : vector<8x64xf32>
    %18 = tpu.matmul %17, %15, %cst_8 {dimension_numbers = #tpu.dot_dimension_numbers<[1], [0], [0], [1], [0, 0, 1, 1], [], []>} : vector<8x27xbf16>, vector<27x64xbf16>, vector<8x64xf32> -> vector<8x64xf32>
    %19 = vector.broadcast %16 : vector<8x1xf32> to vector<8x64xf32>
    %20 = arith.addf %19, %18 : vector<8x64xf32>
    %cst_9 = arith.constant 0.000000e+00 : f32
    %21 = vector.broadcast %cst_9 : f32 to vector<8x64xf32>
    %22 = arith.maximumf %20, %21 : vector<8x64xf32>
    %23 = arith.truncf %22 : vector<8x64xf32> to vector<8x64xbf16>
    %c0_10 = arith.constant 0 : index
    %c0_11 = arith.constant 0 : index
    %24 = vector.load %arg7[%c0_10, %c0_11] : memref<64x144xbf16, #tpu.memory_space<vmem>>, vector<64x144xbf16>
    %cst_12 = arith.constant dense<0.000000e+00> : vector<8x144xf32>
    %25 = tpu.matmul %23, %24, %cst_12 {dimension_numbers = #tpu.dot_dimension_numbers<[1], [0], [0], [1], [0, 0, 1, 1], [], []>} : vector<8x64xbf16>, vector<64x144xbf16>, vector<8x144xf32> -> vector<8x144xf32>
    %26 = vector.extract_strided_slice %25 {offsets = [0, 0], sizes = [8, 16], strides = [1, 1]} : vector<8x144xf32> to vector<8x16xf32>
    %27 = vector.extract_strided_slice %25 {offsets = [0, 16], sizes = [8, 16], strides = [1, 1]} : vector<8x144xf32> to vector<8x16xf32>
    %28 = vector.extract_strided_slice %25 {offsets = [0, 32], sizes = [8, 16], strides = [1, 1]} : vector<8x144xf32> to vector<8x16xf32>
    %29 = vector.extract_strided_slice %25 {offsets = [0, 48], sizes = [8, 16], strides = [1, 1]} : vector<8x144xf32> to vector<8x16xf32>
    %30 = vector.extract_strided_slice %25 {offsets = [0, 64], sizes = [8, 16], strides = [1, 1]} : vector<8x144xf32> to vector<8x16xf32>
    %31 = vector.extract_strided_slice %25 {offsets = [0, 80], sizes = [8, 16], strides = [1, 1]} : vector<8x144xf32> to vector<8x16xf32>
    %32 = vector.extract_strided_slice %25 {offsets = [0, 96], sizes = [8, 16], strides = [1, 1]} : vector<8x144xf32> to vector<8x16xf32>
    %33 = vector.extract_strided_slice %25 {offsets = [0, 112], sizes = [8, 16], strides = [1, 1]} : vector<8x144xf32> to vector<8x16xf32>
    %34 = vector.extract_strided_slice %25 {offsets = [0, 128], sizes = [8, 16], strides = [1, 1]} : vector<8x144xf32> to vector<8x16xf32>
    %35 = tpu.concatenate %26, %27, %28, %29, %30, %31, %32, %33, %34 in 0 : vector<8x16xf32>, vector<8x16xf32>, vector<8x16xf32>, vector<8x16xf32>, vector<8x16xf32>, vector<8x16xf32>, vector<8x16xf32>, vector<8x16xf32>, vector<8x16xf32> -> vector<72x16xf32>
    %36 = arith.truncf %35 : vector<72x16xf32> to vector<72x16xbf16>
    %c0_13 = arith.constant 0 : index
    %c0_14 = arith.constant 0 : index
    %37 = vector.load %arg6[%c0_13, %c0_14] : memref<16x1xf32, #tpu.memory_space<vmem>>, vector<16x1xf32>
    %c0_15 = arith.constant 0 : index
    %c0_16 = arith.constant 0 : index
    %38 = vector.load %arg5[%c0_15, %c0_16] : memref<16x72xbf16, #tpu.memory_space<vmem>>, vector<16x72xbf16>
    %cst_17 = arith.constant dense<0.000000e+00> : vector<16x16xf32>
    %39 = tpu.matmul %38, %36, %cst_17 {dimension_numbers = #tpu.dot_dimension_numbers<[1], [0], [0], [1], [0, 0, 1, 1], [], []>} : vector<16x72xbf16>, vector<72x16xbf16>, vector<16x16xf32> -> vector<16x16xf32>
    %40 = vector.broadcast %37 : vector<16x1xf32> to vector<16x16xf32>
    %41 = arith.addf %40, %39 : vector<16x16xf32>
    %cst_18 = arith.constant 0.000000e+00 : f32
    %42 = vector.broadcast %cst_18 : f32 to vector<16x16xf32>
    %43 = arith.maximumf %41, %42 : vector<16x16xf32>
    %44 = arith.truncf %43 : vector<16x16xf32> to vector<16x16xbf16>
    %c0_19 = arith.constant 0 : index
    %c0_20 = arith.constant 0 : index
    %45 = vector.load %arg10[%c0_19, %c0_20] : memref<16x36xbf16, #tpu.memory_space<vmem>>, vector<16x36xbf16>
    %cst_21 = arith.constant dense<0.000000e+00> : vector<16x36xf32>
    %46 = tpu.matmul %44, %45, %cst_21 {dimension_numbers = #tpu.dot_dimension_numbers<[1], [0], [0], [1], [0, 0, 1, 1], [], []>} : vector<16x16xbf16>, vector<16x36xbf16>, vector<16x36xf32> -> vector<16x36xf32>
    %47 = vector.extract_strided_slice %46 {offsets = [0, 0], sizes = [16, 4], strides = [1, 1]} : vector<16x36xf32> to vector<16x4xf32>
    %48 = vector.extract_strided_slice %46 {offsets = [0, 4], sizes = [16, 4], strides = [1, 1]} : vector<16x36xf32> to vector<16x4xf32>
    %49 = vector.extract_strided_slice %46 {offsets = [0, 8], sizes = [16, 4], strides = [1, 1]} : vector<16x36xf32> to vector<16x4xf32>
    %50 = vector.extract_strided_slice %46 {offsets = [0, 12], sizes = [16, 4], strides = [1, 1]} : vector<16x36xf32> to vector<16x4xf32>
    %51 = vector.extract_strided_slice %46 {offsets = [0, 16], sizes = [16, 4], strides = [1, 1]} : vector<16x36xf32> to vector<16x4xf32>
    %52 = vector.extract_strided_slice %46 {offsets = [0, 20], sizes = [16, 4], strides = [1, 1]} : vector<16x36xf32> to vector<16x4xf32>
    %53 = vector.extract_strided_slice %46 {offsets = [0, 24], sizes = [16, 4], strides = [1, 1]} : vector<16x36xf32> to vector<16x4xf32>
    %54 = vector.extract_strided_slice %46 {offsets = [0, 28], sizes = [16, 4], strides = [1, 1]} : vector<16x36xf32> to vector<16x4xf32>
    %55 = vector.extract_strided_slice %46 {offsets = [0, 32], sizes = [16, 4], strides = [1, 1]} : vector<16x36xf32> to vector<16x4xf32>
    %56 = tpu.concatenate %47, %48, %49, %50, %51, %52, %53, %54, %55 in 0 : vector<16x4xf32>, vector<16x4xf32>, vector<16x4xf32>, vector<16x4xf32>, vector<16x4xf32>, vector<16x4xf32>, vector<16x4xf32>, vector<16x4xf32>, vector<16x4xf32> -> vector<144x4xf32>
    %57 = arith.truncf %56 : vector<144x4xf32> to vector<144x4xbf16>
    %c0_22 = arith.constant 0 : index
    %c0_23 = arith.constant 0 : index
    %58 = vector.load %arg9[%c0_22, %c0_23] : memref<32x1xf32, #tpu.memory_space<vmem>>, vector<32x1xf32>
    %c0_24 = arith.constant 0 : index
    %c0_25 = arith.constant 0 : index
    %59 = vector.load %arg8[%c0_24, %c0_25] : memref<32x144xbf16, #tpu.memory_space<vmem>>, vector<32x144xbf16>
    %cst_26 = arith.constant dense<0.000000e+00> : vector<32x4xf32>
    %60 = tpu.matmul %59, %57, %cst_26 {dimension_numbers = #tpu.dot_dimension_numbers<[1], [0], [0], [1], [0, 0, 1, 1], [], []>} : vector<32x144xbf16>, vector<144x4xbf16>, vector<32x4xf32> -> vector<32x4xf32>
    %61 = vector.broadcast %58 : vector<32x1xf32> to vector<32x4xf32>
    %62 = arith.addf %61, %60 : vector<32x4xf32>
    %cst_27 = arith.constant 0.000000e+00 : f32
    %63 = vector.broadcast %cst_27 : f32 to vector<32x4xf32>
    %64 = arith.maximumf %62, %63 : vector<32x4xf32>
    %c0_28 = arith.constant 0 : index
    %c0_29 = arith.constant 0 : index
    %65 = vector.load %arg12[%c0_28, %c0_29] : memref<32x1xf32, #tpu.memory_space<vmem>>, vector<32x1xf32>
    %c0_30 = arith.constant 0 : index
    %c0_31 = arith.constant 0 : index
    %66 = vector.load %arg11[%c0_30, %c0_31] : memref<32x32xbf16, #tpu.memory_space<vmem>>, vector<32x32xbf16>
    %67 = arith.truncf %64 : vector<32x4xf32> to vector<32x4xbf16>
    %cst_32 = arith.constant dense<0.000000e+00> : vector<32x4xf32>
    %68 = tpu.matmul %66, %67, %cst_32 {dimension_numbers = #tpu.dot_dimension_numbers<[1], [0], [0], [1], [0, 0, 1, 1], [], []>} : vector<32x32xbf16>, vector<32x4xbf16>, vector<32x4xf32> -> vector<32x4xf32>
    %69 = vector.broadcast %65 : vector<32x1xf32> to vector<32x4xf32>
    %70 = arith.addf %69, %68 : vector<32x4xf32>
    %71 = arith.truncf %70 : vector<32x4xf32> to vector<32x4xbf16>
    %c0_33 = arith.constant 0 : index
    %c0_34 = arith.constant 0 : index
    %72 = vector.load %arg20[%c0_33, %c0_34] : memref<4x16xbf16, #tpu.memory_space<vmem>>, vector<4x16xbf16>
    %cst_35 = arith.constant dense<0.000000e+00> : vector<32x16xf32>
    %73 = tpu.matmul %71, %72, %cst_35 {dimension_numbers = #tpu.dot_dimension_numbers<[1], [0], [0], [1], [0, 0, 1, 1], [], []>} : vector<32x4xbf16>, vector<4x16xbf16>, vector<32x16xf32> -> vector<32x16xf32>
    %c0_36 = arith.constant 0 : index
    %c0_37 = arith.constant 0 : index
    %74 = vector.load %arg14[%c0_36, %c0_37] : memref<32x1xf32, #tpu.memory_space<vmem>>, vector<32x1xf32>
    %c0_38 = arith.constant 0 : index
    %c0_39 = arith.constant 0 : index
    %75 = vector.load %arg13[%c0_38, %c0_39] : memref<32x16xbf16, #tpu.memory_space<vmem>>, vector<32x16xbf16>
    %76 = arith.truncf %43 : vector<16x16xf32> to vector<16x16xbf16>
    %cst_40 = arith.constant dense<0.000000e+00> : vector<32x16xf32>
    %77 = tpu.matmul %75, %76, %cst_40 {dimension_numbers = #tpu.dot_dimension_numbers<[1], [0], [0], [1], [0, 0, 1, 1], [], []>} : vector<32x16xbf16>, vector<16x16xbf16>, vector<32x16xf32> -> vector<32x16xf32>
    %78 = vector.broadcast %74 : vector<32x1xf32> to vector<32x16xf32>
    %79 = arith.addf %78, %77 : vector<32x16xf32>
    %80 = arith.addf %79, %73 : vector<32x16xf32>
    %81 = arith.truncf %80 : vector<32x16xf32> to vector<32x16xbf16>
    %c0_41 = arith.constant 0 : index
    %c0_42 = arith.constant 0 : index
    %82 = vector.load %arg21[%c0_41, %c0_42] : memref<16x64xbf16, #tpu.memory_space<vmem>>, vector<16x64xbf16>
    %cst_43 = arith.constant dense<0.000000e+00> : vector<32x64xf32>
    %83 = tpu.matmul %81, %82, %cst_43 {dimension_numbers = #tpu.dot_dimension_numbers<[1], [0], [0], [1], [0, 0, 1, 1], [], []>} : vector<32x16xbf16>, vector<16x64xbf16>, vector<32x64xf32> -> vector<32x64xf32>
    %c0_44 = arith.constant 0 : index
    %c0_45 = arith.constant 0 : index
    %84 = vector.load %arg16[%c0_44, %c0_45] : memref<32x1xf32, #tpu.memory_space<vmem>>, vector<32x1xf32>
    %c0_46 = arith.constant 0 : index
    %c0_47 = arith.constant 0 : index
    %85 = vector.load %arg15[%c0_46, %c0_47] : memref<32x8xbf16, #tpu.memory_space<vmem>>, vector<32x8xbf16>
    %86 = arith.truncf %22 : vector<8x64xf32> to vector<8x64xbf16>
    %cst_48 = arith.constant dense<0.000000e+00> : vector<32x64xf32>
    %87 = tpu.matmul %85, %86, %cst_48 {dimension_numbers = #tpu.dot_dimension_numbers<[1], [0], [0], [1], [0, 0, 1, 1], [], []>} : vector<32x8xbf16>, vector<8x64xbf16>, vector<32x64xf32> -> vector<32x64xf32>
    %88 = vector.broadcast %84 : vector<32x1xf32> to vector<32x64xf32>
    %89 = arith.addf %88, %87 : vector<32x64xf32>
    %90 = arith.addf %89, %83 : vector<32x64xf32>
    %91 = arith.truncf %90 : vector<32x64xf32> to vector<32x64xbf16>
    %c0_49 = arith.constant 0 : index
    %c0_50 = arith.constant 0 : index
    %92 = vector.load %arg19[%c0_49, %c0_50] : memref<64x2304xbf16, #tpu.memory_space<vmem>>, vector<64x2304xbf16>
    %cst_51 = arith.constant dense<0.000000e+00> : vector<32x2304xf32>
    %93 = tpu.matmul %91, %92, %cst_51 {dimension_numbers = #tpu.dot_dimension_numbers<[1], [0], [0], [1], [0, 0, 1, 1], [], []>} : vector<32x64xbf16>, vector<64x2304xbf16>, vector<32x2304xf32> -> vector<32x2304xf32>
    %94 = vector.extract_strided_slice %93 {offsets = [0, 0], sizes = [32, 256], strides = [1, 1]} : vector<32x2304xf32> to vector<32x256xf32>
    %95 = vector.extract_strided_slice %93 {offsets = [0, 256], sizes = [32, 256], strides = [1, 1]} : vector<32x2304xf32> to vector<32x256xf32>
    %96 = vector.extract_strided_slice %93 {offsets = [0, 512], sizes = [32, 256], strides = [1, 1]} : vector<32x2304xf32> to vector<32x256xf32>
    %97 = vector.extract_strided_slice %93 {offsets = [0, 768], sizes = [32, 256], strides = [1, 1]} : vector<32x2304xf32> to vector<32x256xf32>
    %98 = vector.extract_strided_slice %93 {offsets = [0, 1024], sizes = [32, 256], strides = [1, 1]} : vector<32x2304xf32> to vector<32x256xf32>
    %99 = vector.extract_strided_slice %93 {offsets = [0, 1280], sizes = [32, 256], strides = [1, 1]} : vector<32x2304xf32> to vector<32x256xf32>
    %100 = vector.extract_strided_slice %93 {offsets = [0, 1536], sizes = [32, 256], strides = [1, 1]} : vector<32x2304xf32> to vector<32x256xf32>
    %101 = vector.extract_strided_slice %93 {offsets = [0, 1792], sizes = [32, 256], strides = [1, 1]} : vector<32x2304xf32> to vector<32x256xf32>
    %102 = vector.extract_strided_slice %93 {offsets = [0, 2048], sizes = [32, 256], strides = [1, 1]} : vector<32x2304xf32> to vector<32x256xf32>
    %103 = tpu.concatenate %94, %95, %96, %97, %98, %99, %100, %101, %102 in 0 : vector<32x256xf32>, vector<32x256xf32>, vector<32x256xf32>, vector<32x256xf32>, vector<32x256xf32>, vector<32x256xf32>, vector<32x256xf32>, vector<32x256xf32>, vector<32x256xf32> -> vector<288x256xf32>
    %104 = arith.truncf %103 : vector<288x256xf32> to vector<288x256xbf16>
    %c0_52 = arith.constant 0 : index
    %c0_53 = arith.constant 0 : index
    %105 = vector.load %arg18[%c0_52, %c0_53] : memref<2x1xf32, #tpu.memory_space<vmem>>, vector<2x1xf32>
    %c0_54 = arith.constant 0 : index
    %c0_55 = arith.constant 0 : index
    %106 = vector.load %arg17[%c0_54, %c0_55] : memref<2x288xbf16, #tpu.memory_space<vmem>>, vector<2x288xbf16>
    %cst_56 = arith.constant dense<0.000000e+00> : vector<2x256xf32>
    %107 = tpu.matmul %106, %104, %cst_56 {dimension_numbers = #tpu.dot_dimension_numbers<[1], [0], [0], [1], [0, 0, 1, 1], [], []>} : vector<2x288xbf16>, vector<288x256xbf16>, vector<2x256xf32> -> vector<2x256xf32>
    %108 = vector.broadcast %105 : vector<2x1xf32> to vector<2x256xf32>
    %109 = arith.addf %108, %107 : vector<2x256xf32>
    %110 = arith.negf %109 : vector<2x256xf32>
    %111 = math.exp %110 : vector<2x256xf32>
    %cst_57 = arith.constant 1.000000e+00 : f32
    %112 = vector.broadcast %cst_57 : f32 to vector<2x256xf32>
    %113 = arith.addf %112, %111 : vector<2x256xf32>
    %114 = arith.divf %112, %113 : vector<2x256xf32>
    %c0_58 = arith.constant 0 : index
    %c0_59 = arith.constant 0 : index
    %c0_60 = arith.constant 0 : index
    %115 = vector.load %arg22[%c0_58, %c0_59, %c0_60] : memref<2x2x256xf32, #tpu.memory_space<vmem>>, vector<1x2x256xf32>
    %116 = vector.shape_cast %115 : vector<1x2x256xf32> to vector<2x256xf32>
    %117 = vector.shape_cast %114 : vector<2x256xf32> to vector<1x2x256xf32>
    tpu.vector_store %arg22[%c0_58, %c0_59, %c0_60], %117 {strides = array<i32>} : memref<2x2x256xf32, #tpu.memory_space<vmem>>, vector<1x2x256xf32>,
    %c1 = arith.constant 1 : index
    %c0_61 = arith.constant 0 : index
    %c0_62 = arith.constant 0 : index
    %118 = vector.load %arg1[%c1, %c0_61, %c0_62] : memref<2x3x256xf32, #tpu.memory_space<vmem>>, vector<1x3x256xf32>
    %119 = vector.shape_cast %118 : vector<1x3x256xf32> to vector<3x256xf32>
    %120 = arith.truncf %119 : vector<3x256xf32> to vector<3x256xbf16>
    %c0_63 = arith.constant 0 : index
    %c0_64 = arith.constant 0 : index
    %121 = vector.load %arg4[%c0_63, %c0_64] : memref<256x576xbf16, #tpu.memory_space<vmem>>, vector<256x576xbf16>
    %cst_65 = arith.constant dense<0.000000e+00> : vector<3x576xf32>
    %122 = tpu.matmul %120, %121, %cst_65 {dimension_numbers = #tpu.dot_dimension_numbers<[1], [0], [0], [1], [0, 0, 1, 1], [], []>} : vector<3x256xbf16>, vector<256x576xbf16>, vector<3x576xf32> -> vector<3x576xf32>
    %123 = vector.extract_strided_slice %122 {offsets = [0, 0], sizes = [3, 64], strides = [1, 1]} : vector<3x576xf32> to vector<3x64xf32>
    %124 = vector.extract_strided_slice %122 {offsets = [0, 64], sizes = [3, 64], strides = [1, 1]} : vector<3x576xf32> to vector<3x64xf32>
    %125 = vector.extract_strided_slice %122 {offsets = [0, 128], sizes = [3, 64], strides = [1, 1]} : vector<3x576xf32> to vector<3x64xf32>
    %126 = vector.extract_strided_slice %122 {offsets = [0, 192], sizes = [3, 64], strides = [1, 1]} : vector<3x576xf32> to vector<3x64xf32>
    %127 = vector.extract_strided_slice %122 {offsets = [0, 256], sizes = [3, 64], strides = [1, 1]} : vector<3x576xf32> to vector<3x64xf32>
    %128 = vector.extract_strided_slice %122 {offsets = [0, 320], sizes = [3, 64], strides = [1, 1]} : vector<3x576xf32> to vector<3x64xf32>
    %129 = vector.extract_strided_slice %122 {offsets = [0, 384], sizes = [3, 64], strides = [1, 1]} : vector<3x576xf32> to vector<3x64xf32>
    %130 = vector.extract_strided_slice %122 {offsets = [0, 448], sizes = [3, 64], strides = [1, 1]} : vector<3x576xf32> to vector<3x64xf32>
    %131 = vector.extract_strided_slice %122 {offsets = [0, 512], sizes = [3, 64], strides = [1, 1]} : vector<3x576xf32> to vector<3x64xf32>
    %132 = tpu.concatenate %123, %124, %125, %126, %127, %128, %129, %130, %131 in 0 : vector<3x64xf32>, vector<3x64xf32>, vector<3x64xf32>, vector<3x64xf32>, vector<3x64xf32>, vector<3x64xf32>, vector<3x64xf32>, vector<3x64xf32>, vector<3x64xf32> -> vector<27x64xf32>
    %133 = arith.truncf %132 : vector<27x64xf32> to vector<27x64xbf16>
    %c0_66 = arith.constant 0 : index
    %c0_67 = arith.constant 0 : index
    %134 = vector.load %arg3[%c0_66, %c0_67] : memref<8x1xf32, #tpu.memory_space<vmem>>, vector<8x1xf32>
    %c0_68 = arith.constant 0 : index
    %c0_69 = arith.constant 0 : index
    %135 = vector.load %arg2[%c0_68, %c0_69] : memref<8x27xbf16, #tpu.memory_space<vmem>>, vector<8x27xbf16>
    %cst_70 = arith.constant dense<0.000000e+00> : vector<8x64xf32>
    %136 = tpu.matmul %135, %133, %cst_70 {dimension_numbers = #tpu.dot_dimension_numbers<[1], [0], [0], [1], [0, 0, 1, 1], [], []>} : vector<8x27xbf16>, vector<27x64xbf16>, vector<8x64xf32> -> vector<8x64xf32>
    %137 = vector.broadcast %134 : vector<8x1xf32> to vector<8x64xf32>
    %138 = arith.addf %137, %136 : vector<8x64xf32>
    %cst_71 = arith.constant 0.000000e+00 : f32
    %139 = vector.broadcast %cst_71 : f32 to vector<8x64xf32>
    %140 = arith.maximumf %138, %139 : vector<8x64xf32>
    %141 = arith.truncf %140 : vector<8x64xf32> to vector<8x64xbf16>
    %c0_72 = arith.constant 0 : index
    %c0_73 = arith.constant 0 : index
    %142 = vector.load %arg7[%c0_72, %c0_73] : memref<64x144xbf16, #tpu.memory_space<vmem>>, vector<64x144xbf16>
    %cst_74 = arith.constant dense<0.000000e+00> : vector<8x144xf32>
    %143 = tpu.matmul %141, %142, %cst_74 {dimension_numbers = #tpu.dot_dimension_numbers<[1], [0], [0], [1], [0, 0, 1, 1], [], []>} : vector<8x64xbf16>, vector<64x144xbf16>, vector<8x144xf32> -> vector<8x144xf32>
    %144 = vector.extract_strided_slice %143 {offsets = [0, 0], sizes = [8, 16], strides = [1, 1]} : vector<8x144xf32> to vector<8x16xf32>
    %145 = vector.extract_strided_slice %143 {offsets = [0, 16], sizes = [8, 16], strides = [1, 1]} : vector<8x144xf32> to vector<8x16xf32>
    %146 = vector.extract_strided_slice %143 {offsets = [0, 32], sizes = [8, 16], strides = [1, 1]} : vector<8x144xf32> to vector<8x16xf32>
    %147 = vector.extract_strided_slice %143 {offsets = [0, 48], sizes = [8, 16], strides = [1, 1]} : vector<8x144xf32> to vector<8x16xf32>
    %148 = vector.extract_strided_slice %143 {offsets = [0, 64], sizes = [8, 16], strides = [1, 1]} : vector<8x144xf32> to vector<8x16xf32>
    %149 = vector.extract_strided_slice %143 {offsets = [0, 80], sizes = [8, 16], strides = [1, 1]} : vector<8x144xf32> to vector<8x16xf32>
    %150 = vector.extract_strided_slice %143 {offsets = [0, 96], sizes = [8, 16], strides = [1, 1]} : vector<8x144xf32> to vector<8x16xf32>
    %151 = vector.extract_strided_slice %143 {offsets = [0, 112], sizes = [8, 16], strides = [1, 1]} : vector<8x144xf32> to vector<8x16xf32>
    %152 = vector.extract_strided_slice %143 {offsets = [0, 128], sizes = [8, 16], strides = [1, 1]} : vector<8x144xf32> to vector<8x16xf32>
    %153 = tpu.concatenate %144, %145, %146, %147, %148, %149, %150, %151, %152 in 0 : vector<8x16xf32>, vector<8x16xf32>, vector<8x16xf32>, vector<8x16xf32>, vector<8x16xf32>, vector<8x16xf32>, vector<8x16xf32>, vector<8x16xf32>, vector<8x16xf32> -> vector<72x16xf32>
    %154 = arith.truncf %153 : vector<72x16xf32> to vector<72x16xbf16>
    %c0_75 = arith.constant 0 : index
    %c0_76 = arith.constant 0 : index
    %155 = vector.load %arg6[%c0_75, %c0_76] : memref<16x1xf32, #tpu.memory_space<vmem>>, vector<16x1xf32>
    %c0_77 = arith.constant 0 : index
    %c0_78 = arith.constant 0 : index
    %156 = vector.load %arg5[%c0_77, %c0_78] : memref<16x72xbf16, #tpu.memory_space<vmem>>, vector<16x72xbf16>
    %cst_79 = arith.constant dense<0.000000e+00> : vector<16x16xf32>
    %157 = tpu.matmul %156, %154, %cst_79 {dimension_numbers = #tpu.dot_dimension_numbers<[1], [0], [0], [1], [0, 0, 1, 1], [], []>} : vector<16x72xbf16>, vector<72x16xbf16>, vector<16x16xf32> -> vector<16x16xf32>
    %158 = vector.broadcast %155 : vector<16x1xf32> to vector<16x16xf32>
    %159 = arith.addf %158, %157 : vector<16x16xf32>
    %cst_80 = arith.constant 0.000000e+00 : f32
    %160 = vector.broadcast %cst_80 : f32 to vector<16x16xf32>
    %161 = arith.maximumf %159, %160 : vector<16x16xf32>
    %162 = arith.truncf %161 : vector<16x16xf32> to vector<16x16xbf16>
    %c0_81 = arith.constant 0 : index
    %c0_82 = arith.constant 0 : index
    %163 = vector.load %arg10[%c0_81, %c0_82] : memref<16x36xbf16, #tpu.memory_space<vmem>>, vector<16x36xbf16>
    %cst_83 = arith.constant dense<0.000000e+00> : vector<16x36xf32>
    %164 = tpu.matmul %162, %163, %cst_83 {dimension_numbers = #tpu.dot_dimension_numbers<[1], [0], [0], [1], [0, 0, 1, 1], [], []>} : vector<16x16xbf16>, vector<16x36xbf16>, vector<16x36xf32> -> vector<16x36xf32>
    %165 = vector.extract_strided_slice %164 {offsets = [0, 0], sizes = [16, 4], strides = [1, 1]} : vector<16x36xf32> to vector<16x4xf32>
    %166 = vector.extract_strided_slice %164 {offsets = [0, 4], sizes = [16, 4], strides = [1, 1]} : vector<16x36xf32> to vector<16x4xf32>
    %167 = vector.extract_strided_slice %164 {offsets = [0, 8], sizes = [16, 4], strides = [1, 1]} : vector<16x36xf32> to vector<16x4xf32>
    %168 = vector.extract_strided_slice %164 {offsets = [0, 12], sizes = [16, 4], strides = [1, 1]} : vector<16x36xf32> to vector<16x4xf32>
    %169 = vector.extract_strided_slice %164 {offsets = [0, 16], sizes = [16, 4], strides = [1, 1]} : vector<16x36xf32> to vector<16x4xf32>
    %170 = vector.extract_strided_slice %164 {offsets = [0, 20], sizes = [16, 4], strides = [1, 1]} : vector<16x36xf32> to vector<16x4xf32>
    %171 = vector.extract_strided_slice %164 {offsets = [0, 24], sizes = [16, 4], strides = [1, 1]} : vector<16x36xf32> to vector<16x4xf32>
    %172 = vector.extract_strided_slice %164 {offsets = [0, 28], sizes = [16, 4], strides = [1, 1]} : vector<16x36xf32> to vector<16x4xf32>
    %173 = vector.extract_strided_slice %164 {offsets = [0, 32], sizes = [16, 4], strides = [1, 1]} : vector<16x36xf32> to vector<16x4xf32>
    %174 = tpu.concatenate %165, %166, %167, %168, %169, %170, %171, %172, %173 in 0 : vector<16x4xf32>, vector<16x4xf32>, vector<16x4xf32>, vector<16x4xf32>, vector<16x4xf32>, vector<16x4xf32>, vector<16x4xf32>, vector<16x4xf32>, vector<16x4xf32> -> vector<144x4xf32>
    %175 = arith.truncf %174 : vector<144x4xf32> to vector<144x4xbf16>
    %c0_84 = arith.constant 0 : index
    %c0_85 = arith.constant 0 : index
    %176 = vector.load %arg9[%c0_84, %c0_85] : memref<32x1xf32, #tpu.memory_space<vmem>>, vector<32x1xf32>
    %c0_86 = arith.constant 0 : index
    %c0_87 = arith.constant 0 : index
    %177 = vector.load %arg8[%c0_86, %c0_87] : memref<32x144xbf16, #tpu.memory_space<vmem>>, vector<32x144xbf16>
    %cst_88 = arith.constant dense<0.000000e+00> : vector<32x4xf32>
    %178 = tpu.matmul %177, %175, %cst_88 {dimension_numbers = #tpu.dot_dimension_numbers<[1], [0], [0], [1], [0, 0, 1, 1], [], []>} : vector<32x144xbf16>, vector<144x4xbf16>, vector<32x4xf32> -> vector<32x4xf32>
    %179 = vector.broadcast %176 : vector<32x1xf32> to vector<32x4xf32>
    %180 = arith.addf %179, %178 : vector<32x4xf32>
    %cst_89 = arith.constant 0.000000e+00 : f32
    %181 = vector.broadcast %cst_89 : f32 to vector<32x4xf32>
    %182 = arith.maximumf %180, %181 : vector<32x4xf32>
    %c0_90 = arith.constant 0 : index
    %c0_91 = arith.constant 0 : index
    %183 = vector.load %arg12[%c0_90, %c0_91] : memref<32x1xf32, #tpu.memory_space<vmem>>, vector<32x1xf32>
    %c0_92 = arith.constant 0 : index
    %c0_93 = arith.constant 0 : index
    %184 = vector.load %arg11[%c0_92, %c0_93] : memref<32x32xbf16, #tpu.memory_space<vmem>>, vector<32x32xbf16>
    %185 = arith.truncf %182 : vector<32x4xf32> to vector<32x4xbf16>
    %cst_94 = arith.constant dense<0.000000e+00> : vector<32x4xf32>
    %186 = tpu.matmul %184, %185, %cst_94 {dimension_numbers = #tpu.dot_dimension_numbers<[1], [0], [0], [1], [0, 0, 1, 1], [], []>} : vector<32x32xbf16>, vector<32x4xbf16>, vector<32x4xf32> -> vector<32x4xf32>
    %187 = vector.broadcast %183 : vector<32x1xf32> to vector<32x4xf32>
    %188 = arith.addf %187, %186 : vector<32x4xf32>
    %189 = arith.truncf %188 : vector<32x4xf32> to vector<32x4xbf16>
    %c0_95 = arith.constant 0 : index
    %c0_96 = arith.constant 0 : index
    %190 = vector.load %arg20[%c0_95, %c0_96] : memref<4x16xbf16, #tpu.memory_space<vmem>>, vector<4x16xbf16>
    %cst_97 = arith.constant dense<0.000000e+00> : vector<32x16xf32>
    %191 = tpu.matmul %189, %190, %cst_97 {dimension_numbers = #tpu.dot_dimension_numbers<[1], [0], [0], [1], [0, 0, 1, 1], [], []>} : vector<32x4xbf16>, vector<4x16xbf16>, vector<32x16xf32> -> vector<32x16xf32>
    %c0_98 = arith.constant 0 : index
    %c0_99 = arith.constant 0 : index
    %192 = vector.load %arg14[%c0_98, %c0_99] : memref<32x1xf32, #tpu.memory_space<vmem>>, vector<32x1xf32>
    %c0_100 = arith.constant 0 : index
    %c0_101 = arith.constant 0 : index
    %193 = vector.load %arg13[%c0_100, %c0_101] : memref<32x16xbf16, #tpu.memory_space<vmem>>, vector<32x16xbf16>
    %194 = arith.truncf %161 : vector<16x16xf32> to vector<16x16xbf16>
    %cst_102 = arith.constant dense<0.000000e+00> : vector<32x16xf32>
    %195 = tpu.matmul %193, %194, %cst_102 {dimension_numbers = #tpu.dot_dimension_numbers<[1], [0], [0], [1], [0, 0, 1, 1], [], []>} : vector<32x16xbf16>, vector<16x16xbf16>, vector<32x16xf32> -> vector<32x16xf32>
    %196 = vector.broadcast %192 : vector<32x1xf32> to vector<32x16xf32>
    %197 = arith.addf %196, %195 : vector<32x16xf32>
    %198 = arith.addf %197, %191 : vector<32x16xf32>
    %199 = arith.truncf %198 : vector<32x16xf32> to vector<32x16xbf16>
    %c0_103 = arith.constant 0 : index
    %c0_104 = arith.constant 0 : index
    %200 = vector.load %arg21[%c0_103, %c0_104] : memref<16x64xbf16, #tpu.memory_space<vmem>>, vector<16x64xbf16>
    %cst_105 = arith.constant dense<0.000000e+00> : vector<32x64xf32>
    %201 = tpu.matmul %199, %200, %cst_105 {dimension_numbers = #tpu.dot_dimension_numbers<[1], [0], [0], [1], [0, 0, 1, 1], [], []>} : vector<32x16xbf16>, vector<16x64xbf16>, vector<32x64xf32> -> vector<32x64xf32>
    %c0_106 = arith.constant 0 : index
    %c0_107 = arith.constant 0 : index
    %202 = vector.load %arg16[%c0_106, %c0_107] : memref<32x1xf32, #tpu.memory_space<vmem>>, vector<32x1xf32>
    %c0_108 = arith.constant 0 : index
    %c0_109 = arith.constant 0 : index
    %203 = vector.load %arg15[%c0_108, %c0_109] : memref<32x8xbf16, #tpu.memory_space<vmem>>, vector<32x8xbf16>
    %204 = arith.truncf %140 : vector<8x64xf32> to vector<8x64xbf16>
    %cst_110 = arith.constant dense<0.000000e+00> : vector<32x64xf32>
    %205 = tpu.matmul %203, %204, %cst_110 {dimension_numbers = #tpu.dot_dimension_numbers<[1], [0], [0], [1], [0, 0, 1, 1], [], []>} : vector<32x8xbf16>, vector<8x64xbf16>, vector<32x64xf32> -> vector<32x64xf32>
    %206 = vector.broadcast %202 : vector<32x1xf32> to vector<32x64xf32>
    %207 = arith.addf %206, %205 : vector<32x64xf32>
    %208 = arith.addf %207, %201 : vector<32x64xf32>
    %209 = arith.truncf %208 : vector<32x64xf32> to vector<32x64xbf16>
    %c0_111 = arith.constant 0 : index
    %c0_112 = arith.constant 0 : index
    %210 = vector.load %arg19[%c0_111, %c0_112] : memref<64x2304xbf16, #tpu.memory_space<vmem>>, vector<64x2304xbf16>
    %cst_113 = arith.constant dense<0.000000e+00> : vector<32x2304xf32>
    %211 = tpu.matmul %209, %210, %cst_113 {dimension_numbers = #tpu.dot_dimension_numbers<[1], [0], [0], [1], [0, 0, 1, 1], [], []>} : vector<32x64xbf16>, vector<64x2304xbf16>, vector<32x2304xf32> -> vector<32x2304xf32>
    %212 = vector.extract_strided_slice %211 {offsets = [0, 0], sizes = [32, 256], strides = [1, 1]} : vector<32x2304xf32> to vector<32x256xf32>
    %213 = vector.extract_strided_slice %211 {offsets = [0, 256], sizes = [32, 256], strides = [1, 1]} : vector<32x2304xf32> to vector<32x256xf32>
    %214 = vector.extract_strided_slice %211 {offsets = [0, 512], sizes = [32, 256], strides = [1, 1]} : vector<32x2304xf32> to vector<32x256xf32>
    %215 = vector.extract_strided_slice %211 {offsets = [0, 768], sizes = [32, 256], strides = [1, 1]} : vector<32x2304xf32> to vector<32x256xf32>
    %216 = vector.extract_strided_slice %211 {offsets = [0, 1024], sizes = [32, 256], strides = [1, 1]} : vector<32x2304xf32> to vector<32x256xf32>
    %217 = vector.extract_strided_slice %211 {offsets = [0, 1280], sizes = [32, 256], strides = [1, 1]} : vector<32x2304xf32> to vector<32x256xf32>
    %218 = vector.extract_strided_slice %211 {offsets = [0, 1536], sizes = [32, 256], strides = [1, 1]} : vector<32x2304xf32> to vector<32x256xf32>
    %219 = vector.extract_strided_slice %211 {offsets = [0, 1792], sizes = [32, 256], strides = [1, 1]} : vector<32x2304xf32> to vector<32x256xf32>
    %220 = vector.extract_strided_slice %211 {offsets = [0, 2048], sizes = [32, 256], strides = [1, 1]} : vector<32x2304xf32> to vector<32x256xf32>
    %221 = tpu.concatenate %212, %213, %214, %215, %216, %217, %218, %219, %220 in 0 : vector<32x256xf32>, vector<32x256xf32>, vector<32x256xf32>, vector<32x256xf32>, vector<32x256xf32>, vector<32x256xf32>, vector<32x256xf32>, vector<32x256xf32>, vector<32x256xf32> -> vector<288x256xf32>
    %222 = arith.truncf %221 : vector<288x256xf32> to vector<288x256xbf16>
    %c0_114 = arith.constant 0 : index
    %c0_115 = arith.constant 0 : index
    %223 = vector.load %arg18[%c0_114, %c0_115] : memref<2x1xf32, #tpu.memory_space<vmem>>, vector<2x1xf32>
    %c0_116 = arith.constant 0 : index
    %c0_117 = arith.constant 0 : index
    %224 = vector.load %arg17[%c0_116, %c0_117] : memref<2x288xbf16, #tpu.memory_space<vmem>>, vector<2x288xbf16>
    %cst_118 = arith.constant dense<0.000000e+00> : vector<2x256xf32>
    %225 = tpu.matmul %224, %222, %cst_118 {dimension_numbers = #tpu.dot_dimension_numbers<[1], [0], [0], [1], [0, 0, 1, 1], [], []>} : vector<2x288xbf16>, vector<288x256xbf16>, vector<2x256xf32> -> vector<2x256xf32>
    %226 = vector.broadcast %223 : vector<2x1xf32> to vector<2x256xf32>
    %227 = arith.addf %226, %225 : vector<2x256xf32>
    %228 = arith.negf %227 : vector<2x256xf32>
    %229 = math.exp %228 : vector<2x256xf32>
    %cst_119 = arith.constant 1.000000e+00 : f32
    %230 = vector.broadcast %cst_119 : f32 to vector<2x256xf32>
    %231 = arith.addf %230, %229 : vector<2x256xf32>
    %232 = arith.divf %230, %231 : vector<2x256xf32>
    %c1_120 = arith.constant 1 : index
    %c0_121 = arith.constant 0 : index
    %c0_122 = arith.constant 0 : index
    %233 = vector.load %arg22[%c1_120, %c0_121, %c0_122] : memref<2x2x256xf32, #tpu.memory_space<vmem>>, vector<1x2x256xf32>
    %234 = vector.shape_cast %233 : vector<1x2x256xf32> to vector<2x256xf32>
    %235 = vector.shape_cast %232 : vector<2x256xf32> to vector<1x2x256xf32>
    tpu.vector_store %arg22[%c1_120, %c0_121, %c0_122], %235 {strides = array<i32>} : memref<2x2x256xf32, #tpu.memory_space<vmem>>, vector<1x2x256xf32>,
    return
  }
  func.func @transform_0(%arg0: i32) -> (i32, i32, i32) {
    %c0_i32 = arith.constant 0 : i32
    %c0_i32_0 = arith.constant 0 : i32
    %c0_i32_1 = arith.constant 0 : i32
    return %arg0, %c0_i32, %c0_i32_0 : i32, i32, i32
  }
  func.func @transform_1(%arg0: i32) -> (i32, i32) {
    %c0_i32 = arith.constant 0 : i32
    %c0_i32_0 = arith.constant 0 : i32
    %c0_i32_1 = arith.constant 0 : i32
    return %c0_i32, %c0_i32_0 : i32, i32
  }
  func.func @transform_2(%arg0: i32) -> (i32, i32) {
    %c0_i32 = arith.constant 0 : i32
    %c0_i32_0 = arith.constant 0 : i32
    %c0_i32_1 = arith.constant 0 : i32
    return %c0_i32, %c0_i32_0 : i32, i32
  }
  func.func @transform_3(%arg0: i32) -> (i32, i32) {
    %c0_i32 = arith.constant 0 : i32
    %c0_i32_0 = arith.constant 0 : i32
    %c0_i32_1 = arith.constant 0 : i32
    return %c0_i32, %c0_i32_0 : i32, i32
  }
  func.func @transform_4(%arg0: i32) -> (i32, i32) {
    %c0_i32 = arith.constant 0 : i32
    %c0_i32_0 = arith.constant 0 : i32
    %c0_i32_1 = arith.constant 0 : i32
    return %c0_i32, %c0_i32_0 : i32, i32
  }
  func.func @transform_5(%arg0: i32) -> (i32, i32) {
    %c0_i32 = arith.constant 0 : i32
    %c0_i32_0 = arith.constant 0 : i32
    %c0_i32_1 = arith.constant 0 : i32
    return %c0_i32, %c0_i32_0 : i32, i32
  }
  func.func @transform_6(%arg0: i32) -> (i32, i32) {
    %c0_i32 = arith.constant 0 : i32
    %c0_i32_0 = arith.constant 0 : i32
    %c0_i32_1 = arith.constant 0 : i32
    return %c0_i32, %c0_i32_0 : i32, i32
  }
  func.func @transform_7(%arg0: i32) -> (i32, i32) {
    %c0_i32 = arith.constant 0 : i32
    %c0_i32_0 = arith.constant 0 : i32
    %c0_i32_1 = arith.constant 0 : i32
    return %c0_i32, %c0_i32_0 : i32, i32
  }
  func.func @transform_8(%arg0: i32) -> (i32, i32) {
    %c0_i32 = arith.constant 0 : i32
    %c0_i32_0 = arith.constant 0 : i32
    %c0_i32_1 = arith.constant 0 : i32
    return %c0_i32, %c0_i32_0 : i32, i32
  }
  func.func @transform_9(%arg0: i32) -> (i32, i32) {
    %c0_i32 = arith.constant 0 : i32
    %c0_i32_0 = arith.constant 0 : i32
    %c0_i32_1 = arith.constant 0 : i32
    return %c0_i32, %c0_i32_0 : i32, i32
  }
  func.func @transform_10(%arg0: i32) -> (i32, i32) {
    %c0_i32 = arith.constant 0 : i32
    %c0_i32_0 = arith.constant 0 : i32
    %c0_i32_1 = arith.constant 0 : i32
    return %c0_i32, %c0_i32_0 : i32, i32
  }
  func.func @transform_11(%arg0: i32) -> (i32, i32) {
    %c0_i32 = arith.constant 0 : i32
    %c0_i32_0 = arith.constant 0 : i32
    %c0_i32_1 = arith.constant 0 : i32
    return %c0_i32, %c0_i32_0 : i32, i32
  }
  func.func @transform_12(%arg0: i32) -> (i32, i32) {
    %c0_i32 = arith.constant 0 : i32
    %c0_i32_0 = arith.constant 0 : i32
    %c0_i32_1 = arith.constant 0 : i32
    return %c0_i32, %c0_i32_0 : i32, i32
  }
  func.func @transform_13(%arg0: i32) -> (i32, i32) {
    %c0_i32 = arith.constant 0 : i32
    %c0_i32_0 = arith.constant 0 : i32
    %c0_i32_1 = arith.constant 0 : i32
    return %c0_i32, %c0_i32_0 : i32, i32
  }
  func.func @transform_14(%arg0: i32) -> (i32, i32) {
    %c0_i32 = arith.constant 0 : i32
    %c0_i32_0 = arith.constant 0 : i32
    %c0_i32_1 = arith.constant 0 : i32
    return %c0_i32, %c0_i32_0 : i32, i32
  }
  func.func @transform_15(%arg0: i32) -> (i32, i32) {
    %c0_i32 = arith.constant 0 : i32
    %c0_i32_0 = arith.constant 0 : i32
    %c0_i32_1 = arith.constant 0 : i32
    return %c0_i32, %c0_i32_0 : i32, i32
  }
  func.func @transform_16(%arg0: i32) -> (i32, i32) {
    %c0_i32 = arith.constant 0 : i32
    %c0_i32_0 = arith.constant 0 : i32
    %c0_i32_1 = arith.constant 0 : i32
    return %c0_i32, %c0_i32_0 : i32, i32
  }
  func.func @transform_17(%arg0: i32) -> (i32, i32) {
    %c0_i32 = arith.constant 0 : i32
    %c0_i32_0 = arith.constant 0 : i32
    %c0_i32_1 = arith.constant 0 : i32
    return %c0_i32, %c0_i32_0 : i32, i32
  }
  func.func @transform_18(%arg0: i32) -> (i32, i32) {
    %c0_i32 = arith.constant 0 : i32
    %c0_i32_0 = arith.constant 0 : i32
    %c0_i32_1 = arith.constant 0 : i32
    return %c0_i32, %c0_i32_0 : i32, i32
  }
  func.func @transform_19(%arg0: i32) -> (i32, i32) {
    %c0_i32 = arith.constant 0 : i32
    %c0_i32_0 = arith.constant 0 : i32
    %c0_i32_1 = arith.constant 0 : i32
    return %c0_i32, %c0_i32_0 : i32, i32
  }
  func.func @transform_20(%arg0: i32) -> (i32, i32) {
    %c0_i32 = arith.constant 0 : i32
    %c0_i32_0 = arith.constant 0 : i32
    %c0_i32_1 = arith.constant 0 : i32
    return %c0_i32, %c0_i32_0 : i32, i32
  }
  func.func @transform_21(%arg0: i32) -> (i32, i32, i32) {
    %c0_i32 = arith.constant 0 : i32
    %c0_i32_0 = arith.constant 0 : i32
    %c0_i32_1 = arith.constant 0 : i32
    return %arg0, %c0_i32, %c0_i32_0 : i32, i32, i32
  }
}

</mosaic_0001>

<bundles_post_ra>
// kernel: unet_with_classification_forward.1
= control target key start
LH: loop header
LB: loop body
LE: loop exit
PB: predicated region body
PF: predicated region fallthrough
CT: control target
= control target key end

     0   :  { %vm6728_vm0 = vmmov 0   ;;  %vm735_vm1 = vcmask 1042432   ;;  %vm737_vm2 = vcmask 1045504   ;;  %vm739_vm3 = vcmask 1040384   ;;  %s8449_s28 = smov 96   ;;  %s8454_s30 = smov 80   ;;  %s8421_s3 = inlined_call_operand.vmem [shape: bf16[256,576], index: 3, kind: input, shape index: {}]   ;;  %s8422_s0 = inlined_call_operand.vmem [shape: f32[2,3,256], index: 0, kind: input, shape index: {}]   ;;  %s8423_s2 = inlined_call_operand.vmem [shape: f32[8,1], index: 2, kind: input, shape index: {}]   ;;  %s8424_s6 = inlined_call_operand.vmem [shape: bf16[64,144], index: 6, kind: input, shape index: {}]   ;;  %s8425_s1 = inlined_call_operand.vmem [shape: bf16[8,27], index: 1, kind: input, shape index: {}]   ;;  %s8426_s4 = inlined_call_operand.vmem [shape: bf16[16,72], index: 4, kind: input, shape index: {}]   ;;  %s8427_s5 = inlined_call_operand.vmem [shape: f32[16,1], index: 5, kind: input, shape index: {}]   ;;  %s8428_s9 = inlined_call_operand.vmem [shape: bf16[16,36], index: 9, kind: input, shape index: {}]   ;;  %s8429_s8 = inlined_call_operand.vmem [shape: f32[32,1], index: 8, kind: input, shape index: {}]   ;;  %s8430_s11 = inlined_call_operand.vmem [shape: f32[32,1], index: 11, kind: input, shape index: {}]   ;;  %s8431_s7 = inlined_call_operand.vmem [shape: bf16[32,144], index: 7, kind: input, shape index: {}]   ;;  %s8432_s13 = inlined_call_operand.vmem [shape: f32[32,1], index: 13, kind: input, shape index: {}]   ;;  %s8433_s15 = inlined_call_operand.vmem [shape: f32[32,1], index: 15, kind: input, shape index: {}]   ;;  %s8434_s10 = inlined_call_operand.vmem [shape: bf16[32,32], index: 10, kind: input, shape index: {}]   ;;  %s8435_s19 = inlined_call_operand.vmem [shape: bf16[4,16], index: 19, kind: input, shape index: {}]   ;;  %s8436_s12 = inlined_call_operand.vmem [shape: bf16[32,16], index: 12, kind: input, shape index: {}]   ;;  %s8437_s20 = inlined_call_operand.vmem [shape: bf16[16,64], index: 20, kind: input, shape index: {}]   ;;  %s8438_s14 = inlined_call_operand.vmem [shape: bf16[32,8], index: 14, kind: input, shape index: {}]   ;;  %s8439_s18 = inlined_call_operand.vmem [shape: bf16[64,2304], index: 18, kind: input, shape index: {}]   ;;  %s8440_s16 = inlined_call_operand.vmem [shape: bf16[2,288], index: 16, kind: input, shape index: {}]   ;;  %s8441_s17 = inlined_call_operand.vmem [shape: f32[2,1], index: 17, kind: input, shape index: {}]   ;;  %s8442_s21 = inlined_call_operand.vmem [shape: f32[2,2,256], index: 21, kind: output, shape index: {}]  }
   0x1   :  { %8467 = sst [smem:[#allocation2_spill]] %s8421_s3  ;;  %vm747_vm4 = vcmask 1044480   ;;  %vm741_vm5 = vcmask 1043456   ;;  %vm743_vm6 = vcmask 1046528   ;;  %vm745_vm7 = vcmask 1041408   ;;  %s8452_s23 = smov 48  }
   0x2   :  { %8468 = sst [smem:[#allocation3_spill]] %s8422_s0  ;;  %s8475_s26 = sld [smem:[#allocation2_spill]]  ;;  %vm753_vm8 = vcmask 220160   ;;  %vm858_vm9 = vcmask 523264   ;;  %vm939_vm10 = vcmask 588800   ;;  %vm1010_vm11 = vcmask 130048  }
   0x3   :  { %8469 = sst [smem:[#allocation4_spill]] %s8423_s2  ;;  %s8476_s29 = sld [smem:[#allocation3_spill]]  ;;  %vm1243_vm12 = vcmask 261120   ;;  %vm1326_vm13 = vcmask 31744   ;;  %vm1569_vm14 = vcmask 64512  }
   0x4   :  { %8470 = sst [smem:[#allocation5_spill]] %s8424_s6  ;;  %s8457_s2 = smov 64  }
   0x5   :  { %8471 = sst [smem:[#allocation6_spill]] %s8425_s1  ;;  %s8477_s6 = sld [smem:[#allocation4_spill]] }
   0x6   :  { %8472 = sst [smem:[#allocation7_spill]] %s8426_s4  ;;  %s8478_s3 = sld [smem:[#allocation5_spill]] }
   0x7   :  { %8473 = sst [smem:[#allocation8_spill]] %s8441_s17  ;;  %s8479_s22 = sld [smem:[#allocation6_spill]] }
   0x8   :  { %8474 = sst [smem:[#allocation9_spill]] %s8442_s21  ;;  %v6215_v0 = vld [vmem:[%s8475_s26 + $0x4] ss:$20 sps:$4 sm:$0xff]   ;;  %v6217_v1 = vld [vmem:[%s8475_s26] ss:$20 sps:$4 sm:$0xff]   ;;  %s8463_s1 = smov 112  }
   0x9   :  { %587 = vmatprep.subr.bf16.mxu0 %v6215_v0  ;;  %v6218_v2 = vld [vmem:[%s8475_s26 + $0x2c] ss:$20 sps:$4 sm:$0xff]   ;;  %v6222_v4 = vld [vmem:[%s8475_s26 + $0x28] ss:$20 sps:$4 sm:$0xff]   ;;  %v6229_v8 = vld [vmem:[%s8475_s26 + $0x30] ss:$20 sps:$4 sm:$0xff]  }
   0xa   :  { %588 = vmatpush1.bf16.msra.mxu0 %v6217_v1  ;;  %v6220_v3 = vld [vmem:[%s8475_s26 + $0xc] ss:$20 sps:$4 sm:$0xff]   ;;  %v6223_v5 = vld [vmem:[%s8475_s26 + $0x8] ss:$20 sps:$4 sm:$0xff]   ;;  %v6228_v9 = vld [vmem:[%s8475_s26 + $0x50] ss:$20 sps:$4 sm:$0xff]  }
   0xb   :  { %589 = vmatprep.subr.bf16.mxu0 %v6218_v2  ;;  %v6224_v6 = vld [vmem:[%s8475_s26 + $0x54] ss:$20 sps:$4 sm:$0xff]   ;;  %628 = vmatprep.subr.bf16.mxu1 %v6220_v3  ;;  %v6230_v10 = vld [vmem:[%s8475_s26 + $0x7c] ss:$20 sps:$4 sm:$0xff]   ;;  %v6235_v12 = vld [vmem:[%s8475_s26 + $0x58] ss:$20 sps:$4 sm:$0xff]  }
   0xc   :  { %v6226_v7 = vld [vmem:[%s8475_s26 + $0x34] ss:$20 sps:$4 sm:$0xff]   ;;  %629 = vmatpush1.bf16.msra.mxu1 %v6223_v5  ;;  %v6232_v11 = vld [vmem:[%s8475_s26 + $0x5c] ss:$20 sps:$4 sm:$0xff]   ;;  %v6234_v13 = vld [vmem:[%s8475_s26 + $0x78] ss:$20 sps:$4 sm:$0xff]  }
   0xd   :  { %630 = vmatprep.subr.bf16.mxu1 %v6226_v7  ;;  %v6238_v14 = vld [vmem:[%s8475_s26 + $0x84] ss:$20 sps:$4 sm:$0xff]   ;;  %v6240_v16 = vld [vmem:[%s8475_s26 + $0xa0] ss:$20 sps:$4 sm:$0xff]   ;;  %v6247_v20 = vld [vmem:[%s8475_s26 + $0xa8] ss:$20 sps:$4 sm:$0xff]  }
   0xe   :  { %590 = vmatpush1.bf16.msra.mxu0 %v6222_v4  ;;  %v6236_v15 = vld [vmem:[%s8475_s26 + $0xa4] ss:$20 sps:$4 sm:$0xff]   ;;  %v6241_v17 = vld [vmem:[%s8475_s26 + $0x80] ss:$20 sps:$4 sm:$0xff]   ;;  %v6246_v21 = vld [vmem:[%s8475_s26 + $0xc8] ss:$20 sps:$4 sm:$0xff]  }
   0xf   :  { %591 = vmatprep.subr.bf16.mxu0 %v6224_v6  ;;  %v6244_v18 = vld [vmem:[%s8475_s26 + $0xac] ss:$20 sps:$4 sm:$0xff]   ;;  %v6250_v22 = vld [vmem:[%s8475_s26 + $0xd4] ss:$20 sps:$4 sm:$0xff]   ;;  %v6252_v24 = vld [vmem:[%s8475_s26 + $0xf0] ss:$20 sps:$4 sm:$0xff]  }
  0x10   :  { %631 = vmatpush1.bf16.msra.mxu1 %v6229_v8  ;;  %v6242_v19 = vld [vmem:[%s8475_s26 + $0xcc] ss:$20 sps:$4 sm:$0xff]   ;;  %v6248_v23 = vld [vmem:[%s8475_s26 + $0xf4] ss:$20 sps:$4 sm:$0xff]   ;;  %v6253_v25 = vld [vmem:[%s8475_s26 + $0xd0] ss:$20 sps:$4 sm:$0xff]  }
  0x11   :  { %632 = vmatprep.subr.bf16.mxu1 %v6232_v11  ;;  %v6256_v26 = vld [vmem:[%s8475_s26 + $0xfc] ss:$20 sps:$4 sm:$0xff]   ;;  %v6259_v28 = vld [vmem:[%s8475_s26 + $0xf8] ss:$20 sps:$4 sm:$0xff]   ;;  %v6264_v32 = vld [vmem:[%s8475_s26 + $0x140] ss:$20 sps:$4 sm:$0xff]  }
  0x12   :  { %592 = vmatpush1.bf16.msra.mxu0 %v6228_v9  ;;  %v6254_v27 = vld [vmem:[%s8475_s26 + $0x11c] ss:$20 sps:$4 sm:$0xff]   ;;  %v6258_v29 = vld [vmem:[%s8475_s26 + $0x118] ss:$20 sps:$4 sm:$0xff]   ;;  %v6265_v33 = vld [vmem:[%s8475_s26 + $0x120] ss:$20 sps:$4 sm:$0xff]  }
  0x13   :  { %593 = vmatprep.subr.bf16.mxu0 %v6230_v10  ;;  %v6262_v30 = vld [vmem:[%s8475_s26 + $0x124] ss:$20 sps:$4 sm:$0xff]   ;;  %v6268_v34 = vld [vmem:[%s8475_s26 + $0x14c] ss:$20 sps:$4 sm:$0xff]   ;;  %v6271_v36 = vld [vmem:[%s8475_s26 + $0x148] ss:$20 sps:$4 sm:$0xff]  }
  0x14   :  { %633 = vmatpush1.bf16.msra.mxu1 %v6235_v12  ;;  %v6260_v31 = vld [vmem:[%s8475_s26 + $0x144] ss:$20 sps:$4 sm:$0xff]   ;;  %v6266_v35 = vld [vmem:[%s8475_s26 + $0x16c] ss:$20 sps:$4 sm:$0xff]   ;;  %v6270_v37 = vld [vmem:[%s8475_s26 + $0x168] ss:$20 sps:$4 sm:$0xff]  }
  0x15   :  { %634 = vmatprep.subr.bf16.mxu1 %v6238_v14  ;;  %v6274_v38 = vld [vmem:[%s8475_s26 + $0x174] ss:$20 sps:$4 sm:$0xff]   ;;  %v6276_v40 = vld [vmem:[%s8475_s26 + $0x190] ss:$20 sps:$4 sm:$0xff]   ;;  %v6282_v45 = vld [vmem:[%s8475_s26 + $0x1b8] ss:$20 sps:$4 sm:$0xff]  }
  0x16   :  { %594 = vmatpush1.bf16.msra.mxu0 %v6234_v13  ;;  %v6272_v39 = vld [vmem:[%s8475_s26 + $0x194] ss:$20 sps:$4 sm:$0xff]   ;;  %v6277_v41 = vld [vmem:[%s8475_s26 + $0x170] ss:$20 sps:$4 sm:$0xff]   ;;  %v6283_v46 = vld [vmem:[%s8475_s26 + $0x198] ss:$20 sps:$4 sm:$0xff]  }
  0x17   :  { %595 = vmatprep.subr.bf16.mxu0 %v6236_v15  ;;  %v6280_v42 = vld [vmem:[%s8475_s26 + $0x19c] ss:$20 sps:$4 sm:$0xff]   ;;  %v69_v44 = vld [vmem:[%s8476_s29] sm:$0x77]  ;;  %v6298_v57 = vld [vmem:[%s8475_s26 + $0x214] ss:$20 sps:$4 sm:$0xff]  }
  0x18   :  { %635 = vmatpush1.bf16.msra.mxu1 %v6241_v17  ;;  %v6278_v43 = vld [vmem:[%s8475_s26 + $0x1bc] ss:$20 sps:$4 sm:$0xff]   ;;  %v71_v47 = vcombine.high %v69_v44, %v69_v44  ;;  %v6286_v48 = vld [vmem:[%s8475_s26 + $0x1c4] ss:$20 sps:$4 sm:$0xff]   ;;  %v6288_v51 = vld [vmem:[%s8475_s26 + $0x1e0] ss:$20 sps:$4 sm:$0xff]   ;;  %v73_v5 = vpack.c.bf16 %v69_v44, %v69_v44 }
  0x19   :  { %636 = vmatprep.subr.bf16.mxu1 %v6244_v18  ;;  %v6284_v49 = vld [vmem:[%s8475_s26 + $0x1e4] ss:$20 sps:$4 sm:$0xff]   ;;  %v6289_v52 = vld [vmem:[%s8475_s26 + $0x1c0] ss:$20 sps:$4 sm:$0xff]   ;;  %v6294_v55 = vld [vmem:[%s8475_s26 + $0x208] ss:$20 sps:$4 sm:$0xff]  }
  0x1a   :  { %596 = vmatpush1.bf16.msra.mxu0 %v6240_v16  ;;  %v74_v50 = vpack.c.bf16 %v71_v47, %v71_v47  ;;  %v6292_v53 = vld [vmem:[%s8475_s26 + $0x1ec] ss:$20 sps:$4 sm:$0xff]   ;;  %v6295_v56 = vld [vmem:[%s8475_s26 + $0x1e8] ss:$20 sps:$4 sm:$0xff]   ;;  %v6300_v59 = vld [vmem:[%s8475_s26 + $0x230] ss:$20 sps:$4 sm:$0xff]  }
  0x1b   :  { %597 = vmatprep.subr.bf16.mxu0 %v6242_v19  ;;  %v6290_v54 = vld [vmem:[%s8475_s26 + $0x20c] ss:$20 sps:$4 sm:$0xff]   ;;  %v6296_v58 = vld [vmem:[%s8475_s26 + $0x234] ss:$20 sps:$4 sm:$0xff]   ;;  %v6301_v60 = vld [vmem:[%s8475_s26 + $0x210] ss:$20 sps:$4 sm:$0xff]  }
  0x1c   :  { %637 = vmatpush1.bf16.msra.mxu1 %v6247_v20  ;;  %619 = vmatprep.mubr.bf16.mxu0 %v74_v50  ;;  %v6302_v61 = vld [vmem:[%s8475_s26 + $0x25c] ss:$20 sps:$4 sm:$0xff]   ;;  %v6307_v63 = vld [vmem:[%s8475_s26 + $0x238] ss:$20 sps:$4 sm:$0xff]   ;;  %v6311_v3 = vld [vmem:[%s8475_s26 + $0x260] ss:$20 sps:$4 sm:$0xff]  }
  0x1d   :  { %638 = vmatprep.subr.bf16.mxu1 %v6250_v22  ;;  %660 = vmatprep.mubr.bf16.mxu1 %v74_v50  ;;  %v6304_v62 = vld [vmem:[%s8475_s26 + $0x23c] ss:$20 sps:$4 sm:$0xff]   ;;  %v6306_v0 = vld [vmem:[%s8475_s26 + $0x258] ss:$20 sps:$4 sm:$0xff]   ;;  %v6316_v8 = vld [vmem:[%s8475_s26 + $0x1a0] ss:$20 sps:$4 sm:$0xff]  }
  0x1e   :  { %598 = vmatpush1.bf16.msra.mxu0 %v6246_v21  ;;  %v6309_v1 = vld [vmem:[%s8475_s26 + $0x264] ss:$20 sps:$4 sm:$0xff]   ;;  %v6317_v9 = vld [vmem:[%s8475_s26 + $0x60] ss:$20 sps:$4 sm:$0xff]   ;;  %v6318_v10 = vld [vmem:[%s8475_s26 + $0x1c8] ss:$20 sps:$4 sm:$0xff]  }
  0x1f   :  { %599 = vmatprep.subr.bf16.mxu0 %v6248_v23  ;;  %v6312_v2 = vld [vmem:[%s8475_s26 + $0x150] ss:$20 sps:$4 sm:$0xff]   ;;  %v6314_v6 = vld [vmem:[%s8475_s26 + $0x178] ss:$20 sps:$4 sm:$0xff]   ;;  %v6319_v11 = vld [vmem:[%s8475_s26 + $0x88] ss:$20 sps:$4 sm:$0xff]  }
  0x20   :  { %639 = vmatpush1.bf16.msra.mxu1 %v6253_v25  ;;  %v6313_v4 = vld [vmem:[%s8475_s26 + $0x10] ss:$20 sps:$4 sm:$0xff]   ;;  %v6315_v7 = vld [vmem:[%s8475_s26 + $0x38] ss:$20 sps:$4 sm:$0xff]   ;;  %v6324_v16 = vld [vmem:[%s8475_s26 + $0x240] ss:$20 sps:$4 sm:$0xff]  }
  0x21   :  { %640 = vmatprep.subr.bf16.mxu1 %v6256_v26  ;;  %v6320_v12 = vld [vmem:[%s8475_s26 + $0x1f0] ss:$20 sps:$4 sm:$0xff]   ;;  %v6322_v14 = vld [vmem:[%s8475_s26 + $0x218] ss:$20 sps:$4 sm:$0xff]   ;;  %v6325_v17 = vld [vmem:[%s8475_s26 + $0x100] ss:$20 sps:$4 sm:$0xff]  }
  0x22   :  { %600 = vmatpush1.bf16.msra.mxu0 %v6252_v24  ;;  %v6321_v13 = vld [vmem:[%s8475_s26 + $0xb0] ss:$20 sps:$4 sm:$0xff]   ;;  %v6323_v15 = vld [vmem:[%s8475_s26 + $0xd8] ss:$20 sps:$4 sm:$0xff]   ;;  %v6326_v18 = vld [vmem:[%s8475_s26 + $0x268] ss:$20 sps:$4 sm:$0xff]  }
  0x23   :  { %601 = vmatprep.subr.bf16.mxu0 %v6254_v27  ;;  %v6327_v19 = vld [vmem:[%s8475_s26 + $0x128] ss:$20 sps:$4 sm:$0xff]   ;;  %v6727_v20 = vmov 0.0   ;;  %s8453_s4 = smov 32   ;;  %s8451_s25 = smov 16  }
  0x24   :  { %641 = vmatpush1.bf16.msra.mxu1 %v6259_v28  ;;  %s8480_s24 = sld [smem:[#allocation7_spill]]  ;;  %s8459_s0 = smov 108  }
  0x25   :  { %642 = vmatprep.subr.bf16.mxu1 %v6262_v30  ;;  %s8460_s27 = smov 120   ;;  %s8492_s21 = smov 108  }
  0x26   :  { %602 = vmatpush1.bf16.msra.mxu0 %v6258_v29 }
  0x27   :  { %603 = vmatprep.subr.bf16.mxu0 %v6260_v31 }
  0x28   :  { %643 = vmatpush1.bf16.msra.mxu1 %v6265_v33 }
  0x29   :  { %644 = vmatprep.subr.bf16.mxu1 %v6268_v34  ;;  %v6730_v34 = vmov 0  }
  0x2a   :  { %604 = vmatpush1.bf16.msra.mxu0 %v6264_v32  ;;  %6128 = vset.pattern.permute.xlu1 %v6730_v34 }
  0x2b   :  { %605 = vmatprep.subr.bf16.mxu0 %v6266_v35  ;;  %v751_v35 = vld [vmem:[%s8477_s6] sm:$0xff]  ;;  %6129 = vset.pattern.permute.xlu0 %v6730_v34 }
  0x2c   :  { %645 = vmatpush1.bf16.msra.mxu1 %v6271_v36 }
  0x2d   :  { %646 = vmatprep.subr.bf16.mxu1 %v6274_v38 }
  0x2e   :  { %606 = vmatpush1.bf16.msra.mxu0 %v6270_v37 }
  0x2f   :  { %607 = vmatprep.subr.bf16.mxu0 %v6272_v39 }
  0x30   :  { %647 = vmatpush1.bf16.msra.mxu1 %v6277_v41 }
  0x31   :  { %648 = vmatprep.subr.bf16.mxu1 %v6280_v42 }
  0x32   :  { %608 = vmatpush1.bf16.msra.mxu0 %v6276_v40 }
  0x33   :  { %609 = vmatprep.subr.bf16.mxu0 %v6278_v43 }
  0x34   :  { %649 = vmatpush1.bf16.msra.mxu1 %v6283_v46 }
  0x35   :  { %650 = vmatprep.subr.bf16.mxu1 %v6286_v48  ;;  %v6731_v48 = vmov 65535  }
  0x36   :  { %610 = vmatpush1.bf16.msra.mxu0 %v6282_v45 }
  0x37   :  { %611 = vmatprep.subr.bf16.mxu0 %v6284_v49  ;;  %v757_v49 = vsel %vm747_vm4, 4294967295, %v6731_v48 }
  0x38   :  { %651 = vmatpush1.bf16.msra.mxu1 %v6289_v52 }
  0x39   :  { %652 = vmatprep.subr.bf16.mxu1 %v6292_v53 }
  0x3a   :  { %612 = vmatpush1.bf16.msra.mxu0 %v6288_v51 }
  0x3b   :  { %613 = vmatprep.subr.bf16.mxu0 %v6290_v54 }
  0x3c   :  { %653 = vmatpush1.bf16.msra.mxu1 %v6295_v56 }
  0x3d   :  { %654 = vmatprep.subr.bf16.mxu1 %v6298_v57  ;;  %v7120_v57 = vsel %vm737_vm2, %v757_v49, 0 }
  0x3e   :  { %614 = vmatpush1.bf16.msra.mxu0 %v6294_v55 }
  0x3f   :  { %615 = vmatprep.subr.bf16.mxu0 %v6296_v58 }
  0x40   :  { %655 = vmatpush1.bf16.msra.mxu1 %v6301_v60 }
  0x41   :  { %656 = vmatprep.subr.bf16.mxu1 %v6304_v62  ;;  %v6330_v62 = vld [vmem:[%s8478_s3 + $0x4] ss:$8 sps:$4 sm:$0xff]  }
  0x42   :  { %616 = vmatpush1.bf16.msra.mxu0 %v6300_v59 }
  0x43   :  { %617 = vmatprep.subr.bf16.mxu0 %v6302_v61 }
  0x44   :  { %657 = vmatpush1.bf16.msra.mxu1 %v6307_v63  ;;  %v752_v63 = vld [vmem:[%s8479_s22] sm:$0xf] }
  0x45   :  { %658 = vmatprep.subr.bf16.mxu1 %v6309_v1  ;;  %v6333_v1 = vld [vmem:[%s8478_s3 + $0x14] ss:$8 sps:$4 sm:$0xff]  }
  0x46   :  { %618 = vmatpush1.bf16.msra.mxu0 %v6306_v0  ;;  %v6328_v0 = vld [vmem:[%s8478_s3] ss:$8 sps:$4 sm:$0xff]  }
  0x47   :  { %5851 = vmatprep.subr.bf16.mxu0 %v6312_v2  ;;  %v6331_v2 = vld [vmem:[%s8478_s3 + $0x10] ss:$8 sps:$4 sm:$0xff]  }
  0x48   :  { %659 = vmatpush1.bf16.msra.mxu1 %v6311_v3  ;;  %v6336_v3 = vld [vmem:[%s8478_s3 + $0x24] ss:$8 sps:$4 sm:$0xff]  }
  0x49   :  { %620 = vmatmul.mubr.bf16.vlgmr.msra.gmra.mrb[0].mxu0 %v73_v5  ;;  %5949 = vmatprep.subr.bf16.mxu1 %v6727_v20 }
  0x4a   :  { %5852 = vmatpush3.bf16.msra.mxu0 %v6313_v4  ;;  %701 = vmatprep.mubr.bf16.mxu0 %v74_v50  ;;  %v6334_v4 = vld [vmem:[%s8478_s3 + $0x20] ss:$8 sps:$4 sm:$0xff]  }
  0x4b   :  { %5853 = vmatprep.subr.bf16.mxu0 %v6314_v6  ;;  %661 = vmatmul.mubr.bf16.vlgmr.msra.gmra.mrb[0].mxu1 %v73_v5  ;;  %v6337_v6 = vld [vmem:[%s8478_s3 + $0x30] ss:$8 sps:$4 sm:$0xff]  }
  0x4c   :  { %5953 = vmatprep.mubr.msk.bf16.mxu1 %vm6728_vm0, %v6727_v20 }
  0x4e   :  { %5854 = vmatpush3.bf16.msra.mxu0 %v6315_v7 }
  0x4f   :  { %5855 = vmatprep.subr.bf16.mxu0 %v6316_v8 }
  0x52   :  { %5856 = vmatpush3.bf16.msra.mxu0 %v6317_v9 }
  0x53   :  { %5857 = vmatprep.subr.bf16.mxu0 %v6318_v10 }
  0x56   :  { %5858 = vmatpush3.bf16.msra.mxu0 %v6319_v11 }
  0x57   :  { %5859 = vmatprep.subr.bf16.mxu0 %v6320_v12 }
  0x5a   :  { %5860 = vmatpush3.bf16.msra.mxu0 %v6321_v13 }
  0x5b   :  { %5861 = vmatprep.subr.bf16.mxu0 %v6322_v14 }
  0x5e   :  { %5862 = vmatpush3.bf16.msra.mxu0 %v6323_v15 }
  0x5f   :  { %5863 = vmatprep.subr.bf16.mxu0 %v6324_v16 }
  0x62   :  { %5864 = vmatpush3.bf16.msra.mxu0 %v6325_v17 }
  0x63   :  { %5865 = vmatprep.subr.bf16.mxu0 %v6326_v18 }
  0x66   :  { %5866 = vmatpush3.bf16.msra.mxu0 %v6327_v19  ;;  %v930_v19 = vld [vmem:[%s8427_s5] sm:$0xff] }
  0x67   :  { %5971 = vmatprep.subr.bf16.mxu0 %v6727_v20 }
  0x69   :  { %702 = vmatmul.mubr.bf16.vlgmr.msra.gmra.mrb[4].mxu0 %v73_v5  ;;  %v6339_v5 = vld [vmem:[%s8478_s3 + $0x34] ss:$8 sps:$4 sm:$0xff]  }
  0x6a   :  { %5973 = vmatprep.mubr.msk.bf16.mxu0 %vm6728_vm0, %v6727_v20 }
 0x11c   :  { %v621_v21 = vpop.f32.mrb[0].mxu0 }
 0x11d   :  { %v710_v22 = vrot.slane %v621_v21, 5  ;;  %v623_v23 = vpop.f32.mrb[1].mxu0 }
 0x11e   :  { %v717_v24 = vrot.slane %v623_v23, 7  ;;  %v625_v25 = vpop.f32.mrb[2].mxu0  ;;  %v662_v27 = vpop.f32.mrb[0].mxu1  ;;  %v715_v42 = vrot.slane %v623_v23, 2 }
 0x11f   :  { %v626_v26 = vpop.f32.mrb[3].mxu0  ;;  %v664_v28 = vpop.f32.mrb[1].mxu1  ;;  %v724_v32 = vrot.slane %v662_v27, 1  ;;  %v722_v45 = vrot.slane %v662_v27, 4 }
 0x120   :  { %v6123_v29 = vpack.i.bf16 %v710_v22, %v717_v24  ;;  %v666_v30 = vpop.f32.mrb[2].mxu1  ;;  %v731_v31 = vrot.slane %v664_v28, 3  ;;  %v729_v46 = vrot.slane %v664_v28, 6 }
 0x121   :  { %v667_v33 = vpop.f32.mrb[3].mxu1 }
 0x122   :  { %6124 = vrot.lane.b32.xlu0 %v6123_v29, %s8457_s2  ;;  %732 = vrot.lane.b32.xlu1 %v731_v31, %s8457_s2 }
 0x126   :  { %725 = vrot.lane.b32.xlu0 %v724_v32, %s8457_s2  ;;  %804 = vperm.xlu1 %6128, %v751_v35  }
 0x13c   :  { %v5867_v36 = vpop.f32.mrb[4].mxu0 }
 0x13d   :  { %v5868_v37 = vpop.f32.mrb[5].mxu0 }
 0x13e   :  { %v5869_v38 = vadd.f32 %v5868_v37, %v5867_v36  ;;  %v5870_v39 = vpop.f32.mrb[6].mxu0  ;;  %v6340_v36 = vld [vmem:[%s8480_s24] sm:$0xff]  }
 0x13f   :  { %v5871_v40 = vpop.f32.mrb[7].mxu0  ;;  %v6341_v37 = vld [vmem:[%s8428_s9] sm:$0xff]  }
 0x140   :  { %5972 = vmatpush3.bf16.msra.mxu0 %v6341_v37 }
 0x141   :  { %1146 = vmatprep.subr.bf16.mxu0 %v6730_v34 }
 0x194   :  { %v6125_v41 = vpop.permute.xlu0 %6124  ;;  %v733_v47 = vpop.permute.xlu1 %732 }
 0x195   :  { %v6127_v43 = vunpack.i.h.bf16 %v6125_v41  ;;  %v6126_v44 = vunpack.i.l.bf16 %v6125_v41 }
 0x197   :  { %v736_v50 = vsel %vm735_vm1, %v621_v21, %v6127_v43  ;;  %v740_v51 = vsel %vm739_vm3, %v715_v42, %v6126_v44  ;;  %v931_v21 = vld [vmem:[%s8427_s5 + $0x8] sm:$0xff] }
 0x198   :  { %v726_v52 = vpop.permute.xlu0 %725  ;;  %v738_v53 = vsel %vm737_vm2, %v736_v50, %v715_v42  ;;  %v742_v54 = vsel %vm741_vm5, %v740_v51, %v722_v45 }
 0x199   :  { %v744_v55 = vsel %vm743_vm6, %v742_v54, %v726_v52  ;;  %v746_v56 = vsel %vm745_vm7, %v726_v52, %v729_v46 }
 0x19a   :  { %v748_v58 = vsel %vm747_vm4, %v746_v56, %v733_v47  ;;  %v749_v59 = vpack.c.bf16 %v744_v55, %v738_v53  ;;  %v1114_v55 = vld [vmem:[%s8429_s8] sm:$0xff]  ;;  %v1116_v56 = vld [vmem:[%s8429_s8 + $0x10] sm:$0xff] }
 0x19b   :  { %v750_v60 = vpack.c.bf16 %v5869_v38, %v748_v58  ;;  %v1223_v58 = vld [vmem:[%s8430_s11] sm:$0xff] }
 0x19c   :  { %5950 = vmatpush3.bf16.msra.mxu1 %v749_v59  ;;  %v1115_v59 = vld [vmem:[%s8429_s8 + $0x8] sm:$0xff] }
 0x19d   :  { %v760_v61 = vand.u32 %v7120_v57, %v750_v60  ;;  %5951 = vmatprep.subr.bf16.mxu1 %v6727_v20  ;;  %v1225_v60 = vld [vmem:[%s8430_s11 + $0x10] sm:$0xff] }
 0x1a0   :  { %5952 = vmatpush3.bf16.msra.mxu1 %v760_v61  ;;  %v6342_v61 = vld [vmem:[%s8431_s7 + $0x4] ss:$8 sps:$4 sm:$0xff]  }
 0x1a1   :  { %862 = vmatprep.subr.bf16.mxu1 %v6330_v62  ;;  %v1117_v62 = vld [vmem:[%s8429_s8 + $0x18] sm:$0xff] }
 0x1a3   :  { %5954 = vmatmul.mubr.msk.bf16.vlgmr.msra.gmra.mrb[4].mxu1 %vm753_vm8, %v752_v63  ;;  %v1385_v63 = vld [vmem:[%s8432_s13] sm:$0xff] }
 0x1a4   :  { %863 = vmatpush1.bf16.msra.mxu1 %v6328_v0  ;;  %894 = vmatprep.mubr.bf16.mxu1 %v6730_v34  ;;  %v1224_v0 = vld [vmem:[%s8430_s11 + $0x8] sm:$0xff] }
 0x1a5   :  { %864 = vmatprep.subr.bf16.mxu1 %v6333_v1  ;;  %v805_v7 = vpop.permute.xlu1 %804  ;;  %v1387_v1 = vld [vmem:[%s8432_s13 + $0x10] sm:$0xff] }
 0x1a8   :  { %865 = vmatpush1.bf16.msra.mxu1 %v6331_v2  ;;  %v1226_v2 = vld [vmem:[%s8430_s11 + $0x18] sm:$0xff] }
 0x1a9   :  { %866 = vmatprep.subr.bf16.mxu1 %v6336_v3  ;;  %v1551_v3 = vld [vmem:[%s8433_s15] sm:$0xff] }
 0x1ac   :  { %867 = vmatpush1.bf16.msra.mxu1 %v6334_v4  ;;  %v1386_v4 = vld [vmem:[%s8432_s13 + $0x8] sm:$0xff] }
 0x1ad   :  { %868 = vmatprep.subr.bf16.mxu1 %v6339_v5  ;;  %v1553_v5 = vld [vmem:[%s8433_s15 + $0x10] sm:$0xff] }
 0x1b0   :  { %869 = vmatpush1.bf16.msra.mxu1 %v6337_v6  ;;  %v1388_v6 = vld [vmem:[%s8432_s13 + $0x18] sm:$0xff] }
 0x1b1   :  { %5957 = vmatprep.subr.bf16.mxu1 %v6727_v20 }
 0x276   :  { %v796_v8 = vpop.f32.mrb[4].mxu1 }
 0x277   :  { %v807_v9 = vadd.f32 %v805_v7, %v796_v8  ;;  %v5955_v10 = vpop.f32.mrb[5].mxu1  ;;  %v1552_v7 = vld [vmem:[%s8433_s15 + $0x8] sm:$0xff]  ;;  %v1554_v8 = vld [vmem:[%s8433_s15 + $0x18] sm:$0xff] }
 0x278   :  { %v799_v11 = vpop.f32.mrb[6].mxu1 }
 0x279   :  { %v808_v12 = vmax.f32 %v807_v9, 0.0  ;;  %v5956_v13 = vpop.f32.mrb[7].mxu1 }
 0x27b   :  { %v7155_v14 = vpack.c.bf16 %v808_v12, %v808_v12 }
 0x27d   :  { %5514 = vmatmul.mubr.msk.bf16.vlgmr.msra.gmra.mrb[8].mxu1 %vm858_vm9, %v7155_v14 }
 0x27e   :  { %5967 = vmatprep.mubr.msk.bf16.mxu1 %vm6728_vm0, %v6727_v20 }
 0x350   :  { %v896_v15 = vpop.f32.mrb[8].mxu1 }
 0x351   :  { %907 = vrot.lane.b32.xlu1 %v896_v15, %s8449_s28  ;;  %904 = vrot.lane.b32.xlu0 %v896_v15, %s8463_s1  ;;  %v898_v16 = vpop.f32.mrb[9].mxu1  ;;  %s8456_s28 = smov 124  }
 0x352   :  { %v900_v17 = vpop.f32.mrb[10].mxu1  ;;  %v929_v33 = vpack.c.bf16 %v898_v16, %v898_v16 }
 0x353   :  { %v901_v18 = vpop.f32.mrb[11].mxu1 }
 0x354   :  { %v944_v35 = vsel %vm741_vm5, %v929_v33, 0 }
 0x355   :  { %913 = vrot.lane.b32.xlu1 %v896_v15, %s8457_s2  ;;  %910 = vrot.lane.b32.xlu0 %v896_v15, %s8454_s30  ;;  %s8490_s2 = smov 116  }
 0x359   :  { %919 = vrot.lane.b32.xlu1 %v896_v15, %s8453_s4  ;;  %916 = vrot.lane.b32.xlu0 %v896_v15, %s8452_s23  ;;  %s8462_s23 = smov 100  }
 0x35d   :  { %989 = vperm.xlu1 %6128, %v930_v19   ;;  %922 = vrot.lane.b32.xlu0 %v896_v15, %s8451_s25  ;;  %s8455_s25 = smov 116  }
 0x361   :  { %994 = vperm.xlu0 %6129, %v931_v21  }
 0x3c3   :  { %v908_v22 = vpop.permute.xlu1 %907  ;;  %v905_v23 = vpop.permute.xlu0 %904 }
 0x3c4   :  { %v925_v24 = vpack.c.bf16 %v905_v23, %v896_v15 }
 0x3c6   :  { %5958 = vmatpush3.bf16.msra.mxu1 %v925_v24 }
 0x3c7   :  { %v911_v25 = vpop.permute.xlu0 %910  ;;  %5959 = vmatprep.subr.bf16.mxu1 %v6727_v20  ;;  %v914_v27 = vpop.permute.xlu1 %913 }
 0x3c8   :  { %v926_v26 = vpack.c.bf16 %v911_v25, %v908_v22 }
 0x3ca   :  { %5960 = vmatpush3.bf16.msra.mxu1 %v926_v26 }
 0x3cb   :  { %v917_v28 = vpop.permute.xlu0 %916  ;;  %5961 = vmatprep.subr.bf16.mxu1 %v6727_v20  ;;  %v920_v30 = vpop.permute.xlu1 %919 }
 0x3cc   :  { %v927_v29 = vpack.c.bf16 %v917_v28, %v914_v27 }
 0x3ce   :  { %5962 = vmatpush3.bf16.msra.mxu1 %v927_v29 }
 0x3cf   :  { %v923_v31 = vpop.permute.xlu0 %922  ;;  %5963 = vmatprep.subr.bf16.mxu1 %v6727_v20 }
 0x3d0   :  { %v928_v32 = vpack.c.bf16 %v923_v31, %v920_v30 }
 0x3d2   :  { %5964 = vmatpush3.bf16.msra.mxu1 %v928_v32 }
 0x3d3   :  { %5965 = vmatprep.subr.bf16.mxu1 %v6727_v20 }
 0x3d6   :  { %5966 = vmatpush3.bf16.msra.mxu1 %v944_v35 }
 0x3d9   :  { %5968 = vmatmul.mubr.msk.bf16.vlgmr.msra.gmra.mrb[12].mxu1 %vm939_vm10, %v6340_v36 }
 0x3dc   :  { %v990_v38 = vpop.permute.xlu1 %989 }
 0x3e0   :  { %v995_v40 = vpop.permute.xlu0 %994 }
 0x4ac   :  { %v980_v39 = vpop.f32.mrb[12].mxu1 }
 0x4ad   :  { %v997_v41 = vadd.f32 %v990_v38, %v980_v39  ;;  %v5969_v42 = vpop.f32.mrb[13].mxu1 }
 0x4ae   :  { %v983_v43 = vpop.f32.mrb[14].mxu1 }
 0x4af   :  { %v998_v44 = vadd.f32 %v995_v40, %v983_v43  ;;  %v5970_v45 = vpop.f32.mrb[15].mxu1  ;;  %v999_v46 = vmax.f32 %v997_v41, 0.0 }
 0x4b0   :  { %v6345_v45 = vld [vmem:[%s8431_s7 + $0x14] ss:$8 sps:$4 sm:$0xff]  }
 0x4b1   :  { %v1000_v47 = vmax.f32 %v998_v44, 0.0  ;;  %v6344_v44 = vld [vmem:[%s8431_s7] ss:$8 sps:$4 sm:$0xff]  }
 0x4b3   :  { %v7187_v48 = vpack.c.bf16 %v1000_v47, %v999_v46  ;;  %v6347_v46 = vld [vmem:[%s8431_s7 + $0x10] ss:$8 sps:$4 sm:$0xff]   ;;  %v6348_v47 = vld [vmem:[%s8434_s10] sm:$0xff]  }
 0x4b4   :  { %5981 = vmatprep.mubr.msk.bf16.mxu1 %vm1243_vm12, %v6348_v47 }
 0x4b5   :  { %5974 = vmatmul.mubr.msk.bf16.vlgmr.msra.gmra.mrb[8].mxu0 %vm1010_vm11, %v7187_v48 }
 0x4b6   :  { %5523 = vmatprep.mubr.msk.bf16.mxu0 %vm1010_vm11, %v6342_v61 }
 0x588   :  { %v1048_v49 = vpop.f32.mrb[8].mxu0 }
 0x589   :  { %v5975_v50 = vpop.f32.mrb[9].mxu0 }
 0x58a   :  { %v1051_v51 = vpop.f32.mrb[10].mxu0 }
 0x58b   :  { %v5976_v52 = vpop.f32.mrb[11].mxu0  ;;  %v6140_v53 = vpack.i.bf16 %v1051_v51, %v1048_v49  ;;  %v1105_v54 = vpack.c.bf16 %v1051_v51, %v1048_v49 }
 0x58d   :  { %6141 = vrot.lane.b32.xlu0 %v6140_v53, %s8455_s25  ;;  %6131 = vrot.lane.b32.xlu1 %v6140_v53, %s8456_s28  ;;  %s8465_s25 = smov 104   ;;  %s8491_s28 = smov 104  }
 0x58e   :  { %1147 = vmatpush1.bf16.msra.mxu0 %v1105_v54 }
 0x58f   :  { %1148 = vmatprep.subr.bf16.mxu0 %v6730_v34 }
 0x591   :  { %6151 = vrot.lane.b32.xlu0 %v6140_v53, %s8459_s0  ;;  %6136 = vrot.lane.b32.xlu1 %v6140_v53, %s8460_s27  ;;  %s8481_s0 = smov 96  }
 0x595   :  { %6161 = vrot.lane.b32.xlu0 %v6140_v53, %s8462_s23  ;;  %6146 = vrot.lane.b32.xlu1 %v6140_v53, %s8463_s1  ;;  %s8484_s1 = smov 80   ;;  %s8486_s23 = smov 48  }
 0x599   :  { %1197 = vperm.xlu0 %6129, %v1114_v55   ;;  %6156 = vrot.lane.b32.xlu1 %v6140_v53, %s8465_s25  ;;  %s8495_s25 = sld [smem:[#allocation9_spill]] }
 0x59d   :  { %1207 = vperm.xlu0 %6129, %v1116_v56   ;;  %6166 = vrot.lane.b32.xlu1 %v6140_v53, %s8481_s0 }
 0x5a1   :  { %1301 = vperm.xlu0 %6129, %v1223_v58   ;;  %1202 = vperm.xlu1 %6128, %v1115_v59  }
 0x5a5   :  { %1311 = vperm.xlu0 %6129, %v1225_v60   ;;  %1212 = vperm.xlu1 %6128, %v1117_v62  }
 0x5a9   :  { %1460 = vperm.xlu0 %6129, %v1385_v63   ;;  %1306 = vperm.xlu1 %6128, %v1224_v0  }
 0x5ad   :  { %1470 = vperm.xlu0 %6129, %v1387_v1   ;;  %1316 = vperm.xlu1 %6128, %v1226_v2  }
 0x5b1   :  { %1629 = vperm.xlu0 %6129, %v1551_v3   ;;  %1465 = vperm.xlu1 %6128, %v1386_v4  }
 0x5b5   :  { %1639 = vperm.xlu0 %6129, %v1553_v5   ;;  %1475 = vperm.xlu1 %6128, %v1388_v6  }
 0x5b9   :  { %1634 = vperm.xlu1 %6128, %v1552_v7  }
 0x5bd   :  { %1644 = vperm.xlu1 %6128, %v1554_v8   ;;  %v1325_v8 = vld [vmem:[%s8435_s19] sm:$0x3] }
 0x5ff   :  { %v6132_v9 = vpop.permute.xlu1 %6131  ;;  %v6142_v13 = vpop.permute.xlu0 %6141 }
 0x600   :  { %v6134_v10 = vunpack.i.h.bf16 %v6132_v9  ;;  %v6133_v11 = vunpack.i.l.bf16 %v6132_v9  ;;  %v6144_v18 = vunpack.i.h.bf16 %v6142_v13  ;;  %v6143_v19 = vunpack.i.l.bf16 %v6142_v13  ;;  %v6349_v9 = vld [vmem:[%s8434_s10 + $0x8] sm:$0xff]  }
 0x602   :  { %v1106_v12 = vpack.c.bf16 %v6134_v10, %v6133_v11  ;;  %v1108_v23 = vpack.c.bf16 %v6144_v18, %v6143_v19  ;;  %v1334_v10 = vsel %vm745_vm7, %v1325_v8, 0 }
 0x603   :  { %v6137_v15 = vpop.permute.xlu1 %6136  ;;  %v6152_v26 = vpop.permute.xlu0 %6151 }
 0x604   :  { %v6139_v16 = vunpack.i.h.bf16 %v6137_v15  ;;  %v6138_v17 = vunpack.i.l.bf16 %v6137_v15  ;;  %1149 = vmatpush1.bf16.msra.mxu0 %v1106_v12  ;;  %v6154_v27 = vunpack.i.h.bf16 %v6152_v26  ;;  %v6153_v28 = vunpack.i.l.bf16 %v6152_v26 }
 0x605   :  { %1150 = vmatprep.subr.bf16.mxu0 %v6730_v34 }
 0x606   :  { %v1107_v21 = vpack.c.bf16 %v6139_v16, %v6138_v17  ;;  %v1110_v31 = vpack.c.bf16 %v6154_v27, %v6153_v28  ;;  %v6350_v27 = vld [vmem:[%s8436_s12] sm:$0xff]  }
 0x607   :  { %v6147_v22 = vpop.permute.xlu1 %6146  ;;  %v6162_v35 = vpop.permute.xlu0 %6161  ;;  %v6351_v28 = vld [vmem:[%s8437_s20] sm:$0xff]  }
 0x608   :  { %1151 = vmatpush1.bf16.msra.mxu0 %v1107_v21  ;;  %v6149_v24 = vunpack.i.h.bf16 %v6147_v22  ;;  %v6148_v25 = vunpack.i.l.bf16 %v6147_v22  ;;  %v6164_v36 = vunpack.i.h.bf16 %v6162_v35  ;;  %v6163_v37 = vunpack.i.l.bf16 %v6162_v35 }
 0x609   :  { %1152 = vmatprep.subr.bf16.mxu0 %v6730_v34 }
 0x60a   :  { %v1109_v29 = vpack.c.bf16 %v6149_v24, %v6148_v25  ;;  %v1112_v40 = vpack.c.bf16 %v6164_v36, %v6163_v37 }
 0x60b   :  { %v6157_v30 = vpop.permute.xlu1 %6156 }
 0x60c   :  { %1153 = vmatpush1.bf16.msra.mxu0 %v1108_v23  ;;  %v6159_v32 = vunpack.i.h.bf16 %v6157_v30  ;;  %v6158_v33 = vunpack.i.l.bf16 %v6157_v30  ;;  %v6358_v30 = vld [vmem:[%s8439_s18 + $0x10] ss:$72 sps:$4 sm:$0xff]  }
 0x60d   :  { %1154 = vmatprep.subr.bf16.mxu0 %v6730_v34 }
 0x60e   :  { %v1111_v38 = vpack.c.bf16 %v6159_v32, %v6158_v33  ;;  %v6366_v32 = vld [vmem:[%s8439_s18 + $0xa4] ss:$72 sps:$4 sm:$0xff]  }
 0x60f   :  { %v6167_v39 = vpop.permute.xlu1 %6166 }
 0x610   :  { %1155 = vmatpush1.bf16.msra.mxu0 %v1109_v29  ;;  %v6169_v41 = vunpack.i.h.bf16 %v6167_v39  ;;  %v6168_v42 = vunpack.i.l.bf16 %v6167_v39  ;;  %v6352_v29 = vld [vmem:[%s8436_s12 + $0x8] sm:$0xff]  }
 0x611   :  { %1156 = vmatprep.subr.bf16.mxu0 %v6730_v34 }
 0x612   :  { %v1113_v43 = vpack.c.bf16 %v6169_v41, %v6168_v42 }
 0x614   :  { %1157 = vmatpush1.bf16.msra.mxu0 %v1110_v31  ;;  %v6364_v31 = vld [vmem:[%s8439_s18 + $0xa0] ss:$72 sps:$4 sm:$0xff]  }
 0x615   :  { %1158 = vmatprep.subr.bf16.mxu0 %v6730_v34 }
 0x618   :  { %1159 = vmatpush1.bf16.msra.mxu0 %v1111_v38  ;;  %v1198_v49 = vpop.permute.xlu0 %1197 }
 0x619   :  { %1160 = vmatprep.subr.bf16.mxu0 %v6730_v34 }
 0x61c   :  { %1161 = vmatpush1.bf16.msra.mxu0 %v1112_v40  ;;  %v1208_v61 = vpop.permute.xlu0 %1207 }
 0x61d   :  { %1162 = vmatprep.subr.bf16.mxu0 %v6730_v34 }
 0x620   :  { %1163 = vmatpush1.bf16.msra.mxu0 %v1113_v43  ;;  %v1203_v53 = vpop.permute.xlu1 %1202  ;;  %v1302_v11 = vpop.permute.xlu0 %1301 }
 0x623   :  { %1179 = vmatmul.mubr.bf16.vlgmr.msra.gmra.mrb[12].mxu0 %v6344_v44 }
 0x624   :  { %5524 = vmatprep.mubr.msk.bf16.mxu0 %vm1010_vm11, %v6345_v45  ;;  %v1213_v1 = vpop.permute.xlu1 %1212  ;;  %v1312_v15 = vpop.permute.xlu0 %1311 }
 0x628   :  { %v1307_v12 = vpop.permute.xlu1 %1306  ;;  %v1461_v33 = vpop.permute.xlu0 %1460 }
 0x62b   :  { %1187 = vmatmul.mubr.bf16.gmra.mrb[16].mxu0 %v6347_v46 }
 0x62c   :  { %2233 = vmatprep.mubr.bf16.mxu0 %v6730_v34  ;;  %v1317_v17 = vpop.permute.xlu1 %1316  ;;  %v1471_v37 = vpop.permute.xlu0 %1470 }
 0x630   :  { %v1466_v35 = vpop.permute.xlu1 %1465 }
 0x634   :  { %v1476_v39 = vpop.permute.xlu1 %1475 }
 0x6f6   :  { %v1180_v50 = vpop.f32.mrb[12].mxu0 }
 0x6f7   :  { %v1215_v51 = vadd.f32 %v1198_v49, %v1180_v50  ;;  %v1182_v52 = vpop.f32.mrb[13].mxu0  ;;  %v6353_v49 = vld [vmem:[%s8438_s14] sm:$0xff]  }
 0x6f8   :  { %v1183_v54 = vpop.f32.mrb[14].mxu0  ;;  %v6357_v50 = vld [vmem:[%s8439_s18 + $0x4] ss:$72 sps:$4 sm:$0xff]  }
 0x6f9   :  { %v1216_v55 = vadd.f32 %v1203_v53, %v1183_v54  ;;  %v1185_v56 = vpop.f32.mrb[15].mxu0  ;;  %v1219_v58 = vmax.f32 %v1215_v51, 0.0  ;;  %v1576_v51 = vsel %vm741_vm5, %v7155_v14, 0  ;;  %v6354_v52 = vld [vmem:[%s8438_s14 + $0x8] sm:$0xff]   ;;  %v6363_v54 = vld [vmem:[%s8439_s18 + $0x94] ss:$72 sps:$4 sm:$0xff]  }
 0x6fa   :  { %v6355_v53 = vld [vmem:[%s8439_s18] ss:$72 sps:$4 sm:$0xff]   ;;  %v6372_v56 = vld [vmem:[%s8439_s18 + $0x134] ss:$72 sps:$4 sm:$0xff]  }
 0x6fb   :  { %v1220_v59 = vmax.f32 %v1216_v55, 0.0  ;;  %v6369_v55 = vld [vmem:[%s8439_s18 + $0x124] ss:$72 sps:$4 sm:$0xff]  }
 0x6fd   :  { %v1231_v60 = vpack.c.bf16 %v1220_v59, %v1219_v58  ;;  %v6367_v58 = vld [vmem:[%s8439_s18 + $0x120] ss:$72 sps:$4 sm:$0xff]   ;;  %v6370_v59 = vld [vmem:[%s8439_s18 + $0x130] ss:$72 sps:$4 sm:$0xff]  }
 0x6fe   :  { %v1188_v62 = vpop.f32.mrb[16].mxu0 }
 0x6ff   :  { %v1217_v63 = vadd.f32 %v1208_v61, %v1188_v62  ;;  %v1190_v0 = vpop.f32.mrb[17].mxu0  ;;  %5977 = vmatprep.subr.bf16.mxu1 %v1231_v60  ;;  %v6378_v61 = vld [vmem:[%s8439_s18 + $0x1c4] ss:$72 sps:$4 sm:$0xff]   ;;  %v6373_v62 = vld [vmem:[%s8439_s18 + $0x1b0] ss:$72 sps:$4 sm:$0xff]  }
 0x700   :  { %v1191_v2 = vpop.f32.mrb[18].mxu0  ;;  %5978 = vmatpush3.bf16.msra.mxu1 %v1231_v60  ;;  %v6375_v60 = vld [vmem:[%s8439_s18 + $0x1b4] ss:$72 sps:$4 sm:$0xff]  }
 0x701   :  { %v1218_v3 = vadd.f32 %v1213_v1, %v1191_v2  ;;  %v1193_v4 = vpop.f32.mrb[19].mxu0  ;;  %v1221_v5 = vmax.f32 %v1217_v63, 0.0  ;;  %v6376_v63 = vld [vmem:[%s8439_s18 + $0x1c0] ss:$72 sps:$4 sm:$0xff]   ;;  %v6381_v0 = vld [vmem:[%s8439_s18 + $0xc] ss:$72 sps:$4 sm:$0xff]   ;;  %v1630_v2 = vpop.permute.xlu0 %1629 }
 0x702   :  { %v6384_v1 = vld [vmem:[%s8439_s18 + $0x24] ss:$72 sps:$4 sm:$0xff]  }
 0x703   :  { %v1222_v6 = vmax.f32 %v1218_v3, 0.0  ;;  %v1635_v3 = vpop.permute.xlu1 %1634 }
 0x705   :  { %v1232_v7 = vpack.c.bf16 %v1222_v6, %v1221_v5  ;;  %v1640_v5 = vpop.permute.xlu0 %1639 }
 0x707   :  { %5979 = vmatprep.subr.bf16.mxu1 %v1232_v7 }
 0x708   :  { %5980 = vmatpush3.bf16.msra.mxu1 %v1232_v7  ;;  %v1645_v7 = vpop.permute.xlu1 %1644 }
 0x709   :  { %6101 = vmatprep.subr.msk.bf16.mxu1 %vm745_vm7, %v1325_v8 }
 0x70b   :  { %5982 = vmatmul.mubr.msk.bf16.vlgmr.msra.gmra.mrb[16].mxu1 %vm1243_vm12, %v6349_v9 }
 0x70c   :  { %5986 = vmatpush3.bf16.msra.mxu1 %v1334_v10 }
 0x70d   :  { %5991 = vmatprep.subr.bf16.mxu1 %v7187_v48 }
 0x7de   :  { %v5983_v13 = vpop.f32.mrb[16].mxu1 }
 0x7df   :  { %v1284_v16 = vpop.f32.mrb[17].mxu1  ;;  %v1321_v19 = vadd.f32 %v5983_v13, %v1312_v15 }
 0x7e0   :  { %v5984_v18 = vpop.f32.mrb[18].mxu1  ;;  %v1319_v23 = vadd.f32 %v1302_v11, %v1284_v16  ;;  %v6379_v16 = vld [vmem:[%s8439_s18 + $0x8] ss:$72 sps:$4 sm:$0xff]  }
 0x7e1   :  { %v1322_v21 = vadd.f32 %v5984_v18, %v1317_v17  ;;  %v1287_v22 = vpop.f32.mrb[19].mxu1  ;;  %v6382_v17 = vld [vmem:[%s8439_s18 + $0x20] ss:$72 sps:$4 sm:$0xff]  }
 0x7e2   :  { %v1320_v24 = vadd.f32 %v1307_v12, %v1287_v22  ;;  %v6385_v22 = vld [vmem:[%s8439_s18 + $0x98] ss:$72 sps:$4 sm:$0xff]  }
 0x7e3   :  { %v1324_v25 = vpack.c.bf16 %v1322_v21, %v1321_v19  ;;  %v6387_v19 = vld [vmem:[%s8439_s18 + $0x9c] ss:$72 sps:$4 sm:$0xff]  }
 0x7e4   :  { %v1323_v26 = vpack.c.bf16 %v1320_v24, %v1319_v23  ;;  %v6390_v21 = vld [vmem:[%s8439_s18 + $0xb4] ss:$72 sps:$4 sm:$0xff]   ;;  %v6388_v23 = vld [vmem:[%s8439_s18 + $0xb0] ss:$72 sps:$4 sm:$0xff]  }
 0x7e5   :  { %v6393_v24 = vld [vmem:[%s8439_s18 + $0x12c] ss:$72 sps:$4 sm:$0xff]  }
 0x7e6   :  { %5987 = vmatprep.mubr.msk.bf16.mxu1 %vm1326_vm13, %v1323_v26  ;;  %v6391_v26 = vld [vmem:[%s8439_s18 + $0x128] ss:$72 sps:$4 sm:$0xff]  }
 0x7e7   :  { %5988 = vmatmul.mubr.msk.bf16.vlgmr.msra.gmra.mrb[20].mxu1 %vm1326_vm13, %v1324_v25  ;;  %v6396_v25 = vld [vmem:[%s8439_s18 + $0x144] ss:$72 sps:$4 sm:$0xff]  }
 0x7e8   :  { %5992 = vmatpush3.bf16.msra.mxu1 %v7187_v48  ;;  %5993 = vmatprep.mubr.msk.bf16.mxu1 %vm1010_vm11, %v6350_v27  ;;  %v6360_v48 = vld [vmem:[%s8439_s18 + $0x14] ss:$72 sps:$4 sm:$0xff]   ;;  %v6394_v27 = vld [vmem:[%s8439_s18 + $0x140] ss:$72 sps:$4 sm:$0xff]  }
 0x7e9   :  { %5997 = vmatprep.subr.bf16.mxu1 %v6351_v28  ;;  %2201 = vmatprep.subr.bf16.mxu0 %v6360_v48  ;;  %v6400_v48 = vld [vmem:[%s8439_s18 + $0x1d0] ss:$72 sps:$4 sm:$0xff]  }
 0x7ea   :  { %2202 = vmatpush1.bf16.msra.mxu0 %v6358_v30  ;;  %v6397_v30 = vld [vmem:[%s8439_s18 + $0x1b8] ss:$72 sps:$4 sm:$0xff]  }
 0x7eb   :  { %2203 = vmatprep.subr.bf16.mxu0 %v6366_v32  ;;  %v6408_v32 = vld [vmem:[%s8439_s18 + $0x34] ss:$72 sps:$4 sm:$0xff]  }
 0x7ee   :  { %2204 = vmatpush1.bf16.msra.mxu0 %v6364_v31  ;;  %v6405_v31 = vld [vmem:[%s8439_s18 + $0x1c] ss:$72 sps:$4 sm:$0xff]  }
 0x7ef   :  { %2205 = vmatprep.subr.bf16.mxu0 %v6372_v56  ;;  %v6441_v56 = vld [vmem:[%s8439_s18 + $0x14c] ss:$72 sps:$4 sm:$0xff]  }
 0x7f2   :  { %2206 = vmatpush1.bf16.msra.mxu0 %v6370_v59  ;;  %v6439_v59 = vld [vmem:[%s8439_s18 + $0x148] ss:$72 sps:$4 sm:$0xff]  }
 0x7f3   :  { %5994 = vmatmul.mubr.msk.bf16.vlgmr.msra.gmra.mrb[20].mxu1 %vm1010_vm11, %v6352_v29  ;;  %2207 = vmatprep.subr.bf16.mxu0 %v6378_v61  ;;  %v6402_v29 = vld [vmem:[%s8439_s18 + $0x1d4] ss:$72 sps:$4 sm:$0xff]  }
 0x7f4   :  { %5998 = vmatpush3.bf16.msra.mxu1 %v6351_v28  ;;  %v6399_v28 = vld [vmem:[%s8439_s18 + $0x1bc] ss:$72 sps:$4 sm:$0xff]  }
 0x7f5   :  { %6102 = vmatprep.subr.msk.bf16.mxu1 %vm741_vm5, %v7155_v14  ;;  %v6361_v14 = vld [vmem:[%s8439_s18 + $0x90] ss:$72 sps:$4 sm:$0xff]   ;;  %v6447_v61 = vld [vmem:[%s8439_s18 + $0x1dc] ss:$72 sps:$4 sm:$0xff]  }
 0x7f6   :  { %2208 = vmatpush1.bf16.msra.mxu0 %v6376_v63  ;;  %v6445_v63 = vld [vmem:[%s8439_s18 + $0x1d8] ss:$72 sps:$4 sm:$0xff]  }
 0x7f7   :  { %2307 = vmatprep.subr.bf16.mxu0 %v6384_v1  ;;  %v6453_v1 = vld [vmem:[%s8439_s18 + $0x3c] ss:$72 sps:$4 sm:$0xff]  }
 0x8c6   :  { %v5995_v36 = vpop.f32.mrb[20].mxu1 }
 0x8c7   :  { %v1443_v38 = vpop.f32.mrb[21].mxu1  ;;  %v1480_v41 = vadd.f32 %v5995_v36, %v1471_v37  ;;  %v6411_v36 = vld [vmem:[%s8439_s18 + $0xac] ss:$72 sps:$4 sm:$0xff]  }
 0x8c8   :  { %v5996_v40 = vpop.f32.mrb[22].mxu1  ;;  %v1478_v44 = vadd.f32 %v1461_v33, %v1443_v38  ;;  %v6403_v33 = vld [vmem:[%s8439_s18 + $0x18] ss:$72 sps:$4 sm:$0xff]   ;;  %v6414_v37 = vld [vmem:[%s8439_s18 + $0xc4] ss:$72 sps:$4 sm:$0xff]  }
 0x8c9   :  { %v1481_v42 = vadd.f32 %v5996_v40, %v1476_v39  ;;  %v1446_v43 = vpop.f32.mrb[23].mxu1  ;;  %v6409_v38 = vld [vmem:[%s8439_s18 + $0xa8] ss:$72 sps:$4 sm:$0xff]   ;;  %v6417_v40 = vld [vmem:[%s8439_s18 + $0x13c] ss:$72 sps:$4 sm:$0xff]  }
 0x8ca   :  { %v1479_v45 = vadd.f32 %v1466_v35, %v1446_v43  ;;  %v6406_v35 = vld [vmem:[%s8439_s18 + $0x30] ss:$72 sps:$4 sm:$0xff]   ;;  %v6412_v39 = vld [vmem:[%s8439_s18 + $0xc0] ss:$72 sps:$4 sm:$0xff]  }
 0x8cb   :  { %v1487_v46 = vpack.c.bf16 %v1481_v42, %v1480_v41  ;;  %v6420_v41 = vld [vmem:[%s8439_s18 + $0x154] ss:$72 sps:$4 sm:$0xff]   ;;  %v6415_v42 = vld [vmem:[%s8439_s18 + $0x138] ss:$72 sps:$4 sm:$0xff]  }
 0x8cc   :  { %v1486_v47 = vpack.c.bf16 %v1479_v45, %v1478_v44  ;;  %v6418_v43 = vld [vmem:[%s8439_s18 + $0x150] ss:$72 sps:$4 sm:$0xff]   ;;  %v6423_v44 = vld [vmem:[%s8439_s18 + $0x1cc] ss:$72 sps:$4 sm:$0xff]  }
 0x8cd   :  { %v6426_v45 = vld [vmem:[%s8439_s18 + $0x1e4] ss:$72 sps:$4 sm:$0xff]  }
 0x8ce   :  { %5999 = vmatprep.mubr.msk.bf16.mxu1 %vm1010_vm11, %v1486_v47  ;;  %v6424_v47 = vld [vmem:[%s8439_s18 + $0x1e0] ss:$72 sps:$4 sm:$0xff]  }
 0x8cf   :  { %6000 = vmatmul.mubr.msk.bf16.vlgmr.msra.gmra.mrb[24].mxu1 %vm1010_vm11, %v1487_v46  ;;  %v6421_v46 = vld [vmem:[%s8439_s18 + $0x1c8] ss:$72 sps:$4 sm:$0xff]  }
 0x8d0   :  { %6004 = vmatpush3.bf16.msra.mxu1 %v1576_v51  ;;  %6005 = vmatprep.mubr.msk.bf16.mxu1 %vm1569_vm14, %v6353_v49  ;;  %v6429_v49 = vld [vmem:[%s8439_s18 + $0x2c] ss:$72 sps:$4 sm:$0xff]   ;;  %v6427_v51 = vld [vmem:[%s8439_s18 + $0x28] ss:$72 sps:$4 sm:$0xff]  }
 0x8d1   :  { %2095 = vmatprep.subr.bf16.mxu1 %v6357_v50  ;;  %v6432_v50 = vld [vmem:[%s8439_s18 + $0x44] ss:$72 sps:$4 sm:$0xff]  }
 0x8db   :  { %6006 = vmatmul.mubr.msk.bf16.vlgmr.msra.gmra.mrb[24].mxu1 %vm1569_vm14, %v6354_v52  ;;  %v6430_v52 = vld [vmem:[%s8439_s18 + $0x40] ss:$72 sps:$4 sm:$0xff]  }
 0x8dc   :  { %2096 = vmatpush1.bf16.msra.mxu1 %v6355_v53  ;;  %2127 = vmatprep.mubr.bf16.mxu1 %v6730_v34  ;;  %v6435_v53 = vld [vmem:[%s8439_s18 + $0xbc] ss:$72 sps:$4 sm:$0xff]  }
 0x8dd   :  { %2097 = vmatprep.subr.bf16.mxu1 %v6363_v54  ;;  %v6438_v54 = vld [vmem:[%s8439_s18 + $0xd4] ss:$72 sps:$4 sm:$0xff]  }
 0x8e0   :  { %2098 = vmatpush1.bf16.msra.mxu1 %v6361_v14  ;;  %v6433_v14 = vld [vmem:[%s8439_s18 + $0xb8] ss:$72 sps:$4 sm:$0xff]  }
 0x8e1   :  { %2099 = vmatprep.subr.bf16.mxu1 %v6369_v55  ;;  %v6436_v55 = vld [vmem:[%s8439_s18 + $0xd0] ss:$72 sps:$4 sm:$0xff]  }
 0x8e4   :  { %2100 = vmatpush1.bf16.msra.mxu1 %v6367_v58  ;;  %v6444_v58 = vld [vmem:[%s8439_s18 + $0x164] ss:$72 sps:$4 sm:$0xff]  }
 0x8e5   :  { %2101 = vmatprep.subr.bf16.mxu1 %v6375_v60  ;;  %v6442_v60 = vld [vmem:[%s8439_s18 + $0x160] ss:$72 sps:$4 sm:$0xff]  }
 0x8e8   :  { %2102 = vmatpush1.bf16.msra.mxu1 %v6373_v62  ;;  %v6450_v62 = vld [vmem:[%s8439_s18 + $0x1f4] ss:$72 sps:$4 sm:$0xff]  }
 0x8e9   :  { %2148 = vmatprep.subr.bf16.mxu1 %v6381_v0  ;;  %v6448_v0 = vld [vmem:[%s8439_s18 + $0x1f0] ss:$72 sps:$4 sm:$0xff]  }
 0x9ae   :  { %v6007_v4 = vpop.f32.mrb[24].mxu1 }
 0x9af   :  { %v1612_v6 = vpop.f32.mrb[25].mxu1  ;;  %v1649_v9 = vadd.f32 %v6007_v4, %v1640_v5  ;;  %v6454_v4 = vld [vmem:[%s8439_s18 + $0xc8] ss:$72 sps:$4 sm:$0xff]   ;;  %v6459_v5 = vld [vmem:[%s8439_s18 + $0x15c] ss:$72 sps:$4 sm:$0xff]  }
 0x9b0   :  { %v6008_v8 = vpop.f32.mrb[26].mxu1  ;;  %v1647_v12 = vadd.f32 %v1630_v2, %v1612_v6  ;;  %v6451_v2 = vld [vmem:[%s8439_s18 + $0x38] ss:$72 sps:$4 sm:$0xff]  }
 0x9b1   :  { %v1650_v10 = vadd.f32 %v6008_v8, %v1645_v7  ;;  %v1615_v11 = vpop.f32.mrb[27].mxu1  ;;  %v6457_v6 = vld [vmem:[%s8439_s18 + $0x158] ss:$72 sps:$4 sm:$0xff]   ;;  %v6462_v7 = vld [vmem:[%s8439_s18 + $0x1ec] ss:$72 sps:$4 sm:$0xff]  }
 0x9b2   :  { %v1648_v13 = vadd.f32 %v1635_v3, %v1615_v11  ;;  %v6456_v3 = vld [vmem:[%s8439_s18 + $0xcc] ss:$72 sps:$4 sm:$0xff]   ;;  %v6460_v8 = vld [vmem:[%s8439_s18 + $0x1e8] ss:$72 sps:$4 sm:$0xff]   ;;  %v2622_v11 = vlaneseq }
 0x9b3   :  { %v7367_v15 = vpack.c.bf16 %v1650_v10, %v1649_v9  ;;  %v6744_v9 = vmov 1966171168  }
 0x9b4   :  { %v7375_v18 = vpack.c.bf16 %v1648_v13, %v1647_v12  ;;  %v2620_v10 = vunpack.c.l.s4 %v6744_v9  ;;  %v2623_v13 = vshrl.u32 %v2622_v11, 7 }
 0x9b6   :  { %5614 = vmatmul.mubr.msk.bf16.vlgmr.msra.gmra.mrb[28].mxu1 %vm858_vm9, %v7375_v18  ;;  %5618 = vmatmul.mubr.msk.bf16.vlgmr.msra.gmra.mrb[20].mxu0 %vm858_vm9, %v7375_v18  ;;  %v2621_v12 = vunpack.c.0.s8 %v2620_v10 }
 0x9b7   :  { %2149 = vmatpush1.bf16.msra.mxu1 %v6379_v16  ;;  %2308 = vmatpush1.bf16.msra.mxu0 %v6382_v17  ;;  %v7589_v16 = vld.sshfl [vmem:[%s8440_s16] sm:$0x13 pattern:$0x75316420] }
 0x9b8   :  { %2150 = vmatprep.subr.bf16.mxu1 %v6387_v19  ;;  %2309 = vmatprep.subr.bf16.mxu0 %v6390_v21  ;;  %v7591_v17 = vsub.s32 %v2621_v12, %v2623_v13 }
 0x9b9   :  { %2137 = vmatprep.mubr.bf16.mxu1 %v6730_v34  ;;  %2243 = vmatprep.mubr.bf16.mxu0 %v6730_v34 }
 0x9bb   :  { %2151 = vmatpush1.bf16.msra.mxu1 %v6385_v22  ;;  %2310 = vmatpush1.bf16.msra.mxu0 %v6388_v23 }
 0x9bc   :  { %2152 = vmatprep.subr.bf16.mxu1 %v6393_v24  ;;  %2311 = vmatprep.subr.bf16.mxu0 %v6396_v25 }
 0x9be   :  { %5615 = vmatmul.mubr.msk.bf16.gmra.mrb[32].mxu1 %vm858_vm9, %v7367_v15  ;;  %5619 = vmatmul.mubr.msk.bf16.gmra.mrb[24].mxu0 %vm858_vm9, %v7367_v15 }
 0x9bf   :  { %2153 = vmatpush1.bf16.msra.mxu1 %v6391_v26  ;;  %2312 = vmatpush1.bf16.msra.mxu0 %v6394_v27 }
 0x9c0   :  { %2154 = vmatprep.subr.bf16.mxu1 %v6399_v28  ;;  %2313 = vmatprep.subr.bf16.mxu0 %v6402_v29 }
 0x9c1   :  { %2180 = vmatprep.mubr.bf16.mxu1 %v6730_v34  ;;  %2339 = vmatprep.mubr.bf16.mxu0 %v6730_v34 }
 0x9c3   :  { %2155 = vmatpush1.bf16.msra.mxu1 %v6397_v30  ;;  %2314 = vmatpush1.bf16.msra.mxu0 %v6400_v48 }
 0x9c4   :  { %2254 = vmatprep.subr.bf16.mxu1 %v6405_v31  ;;  %2413 = vmatprep.subr.bf16.mxu0 %v6408_v32 }
 0x9c6   :  { %5616 = vmatmul.mubr.msk.bf16.vlgmr.msra.gmra.mrb[36].mxu1 %vm858_vm9, %v7375_v18  ;;  %5622 = vmatmul.mubr.msk.bf16.vlgmr.msra.gmra.mrb[28].mxu0 %vm858_vm9, %v7375_v18 }
 0x9c7   :  { %2255 = vmatpush1.bf16.msra.mxu1 %v6403_v33  ;;  %2414 = vmatpush1.bf16.msra.mxu0 %v6406_v35 }
 0x9c8   :  { %2256 = vmatprep.subr.bf16.mxu1 %v6411_v36  ;;  %2415 = vmatprep.subr.bf16.mxu0 %v6414_v37 }
 0x9c9   :  { %2190 = vmatprep.mubr.bf16.mxu1 %v6730_v34  ;;  %2349 = vmatprep.mubr.bf16.mxu0 %v6730_v34 }
 0x9cb   :  { %2257 = vmatpush1.bf16.msra.mxu1 %v6409_v38  ;;  %2416 = vmatpush1.bf16.msra.mxu0 %v6412_v39 }
 0x9cc   :  { %2258 = vmatprep.subr.bf16.mxu1 %v6417_v40  ;;  %2417 = vmatprep.subr.bf16.mxu0 %v6420_v41 }
 0x9ce   :  { %5617 = vmatmul.mubr.msk.bf16.gmra.mrb[40].mxu1 %vm858_vm9, %v7367_v15  ;;  %5623 = vmatmul.mubr.msk.bf16.gmra.mrb[32].mxu0 %vm858_vm9, %v7367_v15 }
 0x9cf   :  { %2259 = vmatpush1.bf16.msra.mxu1 %v6415_v42  ;;  %2418 = vmatpush1.bf16.msra.mxu0 %v6418_v43 }
 0x9d0   :  { %2260 = vmatprep.subr.bf16.mxu1 %v6423_v44  ;;  %2419 = vmatprep.subr.bf16.mxu0 %v6426_v45 }
 0x9d1   :  { %2286 = vmatprep.mubr.bf16.mxu1 %v6730_v34  ;;  %2445 = vmatprep.mubr.bf16.mxu0 %v6730_v34 }
 0x9d3   :  { %2261 = vmatpush1.bf16.msra.mxu1 %v6421_v46  ;;  %2420 = vmatpush1.bf16.msra.mxu0 %v6424_v47 }
 0x9d4   :  { %2360 = vmatprep.subr.bf16.mxu1 %v6429_v49  ;;  %2519 = vmatprep.subr.bf16.mxu0 %v6432_v50 }
 0x9d6   :  { %5620 = vmatmul.mubr.msk.bf16.vlgmr.msra.gmra.mrb[44].mxu1 %vm858_vm9, %v7375_v18  ;;  %5626 = vmatmul.mubr.msk.bf16.vlgmr.msra.gmra.mrb[36].mxu0 %vm858_vm9, %v7375_v18 }
 0x9d7   :  { %2361 = vmatpush1.bf16.msra.mxu1 %v6427_v51  ;;  %2520 = vmatpush1.bf16.msra.mxu0 %v6430_v52 }
 0x9d8   :  { %2362 = vmatprep.subr.bf16.mxu1 %v6435_v53  ;;  %2521 = vmatprep.subr.bf16.mxu0 %v6438_v54 }
 0x9d9   :  { %2296 = vmatprep.mubr.bf16.mxu1 %v6730_v34  ;;  %2455 = vmatprep.mubr.bf16.mxu0 %v6730_v34 }
 0x9db   :  { %2363 = vmatpush1.bf16.msra.mxu1 %v6433_v14  ;;  %2522 = vmatpush1.bf16.msra.mxu0 %v6436_v55 }
 0x9dc   :  { %2364 = vmatprep.subr.bf16.mxu1 %v6441_v56  ;;  %2523 = vmatprep.subr.bf16.mxu0 %v6444_v58 }
 0x9de   :  { %5621 = vmatmul.mubr.msk.bf16.gmra.mrb[48].mxu1 %vm858_vm9, %v7367_v15  ;;  %5627 = vmatmul.mubr.msk.bf16.gmra.mrb[40].mxu0 %vm858_vm9, %v7367_v15 }
 0x9df   :  { %2365 = vmatpush1.bf16.msra.mxu1 %v6439_v59  ;;  %2524 = vmatpush1.bf16.msra.mxu0 %v6442_v60 }
 0x9e0   :  { %2366 = vmatprep.subr.bf16.mxu1 %v6447_v61  ;;  %2525 = vmatprep.subr.bf16.mxu0 %v6450_v62 }
 0x9e1   :  { %2392 = vmatprep.mubr.bf16.mxu1 %v6730_v34  ;;  %2551 = vmatprep.mubr.bf16.mxu0 %v6730_v34 }
 0x9e3   :  { %2367 = vmatpush1.bf16.msra.mxu1 %v6445_v63  ;;  %2526 = vmatpush1.bf16.msra.mxu0 %v6448_v0 }
 0x9e4   :  { %2466 = vmatprep.subr.bf16.mxu1 %v6453_v1 }
 0x9e6   :  { %5624 = vmatmul.mubr.msk.bf16.vlgmr.msra.gmra.mrb[52].mxu1 %vm858_vm9, %v7375_v18  ;;  %5630 = vmatmul.mubr.msk.bf16.vlgmr.msra.gmra.mrb[44].mxu0 %vm858_vm9, %v7375_v18 }
 0x9e7   :  { %2467 = vmatpush1.bf16.msra.mxu1 %v6451_v2  ;;  %2402 = vmatprep.mubr.bf16.mxu1 %v6730_v34 }
 0x9e8   :  { %2468 = vmatprep.subr.bf16.mxu1 %v6456_v3  ;;  %2561 = vmatprep.mubr.bf16.mxu0 %v6730_v34 }
 0x9eb   :  { %2469 = vmatpush1.bf16.msra.mxu1 %v6454_v4 }
 0x9ec   :  { %2470 = vmatprep.subr.bf16.mxu1 %v6459_v5 }
 0x9ee   :  { %5625 = vmatmul.mubr.msk.bf16.gmra.mrb[56].mxu1 %vm858_vm9, %v7367_v15  ;;  %5631 = vmatmul.mubr.msk.bf16.gmra.mrb[48].mxu0 %vm858_vm9, %v7367_v15 }
 0x9ef   :  { %2471 = vmatpush1.bf16.msra.mxu1 %v6457_v6  ;;  %2498 = vmatprep.mubr.bf16.mxu1 %v6730_v34 }
 0x9f0   :  { %2472 = vmatprep.subr.bf16.mxu1 %v6462_v7  ;;  %2712 = vmatprep.mubr.bf16.mxu0 %v6730_v34 }
 0x9f3   :  { %2473 = vmatpush1.bf16.msra.mxu1 %v6460_v8 }
 0x9f6   :  { %5628 = vmatmul.mubr.msk.bf16.vlgmr.msra.gmra.mrb[60].mxu1 %vm858_vm9, %v7375_v18  ;;  %v2618_v18 = vcombine.high %v7589_v16, %v7589_v16 }
 0x9f7   :  { %2508 = vmatprep.mubr.bf16.mxu1 %v6730_v34 }
 0x9f8   :  { %v2632_v19 = vrot.slane %v2618_v18, %v7591_v17 }
 0x9fe   :  { %5629 = vmatmul.mubr.msk.bf16.gmra.mrb[64].mxu1 %vm858_vm9, %v7367_v15 }
 0x9ff   :  { %2671 = vmatprep.mubr.bf16.mxu1 %v2632_v19 }
 0xa89   :  { %v2129_v21 = vpop.f32.mrb[28].mxu1  ;;  %v7596_v15 = vpop.f32.mrb[20].mxu0 }
 0xa8a   :  { %v2131_v22 = vpop.f32.mrb[29].mxu1  ;;  %v2237_v23 = vpop.f32.mrb[21].mxu0 }
 0xa8b   :  { %v2133_v24 = vpop.f32.mrb[30].mxu1  ;;  %v2239_v25 = vpop.f32.mrb[22].mxu0 }
 0xa8c   :  { %v2572_v26 = vpack.c.bf16 %v2133_v24, %v2129_v21  ;;  %v2580_v27 = vpack.c.bf16 %v2239_v25, %v7596_v15  ;;  %v2135_v28 = vpop.f32.mrb[31].mxu1  ;;  %v2241_v29 = vpop.f32.mrb[23].mxu0 }
 0xa8d   :  { %v2573_v30 = vpack.c.bf16 %v2135_v28, %v2131_v22  ;;  %v2581_v48 = vpack.c.bf16 %v2241_v29, %v2237_v23 }
 0xa8f   :  { %2639 = vmatprep.subr.bf16.mxu1 %v2573_v30 }
 0xa90   :  { %2640 = vmatpush1.bf16.msra.mxu1 %v2572_v26 }
 0xa91   :  { %v2139_v31 = vpop.f32.mrb[32].mxu1  ;;  %v2245_v32 = vpop.f32.mrb[24].mxu0 }
 0xa92   :  { %v2141_v33 = vpop.f32.mrb[33].mxu1  ;;  %v2247_v35 = vpop.f32.mrb[25].mxu0 }
 0xa93   :  { %v2143_v36 = vpop.f32.mrb[34].mxu1  ;;  %v2249_v37 = vpop.f32.mrb[26].mxu0 }
 0xa94   :  { %v2574_v38 = vpack.c.bf16 %v2143_v36, %v2139_v31  ;;  %v2582_v39 = vpack.c.bf16 %v2249_v37, %v2245_v32  ;;  %v2145_v40 = vpop.f32.mrb[35].mxu1  ;;  %v2251_v41 = vpop.f32.mrb[27].mxu0 }
 0xa95   :  { %v2575_v42 = vpack.c.bf16 %v2145_v40, %v2141_v33  ;;  %v2583_v43 = vpack.c.bf16 %v2251_v41, %v2247_v35 }
 0xa97   :  { %2641 = vmatprep.subr.bf16.mxu1 %v2575_v42 }
 0xa98   :  { %2642 = vmatpush1.bf16.msra.mxu1 %v2574_v38 }
 0xa99   :  { %v2182_v44 = vpop.f32.mrb[36].mxu1  ;;  %v7599_v45 = vpop.f32.mrb[28].mxu0 }
 0xa9a   :  { %v2184_v46 = vpop.f32.mrb[37].mxu1  ;;  %v2343_v47 = vpop.f32.mrb[29].mxu0 }
 0xa9b   :  { %v2186_v49 = vpop.f32.mrb[38].mxu1  ;;  %v7601_v50 = vpop.f32.mrb[30].mxu0 }
 0xa9c   :  { %v2576_v51 = vpack.c.bf16 %v2186_v49, %v2182_v44  ;;  %v2588_v52 = vpack.c.bf16 %v7601_v50, %v7599_v45  ;;  %v2188_v53 = vpop.f32.mrb[39].mxu1  ;;  %v2347_v54 = vpop.f32.mrb[31].mxu0  ;;  %v7634_v45 = vld [vmem:[%s8476_s29 + $0x8] sm:$0x77]  ;;  %s8485_s29 = smov 32  }
 0xa9d   :  { %v2577_v14 = vpack.c.bf16 %v2188_v53, %v2184_v46  ;;  %v2589_v55 = vpack.c.bf16 %v2347_v54, %v2343_v47 }
 0xa9f   :  { %2643 = vmatprep.subr.bf16.mxu1 %v2577_v14  ;;  %v2625_v14 = vrot.slane %v7589_v16, %v7591_v17 }
 0xaa0   :  { %2644 = vmatpush1.bf16.msra.mxu1 %v2576_v51 }
 0xaa1   :  { %v2192_v56 = vpop.f32.mrb[40].mxu1  ;;  %v2351_v58 = vpop.f32.mrb[32].mxu0  ;;  %v2633_v16 = vcombine.high %v2625_v14, %v2625_v14 }
 0xaa2   :  { %v2194_v59 = vpop.f32.mrb[41].mxu1  ;;  %v2353_v60 = vpop.f32.mrb[33].mxu0 }
 0xaa3   :  { %v2196_v61 = vpop.f32.mrb[42].mxu1  ;;  %v2355_v62 = vpop.f32.mrb[34].mxu0 }
 0xaa4   :  { %v2578_v63 = vpack.c.bf16 %v2196_v61, %v2192_v56  ;;  %v2590_v0 = vpack.c.bf16 %v2355_v62, %v2351_v58  ;;  %v2198_v1 = vpop.f32.mrb[43].mxu1  ;;  %v2357_v2 = vpop.f32.mrb[35].mxu0  ;;  %v2755_v61 = vcombine.high %v7634_v45, %v7634_v45  ;;  %v6463_v62 = vld [vmem:[%s8475_s26] ss:$20 sps:$4 sm:$0xff]  }
 0xaa5   :  { %v2579_v3 = vpack.c.bf16 %v2198_v1, %v2194_v59  ;;  %v2591_v4 = vpack.c.bf16 %v2357_v2, %v2353_v60  ;;  %v6465_v60 = vld [vmem:[%s8475_s26 + $0x4] ss:$20 sps:$4 sm:$0xff]  }
 0xaa6   :  { %v7647_v2 = vpack.c.bf16 %v2755_v61, %v2755_v61  ;;  %v6534_v61 = vld [vmem:[%s8475_s26 + $0x174] ss:$20 sps:$4 sm:$0xff]  }
 0xaa7   :  { %2645 = vmatprep.subr.bf16.mxu1 %v2579_v3 }
 0xaa8   :  { %2646 = vmatpush1.bf16.msra.mxu1 %v2578_v63 }
 0xaa9   :  { %v2288_v5 = vpop.f32.mrb[44].mxu1  ;;  %v7605_v6 = vpop.f32.mrb[36].mxu0  ;;  %2647 = vmatprep.subr.bf16.mxu1 %v2581_v48 }
 0xaaa   :  { %v2290_v7 = vpop.f32.mrb[45].mxu1  ;;  %v7607_v8 = vpop.f32.mrb[37].mxu0 }
 0xaab   :  { %v2292_v9 = vpop.f32.mrb[46].mxu1  ;;  %v7609_v10 = vpop.f32.mrb[38].mxu0 }
 0xaac   :  { %v2584_v11 = vpack.c.bf16 %v2292_v9, %v2288_v5  ;;  %v2596_v12 = vpack.c.bf16 %v7609_v10, %v7605_v6  ;;  %v2294_v13 = vpop.f32.mrb[47].mxu1  ;;  %v7613_v18 = vpop.f32.mrb[39].mxu0  ;;  %2648 = vmatpush1.bf16.msra.mxu1 %v2580_v27  ;;  %v6471_v9 = vld [vmem:[%s8475_s26 + $0x54] ss:$20 sps:$4 sm:$0xff]   ;;  %v6469_v6 = vld [vmem:[%s8475_s26 + $0x50] ss:$20 sps:$4 sm:$0xff]  }
 0xaad   :  { %v2585_v19 = vpack.c.bf16 %v2294_v13, %v2290_v7  ;;  %v2597_v21 = vpack.c.bf16 %v7613_v18, %v7607_v8  ;;  %2649 = vmatprep.subr.bf16.mxu1 %v2583_v43  ;;  %v6466_v7 = vld [vmem:[%s8475_s26 + $0x28] ss:$20 sps:$4 sm:$0xff]  }
 0xab0   :  { %2650 = vmatpush1.bf16.msra.mxu1 %v2582_v39 }
 0xab1   :  { %v2298_v15 = vpop.f32.mrb[48].mxu1  ;;  %v7617_v22 = vpop.f32.mrb[40].mxu0  ;;  %2651 = vmatprep.subr.bf16.mxu1 %v2585_v19 }
 0xab2   :  { %v2300_v23 = vpop.f32.mrb[49].mxu1  ;;  %v7619_v24 = vpop.f32.mrb[41].mxu0 }
 0xab3   :  { %v2302_v25 = vpop.f32.mrb[50].mxu1  ;;  %v7621_v26 = vpop.f32.mrb[42].mxu0 }
 0xab4   :  { %v2586_v28 = vpack.c.bf16 %v2302_v25, %v2298_v15  ;;  %v2598_v27 = vpack.c.bf16 %v7621_v26, %v7617_v22  ;;  %v2304_v29 = vpop.f32.mrb[51].mxu1  ;;  %v2463_v30 = vpop.f32.mrb[43].mxu0  ;;  %2652 = vmatpush1.bf16.msra.mxu1 %v2584_v11  ;;  %v6474_v11 = vld [vmem:[%s8475_s26 + $0x7c] ss:$20 sps:$4 sm:$0xff]   ;;  %v6477_v22 = vld [vmem:[%s8475_s26 + $0xa4] ss:$20 sps:$4 sm:$0xff]  }
 0xab5   :  { %v2587_v48 = vpack.c.bf16 %v2304_v29, %v2300_v23  ;;  %v2599_v31 = vpack.c.bf16 %v2463_v30, %v7619_v24  ;;  %v6480_v23 = vld [vmem:[%s8475_s26 + $0xc] ss:$20 sps:$4 sm:$0xff]   ;;  %v6478_v25 = vld [vmem:[%s8475_s26 + $0x8] ss:$20 sps:$4 sm:$0xff]   ;;  %v6484_v29 = vld [vmem:[%s8475_s26 + $0x30] ss:$20 sps:$4 sm:$0xff]  }
 0xab6   :  { %v6475_v24 = vld [vmem:[%s8475_s26 + $0xa0] ss:$20 sps:$4 sm:$0xff]  }
 0xab7   :  { %2653 = vmatprep.subr.bf16.mxu1 %v2587_v48  ;;  %v6483_v26 = vld [vmem:[%s8475_s26 + $0xcc] ss:$20 sps:$4 sm:$0xff]   ;;  %v6489_v30 = vld [vmem:[%s8475_s26 + $0xf4] ss:$20 sps:$4 sm:$0xff]   ;;  %v6492_v48 = vld [vmem:[%s8475_s26 + $0x5c] ss:$20 sps:$4 sm:$0xff]  }
 0xab8   :  { %2654 = vmatpush1.bf16.msra.mxu1 %v2586_v28  ;;  %v6486_v28 = vld [vmem:[%s8475_s26 + $0x34] ss:$20 sps:$4 sm:$0xff]  }
 0xab9   :  { %v2394_v32 = vpop.f32.mrb[52].mxu1  ;;  %v2553_v33 = vpop.f32.mrb[44].mxu0  ;;  %2655 = vmatprep.subr.bf16.mxu1 %v2589_v55 }
 0xaba   :  { %v2396_v35 = vpop.f32.mrb[53].mxu1  ;;  %v2555_v36 = vpop.f32.mrb[45].mxu0 }
 0xabb   :  { %v2398_v37 = vpop.f32.mrb[54].mxu1  ;;  %v2557_v38 = vpop.f32.mrb[46].mxu0 }
 0xabc   :  { %v2592_v39 = vpack.c.bf16 %v2398_v37, %v2394_v32  ;;  %v2604_v40 = vpack.c.bf16 %v2557_v38, %v2553_v33  ;;  %v2400_v41 = vpop.f32.mrb[55].mxu1  ;;  %v2559_v42 = vpop.f32.mrb[47].mxu0  ;;  %2656 = vmatpush1.bf16.msra.mxu1 %v2588_v52  ;;  %v6490_v32 = vld [vmem:[%s8475_s26 + $0x58] ss:$20 sps:$4 sm:$0xff]   ;;  %v6495_v33 = vld [vmem:[%s8475_s26 + $0x11c] ss:$20 sps:$4 sm:$0xff]  }
 0xabd   :  { %v2593_v43 = vpack.c.bf16 %v2400_v41, %v2396_v35  ;;  %v2605_v44 = vpack.c.bf16 %v2559_v42, %v2555_v36  ;;  %2657 = vmatprep.subr.bf16.mxu1 %v2591_v4  ;;  %v6498_v35 = vld [vmem:[%s8475_s26 + $0x84] ss:$20 sps:$4 sm:$0xff]   ;;  %v6496_v37 = vld [vmem:[%s8475_s26 + $0x80] ss:$20 sps:$4 sm:$0xff]   ;;  %v6502_v41 = vld [vmem:[%s8475_s26 + $0xa8] ss:$20 sps:$4 sm:$0xff]  }
 0xabe   :  { %v6493_v36 = vld [vmem:[%s8475_s26 + $0x118] ss:$20 sps:$4 sm:$0xff]  }
 0xabf   :  { %2680 = vmatprep.subr.bf16.mxu0 %v2605_v44  ;;  %v6501_v38 = vld [vmem:[%s8475_s26 + $0x144] ss:$20 sps:$4 sm:$0xff]   ;;  %v6507_v42 = vld [vmem:[%s8475_s26 + $0x16c] ss:$20 sps:$4 sm:$0xff]   ;;  %v6505_v44 = vld [vmem:[%s8475_s26 + $0x168] ss:$20 sps:$4 sm:$0xff]  }
 0xac0   :  { %2658 = vmatpush1.bf16.msra.mxu1 %v2590_v0  ;;  %2681 = vmatpush1.bf16.msra.mxu0 %v2604_v40  ;;  %v6468_v0 = vld [vmem:[%s8475_s26 + $0x2c] ss:$20 sps:$4 sm:$0xff]  }
 0xac1   :  { %v2404_v46 = vpop.f32.mrb[56].mxu1  ;;  %v2563_v47 = vpop.f32.mrb[48].mxu0  ;;  %2659 = vmatprep.subr.bf16.mxu1 %v2593_v43  ;;  %v6499_v40 = vld [vmem:[%s8475_s26 + $0x140] ss:$20 sps:$4 sm:$0xff]  }
 0xac2   :  { %v2406_v49 = vpop.f32.mrb[57].mxu1  ;;  %v2565_v51 = vpop.f32.mrb[49].mxu0  ;;  %v6510_v43 = vld [vmem:[%s8475_s26 + $0xd4] ss:$20 sps:$4 sm:$0xff]  }
 0xac3   :  { %v2408_v53 = vpop.f32.mrb[58].mxu1  ;;  %v2567_v54 = vpop.f32.mrb[50].mxu0 }
 0xac4   :  { %v2594_v50 = vpack.c.bf16 %v2408_v53, %v2404_v46  ;;  %v2606_v52 = vpack.c.bf16 %v2567_v54, %v2563_v47  ;;  %v2410_v55 = vpop.f32.mrb[59].mxu1  ;;  %v2569_v56 = vpop.f32.mrb[51].mxu0  ;;  %2660 = vmatpush1.bf16.msra.mxu1 %v2592_v39  ;;  %v6504_v39 = vld [vmem:[%s8475_s26 + $0xac] ss:$20 sps:$4 sm:$0xff]   ;;  %v6508_v46 = vld [vmem:[%s8475_s26 + $0xd0] ss:$20 sps:$4 sm:$0xff]  }
 0xac5   :  { %v2595_v58 = vpack.c.bf16 %v2410_v55, %v2406_v49  ;;  %v2607_v59 = vpack.c.bf16 %v2569_v56, %v2565_v51  ;;  %v6513_v47 = vld [vmem:[%s8475_s26 + $0x194] ss:$20 sps:$4 sm:$0xff]   ;;  %v6516_v49 = vld [vmem:[%s8475_s26 + $0xfc] ss:$20 sps:$4 sm:$0xff]   ;;  %v6514_v53 = vld [vmem:[%s8475_s26 + $0xf8] ss:$20 sps:$4 sm:$0xff]  }
 0xac6   :  { %v6511_v51 = vld [vmem:[%s8475_s26 + $0x190] ss:$20 sps:$4 sm:$0xff]   ;;  %v6528_v56 = vld [vmem:[%s8475_s26 + $0x14c] ss:$20 sps:$4 sm:$0xff]  }
 0xac7   :  { %2661 = vmatprep.subr.bf16.mxu1 %v2595_v58  ;;  %2682 = vmatprep.subr.bf16.mxu0 %v2607_v59  ;;  %v6519_v54 = vld [vmem:[%s8475_s26 + $0x1bc] ss:$20 sps:$4 sm:$0xff]   ;;  %v6525_v55 = vld [vmem:[%s8475_s26 + $0x1e4] ss:$20 sps:$4 sm:$0xff]   ;;  %v6523_v58 = vld [vmem:[%s8475_s26 + $0x1e0] ss:$20 sps:$4 sm:$0xff]  }
 0xac8   :  { %2662 = vmatpush1.bf16.msra.mxu1 %v2594_v50  ;;  %2683 = vmatpush1.bf16.msra.mxu0 %v2606_v52  ;;  %v6517_v50 = vld [vmem:[%s8475_s26 + $0x1b8] ss:$20 sps:$4 sm:$0xff]   ;;  %v6520_v52 = vld [vmem:[%s8475_s26 + $0x120] ss:$20 sps:$4 sm:$0xff]   ;;  %v6526_v59 = vld [vmem:[%s8475_s26 + $0x148] ss:$20 sps:$4 sm:$0xff]  }
 0xac9   :  { %v2500_v63 = vpop.f32.mrb[60].mxu1  ;;  %2663 = vmatprep.subr.bf16.mxu1 %v2597_v21  ;;  %3271 = vmatprep.subr.bf16.mxu0 %v6465_v60  ;;  %v6472_v21 = vld [vmem:[%s8475_s26 + $0x78] ss:$20 sps:$4 sm:$0xff]  }
 0xaca   :  { %v2502_v1 = vpop.f32.mrb[61].mxu1  ;;  %v6531_v60 = vld [vmem:[%s8475_s26 + $0x20c] ss:$20 sps:$4 sm:$0xff]  }
 0xacb   :  { %v2504_v3 = vpop.f32.mrb[62].mxu1  ;;  %5633 = vmatmul.mubr.msk.bf16.vlgmr.msra.gmra.mrb[52].mxu0 %vm1243_vm12, %v2633_v16  ;;  %v6529_v16 = vld [vmem:[%s8475_s26 + $0x208] ss:$20 sps:$4 sm:$0xff]  }
 0xacc   :  { %v2600_v4 = vpack.c.bf16 %v2504_v3, %v2500_v63  ;;  %v2506_v5 = vpop.f32.mrb[63].mxu1  ;;  %2664 = vmatpush1.bf16.msra.mxu1 %v2596_v12  ;;  %3272 = vmatpush1.bf16.msra.mxu0 %v6463_v62  ;;  %v6532_v62 = vld [vmem:[%s8475_s26 + $0x170] ss:$20 sps:$4 sm:$0xff]   ;;  %v6537_v63 = vld [vmem:[%s8475_s26 + $0x234] ss:$20 sps:$4 sm:$0xff]  }
 0xacd   :  { %v2601_v8 = vpack.c.bf16 %v2506_v5, %v2502_v1  ;;  %2665 = vmatprep.subr.bf16.mxu1 %v2599_v31  ;;  %3273 = vmatprep.subr.bf16.mxu0 %v6468_v0  ;;  %v6487_v31 = vld [vmem:[%s8475_s26 + $0xf0] ss:$20 sps:$4 sm:$0xff]   ;;  %v6538_v3 = vld [vmem:[%s8475_s26 + $0x198] ss:$20 sps:$4 sm:$0xff]  }
 0xace   :  { %3303 = vmatprep.mubr.bf16.mxu0 %v7647_v2  ;;  %v6540_v0 = vld [vmem:[%s8475_s26 + $0x19c] ss:$20 sps:$4 sm:$0xff]   ;;  %v6546_v5 = vld [vmem:[%s8475_s26 + $0x1c4] ss:$20 sps:$4 sm:$0xff]  }
 0xacf   :  { %v6535_v1 = vld [vmem:[%s8475_s26 + $0x230] ss:$20 sps:$4 sm:$0xff]  }
 0xad0   :  { %2666 = vmatpush1.bf16.msra.mxu1 %v2598_v27  ;;  %3274 = vmatpush1.bf16.msra.mxu0 %v6466_v7  ;;  %v6481_v27 = vld [vmem:[%s8475_s26 + $0xc8] ss:$20 sps:$4 sm:$0xff]   ;;  %v6541_v7 = vld [vmem:[%s8475_s26 + $0x258] ss:$20 sps:$4 sm:$0xff]  }
 0xad1   :  { %v2510_v10 = vpop.f32.mrb[64].mxu1  ;;  %2667 = vmatprep.subr.bf16.mxu1 %v2601_v8  ;;  %3275 = vmatprep.subr.bf16.mxu0 %v6471_v9  ;;  %v6544_v8 = vld [vmem:[%s8475_s26 + $0x1c0] ss:$20 sps:$4 sm:$0xff]  }
 0xad2   :  { %v2512_v12 = vpop.f32.mrb[65].mxu1  ;;  %v6550_v9 = vld [vmem:[%s8475_s26 + $0x1ec] ss:$20 sps:$4 sm:$0xff]  }
 0xad3   :  { %v2514_v13 = vpop.f32.mrb[66].mxu1 }
 0xad4   :  { %v2602_v18 = vpack.c.bf16 %v2514_v13, %v2510_v10  ;;  %v2516_v19 = vpop.f32.mrb[67].mxu1  ;;  %2668 = vmatpush1.bf16.msra.mxu1 %v2600_v4  ;;  %3276 = vmatpush1.bf16.msra.mxu0 %v6469_v6  ;;  %v6543_v4 = vld [vmem:[%s8475_s26 + $0x25c] ss:$20 sps:$4 sm:$0xff]   ;;  %v2757_v10 = vpack.c.bf16 %v7634_v45, %v7634_v45  ;;  %v6553_v13 = vld [vmem:[%s8475_s26 + $0x214] ss:$20 sps:$4 sm:$0xff]  }
 0xad5   :  { %v2603_v15 = vpack.c.bf16 %v2516_v19, %v2512_v12  ;;  %3277 = vmatprep.subr.bf16.mxu0 %v6474_v11  ;;  %v6560_v6 = vld [vmem:[%s8475_s26 + $0x150] ss:$20 sps:$4 sm:$0xff]   ;;  %v6548_v11 = vld [vmem:[%s8475_s26 + $0x1e8] ss:$20 sps:$4 sm:$0xff]   ;;  %v6562_v45 = vld [vmem:[%s8475_s26 + $0x178] ss:$20 sps:$4 sm:$0xff]  }
 0xad6   :  { %v6561_v12 = vld [vmem:[%s8475_s26 + $0x10] ss:$20 sps:$4 sm:$0xff]   ;;  %v6563_v19 = vld [vmem:[%s8475_s26 + $0x38] ss:$20 sps:$4 sm:$0xff]  }
 0xad7   :  { %2669 = vmatprep.subr.bf16.mxu1 %v2603_v15  ;;  %v6564_v15 = vld [vmem:[%s8475_s26 + $0x1a0] ss:$20 sps:$4 sm:$0xff]  }
 0xad8   :  { %2670 = vmatpush1.bf16.msra.mxu1 %v2602_v18  ;;  %3278 = vmatpush1.bf16.msra.mxu0 %v6472_v21  ;;  %v6551_v18 = vld [vmem:[%s8475_s26 + $0x210] ss:$20 sps:$4 sm:$0xff]  }
 0xad9   :  { %3279 = vmatprep.subr.bf16.mxu0 %v6477_v22  ;;  %3312 = vmatprep.subr.bf16.mxu1 %v6480_v23  ;;  %v6556_v21 = vld [vmem:[%s8475_s26 + $0x23c] ss:$20 sps:$4 sm:$0xff]   ;;  %v6554_v22 = vld [vmem:[%s8475_s26 + $0x238] ss:$20 sps:$4 sm:$0xff]   ;;  %v6565_v23 = vld [vmem:[%s8475_s26 + $0x60] ss:$20 sps:$4 sm:$0xff]  }
 0xadb   :  { %2672 = vmatmul.mubr.bf16.vlgmr.msra.gmra.mrb[68].mxu1 %v2625_v14  ;;  %v6522_v14 = vld [vmem:[%s8475_s26 + $0x124] ss:$20 sps:$4 sm:$0xff]  }
 0xadc   :  { %3280 = vmatpush1.bf16.msra.mxu0 %v6475_v24  ;;  %3313 = vmatpush1.bf16.msra.mxu1 %v6478_v25  ;;  %v6559_v24 = vld [vmem:[%s8475_s26 + $0x264] ss:$20 sps:$4 sm:$0xff]   ;;  %v6557_v25 = vld [vmem:[%s8475_s26 + $0x260] ss:$20 sps:$4 sm:$0xff]  }
 0xadd   :  { %3281 = vmatprep.subr.bf16.mxu0 %v6483_v26  ;;  %3314 = vmatprep.subr.bf16.mxu1 %v6486_v28  ;;  %v6567_v26 = vld [vmem:[%s8475_s26 + $0x88] ss:$20 sps:$4 sm:$0xff]   ;;  %v6568_v28 = vld [vmem:[%s8475_s26 + $0x1f0] ss:$20 sps:$4 sm:$0xff]  }
 0xade   :  { %3344 = vmatprep.mubr.bf16.mxu1 %v7647_v2 }
 0xae0   :  { %3282 = vmatpush1.bf16.msra.mxu0 %v6481_v27  ;;  %3315 = vmatpush1.bf16.msra.mxu1 %v6484_v29  ;;  %v6569_v27 = vld [vmem:[%s8475_s26 + $0xb0] ss:$20 sps:$4 sm:$0xff]   ;;  %v6570_v29 = vld [vmem:[%s8475_s26 + $0x218] ss:$20 sps:$4 sm:$0xff]  }
 0xae1   :  { %3283 = vmatprep.subr.bf16.mxu0 %v6489_v30  ;;  %3316 = vmatprep.subr.bf16.mxu1 %v6492_v48  ;;  %v6571_v30 = vld [vmem:[%s8475_s26 + $0xd8] ss:$20 sps:$4 sm:$0xff]   ;;  %v6572_v48 = vld [vmem:[%s8475_s26 + $0x240] ss:$20 sps:$4 sm:$0xff]  }
 0xae4   :  { %3284 = vmatpush1.bf16.msra.mxu0 %v6487_v31  ;;  %3317 = vmatpush1.bf16.msra.mxu1 %v6490_v32  ;;  %v6573_v31 = vld [vmem:[%s8475_s26 + $0x100] ss:$20 sps:$4 sm:$0xff]   ;;  %v6574_v32 = vld [vmem:[%s8475_s26 + $0x268] ss:$20 sps:$4 sm:$0xff]  }
 0xae5   :  { %3285 = vmatprep.subr.bf16.mxu0 %v6495_v33  ;;  %3318 = vmatprep.subr.bf16.mxu1 %v6498_v35  ;;  %v6575_v33 = vld [vmem:[%s8475_s26 + $0x128] ss:$20 sps:$4 sm:$0xff]  }
 0xae8   :  { %3286 = vmatpush1.bf16.msra.mxu0 %v6493_v36  ;;  %3319 = vmatpush1.bf16.msra.mxu1 %v6496_v37 }
 0xae9   :  { %3287 = vmatprep.subr.bf16.mxu0 %v6501_v38  ;;  %3320 = vmatprep.subr.bf16.mxu1 %v6504_v39 }
 0xaec   :  { %3288 = vmatpush1.bf16.msra.mxu0 %v6499_v40  ;;  %3321 = vmatpush1.bf16.msra.mxu1 %v6502_v41 }
 0xaed   :  { %3289 = vmatprep.subr.bf16.mxu0 %v6507_v42  ;;  %3322 = vmatprep.subr.bf16.mxu1 %v6510_v43 }
 0xaf0   :  { %3290 = vmatpush1.bf16.msra.mxu0 %v6505_v44  ;;  %3323 = vmatpush1.bf16.msra.mxu1 %v6508_v46 }
 0xaf1   :  { %3291 = vmatprep.subr.bf16.mxu0 %v6513_v47  ;;  %3324 = vmatprep.subr.bf16.mxu1 %v6516_v49 }
 0xaf4   :  { %3292 = vmatpush1.bf16.msra.mxu0 %v6511_v51  ;;  %3325 = vmatpush1.bf16.msra.mxu1 %v6514_v53 }
 0xaf5   :  { %3293 = vmatprep.subr.bf16.mxu0 %v6519_v54  ;;  %3326 = vmatprep.subr.bf16.mxu1 %v6522_v14 }
 0xaf8   :  { %3294 = vmatpush1.bf16.msra.mxu0 %v6517_v50  ;;  %3327 = vmatpush1.bf16.msra.mxu1 %v6520_v52 }
 0xaf9   :  { %3295 = vmatprep.subr.bf16.mxu0 %v6525_v55  ;;  %3328 = vmatprep.subr.bf16.mxu1 %v6528_v56 }
 0xafc   :  { %3296 = vmatpush1.bf16.msra.mxu0 %v6523_v58  ;;  %3329 = vmatpush1.bf16.msra.mxu1 %v6526_v59 }
 0xafd   :  { %3297 = vmatprep.subr.bf16.mxu0 %v6531_v60  ;;  %3330 = vmatprep.subr.bf16.mxu1 %v6534_v61  ;;  %v3428_v60 = vld [vmem:[%s8477_s6] sm:$0xff] }
 0xb00   :  { %3298 = vmatpush1.bf16.msra.mxu0 %v6529_v16  ;;  %3331 = vmatpush1.bf16.msra.mxu1 %v6532_v62 }
 0xb01   :  { %3299 = vmatprep.subr.bf16.mxu0 %v6537_v63  ;;  %3332 = vmatprep.subr.bf16.mxu1 %v6540_v0 }
 0xb04   :  { %3300 = vmatpush1.bf16.msra.mxu0 %v6535_v1  ;;  %3333 = vmatpush1.bf16.msra.mxu1 %v6538_v3 }
 0xb05   :  { %3301 = vmatprep.subr.bf16.mxu0 %v6543_v4  ;;  %3334 = vmatprep.subr.bf16.mxu1 %v6546_v5 }
 0xb08   :  { %3302 = vmatpush1.bf16.msra.mxu0 %v6541_v7  ;;  %3335 = vmatpush1.bf16.msra.mxu1 %v6544_v8 }
 0xb09   :  { %3336 = vmatprep.subr.bf16.mxu1 %v6550_v9  ;;  %5900 = vmatprep.subr.bf16.mxu0 %v6560_v6 }
 0xb0b   :  { %3304 = vmatmul.mubr.bf16.vlgmr.msra.gmra.mrb[56].mxu0 %v2757_v10 }
 0xb0c   :  { %3337 = vmatpush1.bf16.msra.mxu1 %v6548_v11  ;;  %5901 = vmatpush3.bf16.msra.mxu0 %v6561_v12 }
 0xb0d   :  { %3338 = vmatprep.subr.bf16.mxu1 %v6553_v13  ;;  %5902 = vmatprep.subr.bf16.mxu0 %v6562_v45 }
 0xb0e   :  { %3385 = vmatprep.mubr.bf16.mxu0 %v7647_v2  ;;  %v6566_v2 = vld [vmem:[%s8475_s26 + $0x1c8] ss:$20 sps:$4 sm:$0xff]   ;;  %s8482_s26 = smov 64  }
 0xb10   :  { %3339 = vmatpush1.bf16.msra.mxu1 %v6551_v18  ;;  %5903 = vmatpush3.bf16.msra.mxu0 %v6563_v19 }
 0xb11   :  { %3340 = vmatprep.subr.bf16.mxu1 %v6556_v21  ;;  %5904 = vmatprep.subr.bf16.mxu0 %v6564_v15 }
 0xb14   :  { %3341 = vmatpush1.bf16.msra.mxu1 %v6554_v22  ;;  %5905 = vmatpush3.bf16.msra.mxu0 %v6565_v23  ;;  %v6578_v23 = vld [vmem:[%s8478_s3 + $0x4] ss:$8 sps:$4 sm:$0xff]  }
 0xb15   :  { %3342 = vmatprep.subr.bf16.mxu1 %v6559_v24  ;;  %5906 = vmatprep.subr.bf16.mxu0 %v6566_v2  ;;  %v3429_v24 = vld [vmem:[%s8479_s22] sm:$0xf]  ;;  %s8487_s22 = smov 16  }
 0xb16   :  { %v6576_v2 = vld [vmem:[%s8478_s3] ss:$8 sps:$4 sm:$0xff]  }
 0xb18   :  { %3343 = vmatpush1.bf16.msra.mxu1 %v6557_v25  ;;  %5907 = vmatpush3.bf16.msra.mxu0 %v6567_v26  ;;  %v6579_v25 = vld [vmem:[%s8478_s3 + $0x10] ss:$8 sps:$4 sm:$0xff]   ;;  %v6584_v26 = vld [vmem:[%s8478_s3 + $0x24] ss:$8 sps:$4 sm:$0xff]  }
 0xb19   :  { %5908 = vmatprep.subr.bf16.mxu0 %v6568_v28  ;;  %6017 = vmatprep.subr.bf16.mxu1 %v6727_v20  ;;  %v6582_v28 = vld [vmem:[%s8478_s3 + $0x20] ss:$8 sps:$4 sm:$0xff]  }
 0xb1b   :  { %3345 = vmatmul.mubr.bf16.vlgmr.msra.gmra.mrb[72].mxu1 %v2757_v10 }
 0xb1c   :  { %5909 = vmatpush3.bf16.msra.mxu0 %v6569_v27  ;;  %6027 = vmatprep.mubr.msk.bf16.mxu1 %vm6728_vm0, %v6727_v20  ;;  %v6587_v27 = vld [vmem:[%s8478_s3 + $0x34] ss:$8 sps:$4 sm:$0xff]  }
 0xb1d   :  { %5910 = vmatprep.subr.bf16.mxu0 %v6570_v29  ;;  %v6585_v29 = vld [vmem:[%s8478_s3 + $0x30] ss:$8 sps:$4 sm:$0xff]  }
 0xb20   :  { %5911 = vmatpush3.bf16.msra.mxu0 %v6571_v30 }
 0xb21   :  { %5912 = vmatprep.subr.bf16.mxu0 %v6572_v48 }
 0xb24   :  { %5913 = vmatpush3.bf16.msra.mxu0 %v6573_v31 }
 0xb25   :  { %5914 = vmatprep.subr.bf16.mxu0 %v6574_v32 }
 0xb28   :  { %5915 = vmatpush3.bf16.msra.mxu0 %v6575_v33 }
 0xb29   :  { %6009 = vmatprep.subr.bf16.mxu0 %v6727_v20 }
 0xb2b   :  { %3386 = vmatmul.mubr.bf16.vlgmr.msra.gmra.mrb[60].mxu0 %v2757_v10 }
 0xb2c   :  { %6013 = vmatprep.mubr.msk.bf16.mxu0 %vm6728_vm0, %v6727_v20 }
 0xb9e   :  { %v2714_v35 = vpop.f32.mrb[52].mxu0 }
 0xb9f   :  { %v2716_v36 = vpop.f32.mrb[53].mxu0 }
 0xba0   :  { %v2718_v37 = vpop.f32.mrb[54].mxu0 }
 0xba1   :  { %v2719_v38 = vpop.f32.mrb[55].mxu0 }
 0xbae   :  { %v2673_v39 = vpop.f32.mrb[68].mxu1 }
 0xbaf   :  { %v7898_v40 = vadd.f32 %v2714_v35, %v2673_v39  ;;  %v2675_v41 = vpop.f32.mrb[69].mxu1 }
 0xbb0   :  { %v7900_v42 = vadd.f32 %v2716_v36, %v2675_v41  ;;  %v2677_v43 = vpop.f32.mrb[70].mxu1 }
 0xbb1   :  { %v2678_v44 = vpop.f32.mrb[71].mxu1 }
 0xbb2   :  { %v3603_v44 = vld [vmem:[%s8427_s5] sm:$0xff] }
 0xbde   :  { %v3305_v46 = vpop.f32.mrb[56].mxu0 }
 0xbdf   :  { %v3394_v47 = vrot.slane %v3305_v46, 5  ;;  %v3307_v49 = vpop.f32.mrb[57].mxu0 }
 0xbe0   :  { %v3401_v51 = vrot.slane %v3307_v49, 7  ;;  %v3309_v53 = vpop.f32.mrb[58].mxu0  ;;  %v3399_v3 = vrot.slane %v3307_v49, 2 }
 0xbe1   :  { %v3310_v54 = vpop.f32.mrb[59].mxu0 }
 0xbe2   :  { %v6170_v14 = vpack.i.bf16 %v3394_v47, %v3401_v51 }
 0xbe4   :  { %6171 = vrot.lane.b32.xlu0 %v6170_v14, %s8482_s26 }
 0xbee   :  { %v3346_v50 = vpop.f32.mrb[72].mxu1 }
 0xbef   :  { %v3408_v52 = vrot.slane %v3346_v50, 1  ;;  %v3348_v55 = vpop.f32.mrb[73].mxu1  ;;  %v3406_v7 = vrot.slane %v3346_v50, 4 }
 0xbf0   :  { %v3415_v56 = vrot.slane %v3348_v55, 3  ;;  %v3350_v58 = vpop.f32.mrb[74].mxu1  ;;  %v3413_v11 = vrot.slane %v3348_v55, 6 }
 0xbf1   :  { %3409 = vrot.lane.b32.xlu1 %v3408_v52, %s8482_s26  ;;  %v3351_v59 = vpop.f32.mrb[75].mxu1 }
 0xbf2   :  { %3416 = vrot.lane.b32.xlu0 %v3415_v56, %s8482_s26 }
 0xbf5   :  { %3478 = vperm.xlu1 %6128, %v3428_v60  }
 0xbfe   :  { %v5916_v61 = vpop.f32.mrb[60].mxu0 }
 0xbff   :  { %v5917_v16 = vpop.f32.mrb[61].mxu0 }
 0xc00   :  { %v5918_v62 = vadd.f32 %v5917_v16, %v5916_v61  ;;  %v5919_v63 = vpop.f32.mrb[62].mxu0  ;;  %v6588_v61 = vld [vmem:[%s8480_s24] sm:$0xff]   ;;  %s8489_s24 = smov 124  }
 0xc01   :  { %v5920_v0 = vpop.f32.mrb[63].mxu0  ;;  %v6589_v16 = vld [vmem:[%s8428_s9] sm:$0xff]   ;;  %s8488_s9 = smov 120  }
 0xc56   :  { %v6172_v1 = vpop.permute.xlu0 %6171 }
 0xc57   :  { %v6174_v4 = vunpack.i.h.bf16 %v6172_v1  ;;  %v6173_v5 = vunpack.i.l.bf16 %v6172_v1 }
 0xc59   :  { %v3419_v8 = vsel %vm735_vm1, %v3305_v46, %v6174_v4  ;;  %v3421_v9 = vsel %vm739_vm3, %v3399_v3, %v6173_v5  ;;  %v3604_v46 = vld [vmem:[%s8427_s5 + $0x8] sm:$0xff] }
 0xc5a   :  { %v3420_v6 = vsel %vm737_vm2, %v3419_v8, %v3399_v3  ;;  %v3422_v10 = vsel %vm741_vm5, %v3421_v9, %v3406_v7 }
 0xc63   :  { %v3410_v12 = vpop.permute.xlu1 %3409 }
 0xc64   :  { %v3423_v13 = vsel %vm743_vm6, %v3422_v10, %v3410_v12  ;;  %v3424_v45 = vsel %vm745_vm7, %v3410_v12, %v3413_v11  ;;  %v3417_v18 = vpop.permute.xlu0 %3416 }
 0xc65   :  { %v3426_v19 = vpack.c.bf16 %v3423_v13, %v3420_v6  ;;  %v3425_v21 = vsel %vm747_vm4, %v3424_v45, %v3417_v18  ;;  %v3786_v18 = vld [vmem:[%s8429_s8 + $0x8] sm:$0xff] }
 0xc66   :  { %v3427_v15 = vpack.c.bf16 %v5918_v62, %v3425_v21  ;;  %v3788_v21 = vld [vmem:[%s8429_s8 + $0x18] sm:$0xff] }
 0xc67   :  { %6010 = vmatpush3.bf16.msra.mxu0 %v3426_v19  ;;  %v3785_v19 = vld [vmem:[%s8429_s8] sm:$0xff] }
 0xc68   :  { %v3434_v22 = vand.u32 %v3427_v15, %v7120_v57  ;;  %6011 = vmatprep.subr.bf16.mxu0 %v6727_v20  ;;  %v6581_v57 = vld [vmem:[%s8478_s3 + $0x14] ss:$8 sps:$4 sm:$0xff]   ;;  %s8483_s3 = smov 112  }
 0xc69   :  { %v3787_v15 = vld [vmem:[%s8429_s8 + $0x10] sm:$0xff] }
 0xc6b   :  { %6012 = vmatpush3.bf16.msra.mxu0 %v3434_v22  ;;  %v6590_v22 = vld [vmem:[%s8431_s7 + $0x4] ss:$8 sps:$4 sm:$0xff]  }
 0xc6c   :  { %3535 = vmatprep.subr.bf16.mxu0 %v6578_v23  ;;  %v3895_v23 = vld [vmem:[%s8430_s11 + $0x8] sm:$0xff] }
 0xc6e   :  { %6014 = vmatmul.mubr.msk.bf16.vlgmr.msra.gmra.mrb[64].mxu0 %vm753_vm8, %v3429_v24  ;;  %v3894_v24 = vld [vmem:[%s8430_s11] sm:$0xff] }
 0xc6f   :  { %3536 = vmatpush1.bf16.msra.mxu0 %v6576_v2  ;;  %3567 = vmatprep.mubr.bf16.mxu0 %v6730_v34  ;;  %v3897_v2 = vld [vmem:[%s8430_s11 + $0x18] sm:$0xff] }
 0xc70   :  { %3537 = vmatprep.subr.bf16.mxu0 %v6581_v57  ;;  %v3896_v57 = vld [vmem:[%s8430_s11 + $0x10] sm:$0xff] }
 0xc73   :  { %3538 = vmatpush1.bf16.msra.mxu0 %v6579_v25  ;;  %v4055_v25 = vld [vmem:[%s8432_s13 + $0x8] sm:$0xff] }
 0xc74   :  { %3539 = vmatprep.subr.bf16.mxu0 %v6584_v26  ;;  %v3479_v30 = vpop.permute.xlu1 %3478  ;;  %v4054_v26 = vld [vmem:[%s8432_s13] sm:$0xff] }
 0xc77   :  { %3540 = vmatpush1.bf16.msra.mxu0 %v6582_v28  ;;  %v4057_v28 = vld [vmem:[%s8432_s13 + $0x18] sm:$0xff] }
 0xc78   :  { %3541 = vmatprep.subr.bf16.mxu0 %v6587_v27  ;;  %v4056_v27 = vld [vmem:[%s8432_s13 + $0x10] sm:$0xff] }
 0xc7b   :  { %3542 = vmatpush1.bf16.msra.mxu0 %v6585_v29  ;;  %v4221_v29 = vld [vmem:[%s8433_s15 + $0x8] sm:$0xff] }
 0xc7c   :  { %6031 = vmatprep.subr.bf16.mxu0 %v6727_v20 }
 0xd41   :  { %v3470_v48 = vpop.f32.mrb[64].mxu0 }
 0xd42   :  { %v3481_v31 = vadd.f32 %v3479_v30, %v3470_v48  ;;  %v6015_v32 = vpop.f32.mrb[65].mxu0  ;;  %v4220_v30 = vld [vmem:[%s8433_s15] sm:$0xff]  ;;  %v4223_v48 = vld [vmem:[%s8433_s15 + $0x18] sm:$0xff] }
 0xd43   :  { %v3473_v33 = vpop.f32.mrb[66].mxu0 }
 0xd44   :  { %v3482_v35 = vmax.f32 %v3481_v31, 0.0  ;;  %v6016_v36 = vpop.f32.mrb[67].mxu0  ;;  %v4222_v31 = vld [vmem:[%s8433_s15 + $0x10] sm:$0xff] }
 0xd46   :  { %v7947_v37 = vpack.c.bf16 %v3482_v35, %v3482_v35 }
 0xd48   :  { %5727 = vmatmul.mubr.msk.bf16.vlgmr.msra.gmra.mrb[68].mxu0 %vm858_vm9, %v7947_v37 }
 0xd49   :  { %6033 = vmatprep.mubr.msk.bf16.mxu0 %vm6728_vm0, %v6727_v20  ;;  %6032 = vmatpush3.bf16.msra.mxu0 %v6589_v16 }
 0xe1b   :  { %v3569_v38 = vpop.f32.mrb[68].mxu0 }
 0xe1c   :  { %3580 = vrot.lane.b32.xlu1 %v3569_v38, %s8481_s0  ;;  %3577 = vrot.lane.b32.xlu0 %v3569_v38, %s8483_s3  ;;  %v3571_v39 = vpop.f32.mrb[69].mxu0 }
 0xe1d   :  { %v3573_v41 = vpop.f32.mrb[70].mxu0  ;;  %v3602_v59 = vpack.c.bf16 %v3571_v39, %v3571_v39 }
 0xe1e   :  { %v3574_v43 = vpop.f32.mrb[71].mxu0 }
 0xe1f   :  { %v3616_v60 = vsel %vm741_vm5, %v3602_v59, 0 }
 0xe20   :  { %3586 = vrot.lane.b32.xlu1 %v3569_v38, %s8482_s26  ;;  %3583 = vrot.lane.b32.xlu0 %v3569_v38, %s8484_s1  ;;  %s8493_s1 = smov 100  }
 0xe24   :  { %3592 = vrot.lane.b32.xlu1 %v3569_v38, %s8485_s29  ;;  %3589 = vrot.lane.b32.xlu0 %v3569_v38, %s8486_s23 }
 0xe28   :  { %3661 = vperm.xlu1 %6128, %v3603_v44   ;;  %3595 = vrot.lane.b32.xlu0 %v3569_v38, %s8487_s22 }
 0xe2c   :  { %3666 = vperm.xlu0 %6129, %v3604_v46  }
 0xe8e   :  { %v3581_v47 = vpop.permute.xlu1 %3580  ;;  %v3578_v49 = vpop.permute.xlu0 %3577 }
 0xe8f   :  { %v3598_v51 = vpack.c.bf16 %v3578_v49, %v3569_v38 }
 0xe91   :  { %6018 = vmatpush3.bf16.msra.mxu1 %v3598_v51 }
 0xe92   :  { %v3584_v53 = vpop.permute.xlu0 %3583  ;;  %6019 = vmatprep.subr.bf16.mxu1 %v6727_v20  ;;  %v3587_v14 = vpop.permute.xlu1 %3586 }
 0xe93   :  { %v3599_v54 = vpack.c.bf16 %v3584_v53, %v3581_v47 }
 0xe95   :  { %6020 = vmatpush3.bf16.msra.mxu1 %v3599_v54 }
 0xe96   :  { %v3590_v50 = vpop.permute.xlu0 %3589  ;;  %6021 = vmatprep.subr.bf16.mxu1 %v6727_v20  ;;  %v3593_v55 = vpop.permute.xlu1 %3592 }
 0xe97   :  { %v3600_v52 = vpack.c.bf16 %v3590_v50, %v3587_v14 }
 0xe99   :  { %6022 = vmatpush3.bf16.msra.mxu1 %v3600_v52 }
 0xe9a   :  { %v3596_v56 = vpop.permute.xlu0 %3595  ;;  %6023 = vmatprep.subr.bf16.mxu1 %v6727_v20 }
 0xe9b   :  { %v3601_v58 = vpack.c.bf16 %v3596_v56, %v3593_v55 }
 0xe9d   :  { %6024 = vmatpush3.bf16.msra.mxu1 %v3601_v58 }
 0xe9e   :  { %6025 = vmatprep.subr.bf16.mxu1 %v6727_v20 }
 0xea1   :  { %6026 = vmatpush3.bf16.msra.mxu1 %v3616_v60 }
 0xea2   :  { %3817 = vmatprep.subr.bf16.mxu1 %v6730_v34 }
 0xea4   :  { %6028 = vmatmul.mubr.msk.bf16.vlgmr.msra.gmra.mrb[76].mxu1 %vm939_vm10, %v6588_v61 }
 0xea5   :  { %5736 = vmatprep.mubr.msk.bf16.mxu1 %vm1010_vm11, %v6590_v22 }
 0xea7   :  { %v3662_v62 = vpop.permute.xlu1 %3661 }
 0xeab   :  { %v3667_v1 = vpop.permute.xlu0 %3666 }
 0xf77   :  { %v3652_v63 = vpop.f32.mrb[76].mxu1 }
 0xf78   :  { %v3669_v0 = vadd.f32 %v3662_v62, %v3652_v63  ;;  %v6029_v20 = vpop.f32.mrb[77].mxu1 }
 0xf79   :  { %v3655_v3 = vpop.f32.mrb[78].mxu1 }
 0xf7a   :  { %v3670_v4 = vadd.f32 %v3667_v1, %v3655_v3  ;;  %v6030_v5 = vpop.f32.mrb[79].mxu1  ;;  %v3671_v7 = vmax.f32 %v3669_v0, 0.0 }
 0xf7c   :  { %v3672_v8 = vmax.f32 %v3670_v4, 0.0 }
 0xf7e   :  { %v7979_v9 = vpack.c.bf16 %v3672_v8, %v3671_v7 }
 0xf80   :  { %6034 = vmatmul.mubr.msk.bf16.vlgmr.msra.gmra.mrb[72].mxu0 %vm1010_vm11, %v7979_v9 }
0x1053   :  { %v3719_v6 = vpop.f32.mrb[72].mxu0 }
0x1054   :  { %v6035_v10 = vpop.f32.mrb[73].mxu0 }
0x1055   :  { %v3722_v11 = vpop.f32.mrb[74].mxu0 }
0x1056   :  { %v6036_v12 = vpop.f32.mrb[75].mxu0  ;;  %v6180_v13 = vpack.i.bf16 %v3722_v11, %v3719_v6  ;;  %v3776_v45 = vpack.c.bf16 %v3722_v11, %v3719_v6  ;;  %v6592_v6 = vld [vmem:[%s8431_s7] ss:$8 sps:$4 sm:$0xff]   ;;  %v6593_v11 = vld [vmem:[%s8431_s7 + $0x14] ss:$8 sps:$4 sm:$0xff]  }
0x1058   :  { %6181 = vrot.lane.b32.xlu0 %v6180_v13, %s8488_s9  ;;  %6176 = vrot.lane.b32.xlu1 %v6180_v13, %s8489_s24  ;;  %s8494_s24 = sld [smem:[#allocation8_spill]] }
0x1059   :  { %3818 = vmatpush1.bf16.msra.mxu1 %v3776_v45 }
0x105a   :  { %3819 = vmatprep.subr.bf16.mxu1 %v6730_v34 }
0x105c   :  { %6191 = vrot.lane.b32.xlu0 %v6180_v13, %s8483_s3  ;;  %6186 = vrot.lane.b32.xlu1 %v6180_v13, %s8490_s2 }
0x105e   :  { %v5276_v32 = vld [vmem:[%s8494_s24] sm:$0x3] }
0x105f   :  { %v2608_v33 = vld [vmem:[%s8494_s24] sm:$0x3] }
0x1060   :  { %6201 = vrot.lane.b32.xlu0 %v6180_v13, %s8491_s28  ;;  %6196 = vrot.lane.b32.xlu1 %v6180_v13, %s8492_s21 }
0x1064   :  { %6211 = vrot.lane.b32.xlu0 %v6180_v13, %s8481_s0  ;;  %6206 = vrot.lane.b32.xlu1 %v6180_v13, %s8493_s1  ;;  %v6595_v13 = vld [vmem:[%s8431_s7 + $0x10] ss:$8 sps:$4 sm:$0xff]  }
0x1068   :  { %3873 = vperm.xlu0 %6129, %v3786_v18   ;;  %3868 = vperm.xlu1 %6128, %v3785_v19  }
0x106c   :  { %3883 = vperm.xlu0 %6129, %v3788_v21   ;;  %3878 = vperm.xlu1 %6128, %v3787_v15  }
0x1070   :  { %3976 = vperm.xlu0 %6129, %v3895_v23   ;;  %3971 = vperm.xlu1 %6128, %v3894_v24  }
0x1074   :  { %3986 = vperm.xlu0 %6129, %v3897_v2   ;;  %3981 = vperm.xlu1 %6128, %v3896_v57  }
0x1078   :  { %4134 = vperm.xlu0 %6129, %v4055_v25   ;;  %4129 = vperm.xlu1 %6128, %v4054_v26  }
0x107c   :  { %4144 = vperm.xlu0 %6129, %v4057_v28   ;;  %4139 = vperm.xlu1 %6128, %v4056_v27  }
0x1080   :  { %4302 = vperm.xlu0 %6129, %v4221_v29   ;;  %4297 = vperm.xlu1 %6128, %v4220_v30  }
0x1084   :  { %4312 = vperm.xlu0 %6129, %v4223_v48   ;;  %4307 = vperm.xlu1 %6128, %v4222_v31  }
0x1088   :  { %5391 = vperm.xlu0 %6129, %v5276_v32   ;;  %2723 = vperm.xlu1 %6128, %v2608_v33  }
0x10ca   :  { %v6182_v35 = vpop.permute.xlu0 %6181  ;;  %v6177_v36 = vpop.permute.xlu1 %6176 }
0x10cb   :  { %v6179_v38 = vunpack.i.h.bf16 %v6177_v36  ;;  %v6178_v39 = vunpack.i.l.bf16 %v6177_v36  ;;  %v6184_v41 = vunpack.i.h.bf16 %v6182_v35  ;;  %v6183_v43 = vunpack.i.l.bf16 %v6182_v35 }
0x10cd   :  { %v3777_v44 = vpack.c.bf16 %v6179_v38, %v6178_v39  ;;  %v3778_v47 = vpack.c.bf16 %v6184_v41, %v6183_v43 }
0x10ce   :  { %v6187_v46 = vpop.permute.xlu1 %6186  ;;  %v6192_v53 = vpop.permute.xlu0 %6191 }
0x10cf   :  { %3820 = vmatpush1.bf16.msra.mxu1 %v3777_v44  ;;  %v6189_v49 = vunpack.i.h.bf16 %v6187_v46  ;;  %v6188_v51 = vunpack.i.l.bf16 %v6187_v46  ;;  %v6194_v54 = vunpack.i.h.bf16 %v6192_v53  ;;  %v6193_v14 = vunpack.i.l.bf16 %v6192_v53 }
0x10d0   :  { %3821 = vmatprep.subr.bf16.mxu1 %v6730_v34 }
0x10d1   :  { %v3779_v50 = vpack.c.bf16 %v6189_v49, %v6188_v51  ;;  %v3780_v55 = vpack.c.bf16 %v6194_v54, %v6193_v14 }
0x10d2   :  { %v6197_v52 = vpop.permute.xlu1 %6196  ;;  %v6202_v59 = vpop.permute.xlu0 %6201 }
0x10d3   :  { %3822 = vmatpush1.bf16.msra.mxu1 %v3778_v47  ;;  %v6199_v56 = vunpack.i.h.bf16 %v6197_v52  ;;  %v6198_v58 = vunpack.i.l.bf16 %v6197_v52  ;;  %v6204_v60 = vunpack.i.h.bf16 %v6202_v59  ;;  %v6203_v61 = vunpack.i.l.bf16 %v6202_v59 }
0x10d4   :  { %3823 = vmatprep.subr.bf16.mxu1 %v6730_v34 }
0x10d5   :  { %v3781_v16 = vpack.c.bf16 %v6199_v56, %v6198_v58  ;;  %v3782_v63 = vpack.c.bf16 %v6204_v60, %v6203_v61  ;;  %v6597_v56 = vld [vmem:[%s8434_s10 + $0x8] sm:$0xff]  }
0x10d6   :  { %v6207_v62 = vpop.permute.xlu1 %6206  ;;  %v6212_v1 = vpop.permute.xlu0 %6211 }
0x10d7   :  { %3824 = vmatpush1.bf16.msra.mxu1 %v3779_v50  ;;  %v6209_v0 = vunpack.i.h.bf16 %v6207_v62  ;;  %v6208_v20 = vunpack.i.l.bf16 %v6207_v62  ;;  %v6214_v3 = vunpack.i.h.bf16 %v6212_v1  ;;  %v6213_v4 = vunpack.i.l.bf16 %v6212_v1 }
0x10d8   :  { %3825 = vmatprep.subr.bf16.mxu1 %v6730_v34 }
0x10d9   :  { %v3783_v5 = vpack.c.bf16 %v6209_v0, %v6208_v20  ;;  %v3784_v8 = vpack.c.bf16 %v6214_v3, %v6213_v4 }
0x10db   :  { %3826 = vmatpush1.bf16.msra.mxu1 %v3780_v55  ;;  %v3995_v55 = vld [vmem:[%s8435_s19] sm:$0x3] }
0x10dc   :  { %3827 = vmatprep.subr.bf16.mxu1 %v6730_v34  ;;  %v4003_v58 = vsel %vm745_vm7, %v3995_v55, 0 }
0x10df   :  { %3828 = vmatpush1.bf16.msra.mxu1 %v3781_v16 }
0x10e0   :  { %3829 = vmatprep.subr.bf16.mxu1 %v6730_v34 }
0x10e3   :  { %3830 = vmatpush1.bf16.msra.mxu1 %v3782_v63 }
0x10e4   :  { %3831 = vmatprep.subr.bf16.mxu1 %v6730_v34 }
0x10e7   :  { %v3869_v7 = vpop.permute.xlu1 %3868  ;;  %3832 = vmatpush1.bf16.msra.mxu1 %v3783_v5  ;;  %v3874_v33 = vpop.permute.xlu0 %3873 }
0x10e8   :  { %3833 = vmatprep.subr.bf16.mxu1 %v6730_v34 }
0x10eb   :  { %v3879_v10 = vpop.permute.xlu1 %3878  ;;  %3834 = vmatpush1.bf16.msra.mxu1 %v3784_v8  ;;  %v3884_v49 = vpop.permute.xlu0 %3883  ;;  %v6599_v8 = vld [vmem:[%s8437_s20] sm:$0xff]  }
0x10ee   :  { %3850 = vmatmul.mubr.bf16.vlgmr.msra.gmra.mrb[80].mxu1 %v6592_v6  ;;  %v6600_v6 = vld [vmem:[%s8436_s12 + $0x8] sm:$0xff]  }
0x10ef   :  { %v8063_v12 = vpop.permute.xlu1 %3971  ;;  %5737 = vmatprep.mubr.msk.bf16.mxu1 %vm1010_vm11, %v6593_v11  ;;  %v3977_v59 = vpop.permute.xlu0 %3976  ;;  %v6611_v11 = vld [vmem:[%s8439_s18 + $0x94] ss:$72 sps:$4 sm:$0xff]  }
0x10f3   :  { %v8069_v45 = vpop.permute.xlu1 %3981  ;;  %v3987_v16 = vpop.permute.xlu0 %3986 }
0x10f6   :  { %3858 = vmatmul.mubr.bf16.gmra.mrb[84].mxu1 %v6595_v13 }
0x10f7   :  { %v8071_v18 = vpop.permute.xlu1 %4129  ;;  %4795 = vmatprep.mubr.bf16.mxu1 %v6730_v34  ;;  %v4135_v13 = vpop.permute.xlu0 %4134 }
0x10fb   :  { %v8074_v19 = vpop.permute.xlu1 %4139 }
0x10ff   :  { %v8076_v21 = vpop.permute.xlu1 %4297 }
0x1103   :  { %v8078_v15 = vpop.permute.xlu1 %4307 }
0x1107   :  { %v2724_v22 = vpop.permute.xlu1 %2723 }
0x1108   :  { %v2726_v23 = vadd.f32 %v2724_v22, %v7898_v40  ;;  %v2727_v24 = vadd.f32 %v2724_v22, %v7900_v42  ;;  %v6596_v40 = vld [vmem:[%s8434_s10] sm:$0xff]  }
0x1109   :  { %6041 = vmatprep.mubr.msk.bf16.mxu0 %vm1243_vm12, %v6596_v40  ;;  %v6606_v40 = vld [vmem:[%s8439_s18 + $0x8] ss:$72 sps:$4 sm:$0xff]  }
0x110a   :  { %v5634_v2 = vmul.f32 -1.442695, %v2726_v23  ;;  %v5635_v57 = vmul.f32 -1.442695, %v2727_v24  ;;  %v4145_v23 = vpop.permute.xlu0 %4144 }
0x110c   :  { %6711 = vpow2.f32 %v5634_v2 }
0x110d   :  { %6713 = vpow2.f32 %v5635_v57 }
0x1116   :  { %v6712_v25 = vpop.eup %6711 }
0x1117   :  { %v6714_v26 = vpop.eup %6713  ;;  %v2734_v28 = vadd.f32 1.0, %v6712_v25 }
0x1118   :  { %v2735_v27 = vadd.f32 1.0, %v6714_v26 }
0x1119   :  { %6715 = vrcp.f32 %v2734_v28 }
0x111a   :  { %6717 = vrcp.f32 %v2735_v27 }
0x1123   :  { %v6716_v29 = vpop.eup %6715 }
0x1124   :  { %v6718_v30 = vpop.eup %6717 }
0x1125   :  { %v2742_v48 = vcombine.low %v6716_v29, %v6718_v30  ;;  %v6601_v30 = vld [vmem:[%s8438_s14] sm:$0xff]  }
0x1127   :  { %5636 = vst.sshfl [vmem:[%s8495_s25] sm:$0x33 pattern:$0x76325410] %v2742_v48  ;;  %v6608_v48 = vld [vmem:[%s8439_s18 + $0xc] ss:$72 sps:$4 sm:$0xff]  }
0x11c1   :  { %v3851_v42 = vpop.f32.mrb[80].mxu1 }
0x11c2   :  { %v3886_v31 = vadd.f32 %v3869_v7, %v3851_v42  ;;  %v3853_v32 = vpop.f32.mrb[81].mxu1  ;;  %v6598_v7 = vld [vmem:[%s8436_s12] sm:$0xff]  }
0x11c3   :  { %v3854_v35 = vpop.f32.mrb[82].mxu1  ;;  %v6614_v42 = vld [vmem:[%s8439_s18 + $0x9c] ss:$72 sps:$4 sm:$0xff]   ;;  %v6620_v32 = vld [vmem:[%s8439_s18 + $0x12c] ss:$72 sps:$4 sm:$0xff]  }
0x11c4   :  { %v3887_v36 = vadd.f32 %v3874_v33, %v3854_v35  ;;  %v3856_v38 = vpop.f32.mrb[83].mxu1  ;;  %v3890_v39 = vmax.f32 %v3886_v31, 0.0  ;;  %v6617_v31 = vld [vmem:[%s8439_s18 + $0x124] ss:$72 sps:$4 sm:$0xff]   ;;  %v6615_v33 = vld [vmem:[%s8439_s18 + $0x120] ss:$72 sps:$4 sm:$0xff]  }
0x11c5   :  { %v6618_v35 = vld [vmem:[%s8439_s18 + $0x128] ss:$72 sps:$4 sm:$0xff]   ;;  %v6626_v38 = vld [vmem:[%s8439_s18 + $0x1bc] ss:$72 sps:$4 sm:$0xff]  }
0x11c6   :  { %v3891_v41 = vmax.f32 %v3887_v36, 0.0  ;;  %v6623_v36 = vld [vmem:[%s8439_s18 + $0x1b4] ss:$72 sps:$4 sm:$0xff]  }
0x11c8   :  { %v3902_v43 = vpack.c.bf16 %v3891_v41, %v3890_v39  ;;  %v6621_v39 = vld [vmem:[%s8439_s18 + $0x1b0] ss:$72 sps:$4 sm:$0xff]  }
0x11c9   :  { %v3859_v44 = vpop.f32.mrb[84].mxu1  ;;  %v6624_v41 = vld [vmem:[%s8439_s18 + $0x1b8] ss:$72 sps:$4 sm:$0xff]  }
0x11ca   :  { %v3888_v46 = vadd.f32 %v3879_v10, %v3859_v44  ;;  %v3861_v47 = vpop.f32.mrb[85].mxu1  ;;  %6037 = vmatprep.subr.bf16.mxu0 %v3902_v43  ;;  %v6603_v10 = vld [vmem:[%s8439_s18] ss:$72 sps:$4 sm:$0xff]   ;;  %v6632_v44 = vld [vmem:[%s8439_s18 + $0x1c] ss:$72 sps:$4 sm:$0xff]  }
0x11cb   :  { %v3862_v51 = vpop.f32.mrb[86].mxu1  ;;  %6038 = vmatpush3.bf16.msra.mxu0 %v3902_v43  ;;  %v6629_v43 = vld [vmem:[%s8439_s18 + $0x14] ss:$72 sps:$4 sm:$0xff]  }
0x11cc   :  { %v3889_v53 = vadd.f32 %v3884_v49, %v3862_v51  ;;  %v3864_v54 = vpop.f32.mrb[87].mxu1  ;;  %v3892_v14 = vmax.f32 %v3888_v46, 0.0  ;;  %v4303_v46 = vpop.permute.xlu0 %4302 }
0x11ce   :  { %v3893_v50 = vmax.f32 %v3889_v53, 0.0 }
0x11d0   :  { %v3903_v52 = vpack.c.bf16 %v3893_v50, %v3892_v14  ;;  %v4313_v51 = vpop.permute.xlu0 %4312 }
0x11d2   :  { %6039 = vmatprep.subr.bf16.mxu0 %v3903_v52 }
0x11d3   :  { %6040 = vmatpush3.bf16.msra.mxu0 %v3903_v52 }
0x11d4   :  { %6103 = vmatprep.subr.msk.bf16.mxu0 %vm745_vm7, %v3995_v55 }
0x11d6   :  { %6042 = vmatmul.mubr.msk.bf16.vlgmr.msra.gmra.mrb[76].mxu0 %vm1243_vm12, %v6597_v56 }
0x11d7   :  { %6046 = vmatpush3.bf16.msra.mxu0 %v4003_v58  ;;  %v6627_v58 = vld [vmem:[%s8439_s18 + $0x10] ss:$72 sps:$4 sm:$0xff]  }
0x11d8   :  { %6051 = vmatprep.subr.bf16.mxu0 %v7979_v9 }
0x12a9   :  { %v6043_v60 = vpop.f32.mrb[76].mxu0 }
0x12aa   :  { %v3954_v61 = vpop.f32.mrb[77].mxu0  ;;  %v3991_v63 = vadd.f32 %v6043_v60, %v8069_v45 }
0x12ab   :  { %v6044_v62 = vpop.f32.mrb[78].mxu0  ;;  %v3989_v1 = vadd.f32 %v8063_v12, %v3954_v61  ;;  %v6609_v12 = vld [vmem:[%s8439_s18 + $0x90] ss:$72 sps:$4 sm:$0xff]   ;;  %v6633_v61 = vld [vmem:[%s8439_s18 + $0xa0] ss:$72 sps:$4 sm:$0xff]  }
0x12ac   :  { %v3992_v0 = vadd.f32 %v6044_v62, %v3987_v16  ;;  %v3957_v20 = vpop.f32.mrb[79].mxu0  ;;  %v6636_v16 = vld [vmem:[%s8439_s18 + $0xa8] ss:$72 sps:$4 sm:$0xff]   ;;  %v6641_v62 = vld [vmem:[%s8439_s18 + $0x134] ss:$72 sps:$4 sm:$0xff]  }
0x12ad   :  { %v3990_v3 = vadd.f32 %v3977_v59, %v3957_v20  ;;  %v6630_v59 = vld [vmem:[%s8439_s18 + $0x18] ss:$72 sps:$4 sm:$0xff]  }
0x12ae   :  { %v3994_v4 = vpack.c.bf16 %v3992_v0, %v3991_v63  ;;  %v6644_v63 = vld [vmem:[%s8439_s18 + $0x13c] ss:$72 sps:$4 sm:$0xff]   ;;  %v6639_v0 = vld [vmem:[%s8439_s18 + $0x130] ss:$72 sps:$4 sm:$0xff]  }
0x12af   :  { %v3993_v5 = vpack.c.bf16 %v3990_v3, %v3989_v1  ;;  %v6642_v20 = vld [vmem:[%s8439_s18 + $0x138] ss:$72 sps:$4 sm:$0xff]   ;;  %v6647_v1 = vld [vmem:[%s8439_s18 + $0x1c4] ss:$72 sps:$4 sm:$0xff]  }
0x12b0   :  { %v6650_v3 = vld [vmem:[%s8439_s18 + $0x1cc] ss:$72 sps:$4 sm:$0xff]  }
0x12b1   :  { %6047 = vmatprep.mubr.msk.bf16.mxu0 %vm1326_vm13, %v3993_v5  ;;  %v6648_v5 = vld [vmem:[%s8439_s18 + $0x1c8] ss:$72 sps:$4 sm:$0xff]  }
0x12b2   :  { %6048 = vmatmul.mubr.msk.bf16.vlgmr.msra.gmra.mrb[80].mxu0 %vm1326_vm13, %v3994_v4  ;;  %v6645_v4 = vld [vmem:[%s8439_s18 + $0x1c0] ss:$72 sps:$4 sm:$0xff]  }
0x12b3   :  { %6052 = vmatpush3.bf16.msra.mxu0 %v7979_v9  ;;  %6053 = vmatprep.mubr.msk.bf16.mxu0 %vm1010_vm11, %v6598_v7  ;;  %v6605_v9 = vld [vmem:[%s8439_s18 + $0x4] ss:$72 sps:$4 sm:$0xff]  }
0x12b4   :  { %6057 = vmatprep.subr.bf16.mxu0 %v6599_v8  ;;  %4763 = vmatprep.subr.bf16.mxu1 %v6605_v9  ;;  %v6653_v7 = vld [vmem:[%s8439_s18 + $0x24] ss:$72 sps:$4 sm:$0xff]   ;;  %v6659_v9 = vld [vmem:[%s8439_s18 + $0xb4] ss:$72 sps:$4 sm:$0xff]  }
0x12b5   :  { %4764 = vmatpush1.bf16.msra.mxu1 %v6603_v10  ;;  %v6654_v10 = vld [vmem:[%s8439_s18 + $0x28] ss:$72 sps:$4 sm:$0xff]  }
0x12b6   :  { %4765 = vmatprep.subr.bf16.mxu1 %v6611_v11  ;;  %v6662_v11 = vld [vmem:[%s8439_s18 + $0xbc] ss:$72 sps:$4 sm:$0xff]  }
0x12b9   :  { %4766 = vmatpush1.bf16.msra.mxu1 %v6609_v12  ;;  %v6657_v12 = vld [vmem:[%s8439_s18 + $0xb0] ss:$72 sps:$4 sm:$0xff]  }
0x12ba   :  { %4767 = vmatprep.subr.bf16.mxu1 %v6617_v31  ;;  %v6687_v31 = vld [vmem:[%s8439_s18 + $0x150] ss:$72 sps:$4 sm:$0xff]  }
0x12bd   :  { %4768 = vmatpush1.bf16.msra.mxu1 %v6615_v33  ;;  %v6695_v33 = vld [vmem:[%s8439_s18 + $0x1e4] ss:$72 sps:$4 sm:$0xff]  }
0x12be   :  { %6054 = vmatmul.mubr.msk.bf16.vlgmr.msra.gmra.mrb[80].mxu0 %vm1010_vm11, %v6600_v6  ;;  %4769 = vmatprep.subr.bf16.mxu1 %v6623_v36  ;;  %v6651_v6 = vld [vmem:[%s8439_s18 + $0x20] ss:$72 sps:$4 sm:$0xff]  }
0x12bf   :  { %6058 = vmatpush3.bf16.msra.mxu0 %v6599_v8  ;;  %v6656_v8 = vld [vmem:[%s8439_s18 + $0x2c] ss:$72 sps:$4 sm:$0xff]   ;;  %v6693_v36 = vld [vmem:[%s8439_s18 + $0x1e0] ss:$72 sps:$4 sm:$0xff]  }
0x12c0   :  { %6104 = vmatprep.subr.msk.bf16.mxu0 %vm741_vm5, %v7947_v37 }
0x12c1   :  { %4770 = vmatpush1.bf16.msra.mxu1 %v6621_v39  ;;  %v6701_v39 = vld [vmem:[%s8439_s18 + $0x44] ss:$72 sps:$4 sm:$0xff]  }
0x12c2   :  { %4869 = vmatprep.subr.bf16.mxu1 %v6629_v43  ;;  %v6704_v43 = vld [vmem:[%s8439_s18 + $0xd4] ss:$72 sps:$4 sm:$0xff]  }
0x1391   :  { %v6055_v45 = vpop.f32.mrb[80].mxu0 }
0x1392   :  { %v4112_v22 = vpop.f32.mrb[81].mxu0  ;;  %v4149_v2 = vadd.f32 %v6055_v45, %v8074_v19  ;;  %v4244_v19 = vsel %vm741_vm5, %v7947_v37, 0  ;;  %v6612_v37 = vld [vmem:[%s8439_s18 + $0x98] ss:$72 sps:$4 sm:$0xff]   ;;  %v6665_v45 = vld [vmem:[%s8439_s18 + $0x144] ss:$72 sps:$4 sm:$0xff]  }
0x1393   :  { %v6056_v24 = vpop.f32.mrb[82].mxu0  ;;  %v4147_v26 = vadd.f32 %v8071_v18, %v4112_v22  ;;  %v6602_v18 = vld [vmem:[%s8438_s14 + $0x8] sm:$0xff]  }
0x1394   :  { %v4150_v57 = vadd.f32 %v6056_v24, %v4145_v23  ;;  %v4115_v25 = vpop.f32.mrb[83].mxu0  ;;  %v6668_v22 = vld [vmem:[%s8439_s18 + $0x14c] ss:$72 sps:$4 sm:$0xff]   ;;  %v6663_v23 = vld [vmem:[%s8439_s18 + $0x140] ss:$72 sps:$4 sm:$0xff]  }
0x1395   :  { %v4148_v28 = vadd.f32 %v4135_v13, %v4115_v25  ;;  %v6660_v13 = vld [vmem:[%s8439_s18 + $0xb8] ss:$72 sps:$4 sm:$0xff]   ;;  %v6666_v24 = vld [vmem:[%s8439_s18 + $0x148] ss:$72 sps:$4 sm:$0xff]  }
0x1396   :  { %v4156_v27 = vpack.c.bf16 %v4150_v57, %v4149_v2  ;;  %v6671_v2 = vld [vmem:[%s8439_s18 + $0x1d4] ss:$72 sps:$4 sm:$0xff]   ;;  %v6669_v25 = vld [vmem:[%s8439_s18 + $0x1d0] ss:$72 sps:$4 sm:$0xff]  }
0x1397   :  { %v4155_v29 = vpack.c.bf16 %v4148_v28, %v4147_v26  ;;  %v6674_v57 = vld [vmem:[%s8439_s18 + $0x1dc] ss:$72 sps:$4 sm:$0xff]   ;;  %v6672_v26 = vld [vmem:[%s8439_s18 + $0x1d8] ss:$72 sps:$4 sm:$0xff]  }
0x1398   :  { %v6677_v28 = vld [vmem:[%s8439_s18 + $0x34] ss:$72 sps:$4 sm:$0xff]  }
0x1399   :  { %6059 = vmatprep.mubr.msk.bf16.mxu0 %vm1010_vm11, %v4155_v29  ;;  %v6675_v29 = vld [vmem:[%s8439_s18 + $0x30] ss:$72 sps:$4 sm:$0xff]  }
0x139a   :  { %6060 = vmatmul.mubr.msk.bf16.vlgmr.msra.gmra.mrb[84].mxu0 %vm1010_vm11, %v4156_v27  ;;  %v6680_v27 = vld [vmem:[%s8439_s18 + $0x3c] ss:$72 sps:$4 sm:$0xff]  }
0x139b   :  { %6064 = vmatpush3.bf16.msra.mxu0 %v4244_v19  ;;  %6065 = vmatprep.mubr.msk.bf16.mxu0 %vm1569_vm14, %v6601_v30  ;;  %v6678_v30 = vld [vmem:[%s8439_s18 + $0x38] ss:$72 sps:$4 sm:$0xff]   ;;  %v6686_v19 = vld [vmem:[%s8439_s18 + $0xcc] ss:$72 sps:$4 sm:$0xff]  }
0x139c   :  { %4816 = vmatprep.subr.bf16.mxu0 %v6608_v48  ;;  %v6683_v48 = vld [vmem:[%s8439_s18 + $0xc4] ss:$72 sps:$4 sm:$0xff]  }
0x13a6   :  { %6066 = vmatmul.mubr.msk.bf16.vlgmr.msra.gmra.mrb[84].mxu0 %vm1569_vm14, %v6602_v18  ;;  %v6681_v18 = vld [vmem:[%s8439_s18 + $0xc0] ss:$72 sps:$4 sm:$0xff]  }
0x13a7   :  { %4817 = vmatpush1.bf16.msra.mxu0 %v6606_v40  ;;  %4848 = vmatprep.mubr.bf16.mxu0 %v6730_v34  ;;  %v6684_v40 = vld [vmem:[%s8439_s18 + $0xc8] ss:$72 sps:$4 sm:$0xff]  }
0x13a8   :  { %4818 = vmatprep.subr.bf16.mxu0 %v6614_v42  ;;  %v6689_v42 = vld [vmem:[%s8439_s18 + $0x154] ss:$72 sps:$4 sm:$0xff]  }
0x13ab   :  { %4819 = vmatpush1.bf16.msra.mxu0 %v6612_v37  ;;  %v6692_v37 = vld [vmem:[%s8439_s18 + $0x15c] ss:$72 sps:$4 sm:$0xff]  }
0x13ac   :  { %4820 = vmatprep.subr.bf16.mxu0 %v6620_v32  ;;  %v6690_v32 = vld [vmem:[%s8439_s18 + $0x158] ss:$72 sps:$4 sm:$0xff]  }
0x13af   :  { %4821 = vmatpush1.bf16.msra.mxu0 %v6618_v35  ;;  %v6698_v35 = vld [vmem:[%s8439_s18 + $0x1ec] ss:$72 sps:$4 sm:$0xff]  }
0x13b0   :  { %4822 = vmatprep.subr.bf16.mxu0 %v6626_v38  ;;  %v6696_v38 = vld [vmem:[%s8439_s18 + $0x1e8] ss:$72 sps:$4 sm:$0xff]  }
0x13b3   :  { %4823 = vmatpush1.bf16.msra.mxu0 %v6624_v41  ;;  %v6699_v41 = vld [vmem:[%s8439_s18 + $0x40] ss:$72 sps:$4 sm:$0xff]  }
0x13b4   :  { %4922 = vmatprep.subr.bf16.mxu0 %v6632_v44  ;;  %v6702_v44 = vld [vmem:[%s8439_s18 + $0xd0] ss:$72 sps:$4 sm:$0xff]  }
0x1479   :  { %v6067_v47 = vpop.f32.mrb[84].mxu0 }
0x147a   :  { %v4280_v49 = vpop.f32.mrb[85].mxu0  ;;  %v4317_v54 = vadd.f32 %v6067_v47, %v8078_v15  ;;  %v6635_v15 = vld [vmem:[%s8439_s18 + $0xa4] ss:$72 sps:$4 sm:$0xff]   ;;  %v6705_v47 = vld [vmem:[%s8439_s18 + $0x160] ss:$72 sps:$4 sm:$0xff]  }
0x147b   :  { %v6068_v53 = vpop.f32.mrb[86].mxu0  ;;  %v4315_v52 = vadd.f32 %v8076_v21, %v4280_v49  ;;  %v6638_v21 = vld [vmem:[%s8439_s18 + $0xac] ss:$72 sps:$4 sm:$0xff]  }
0x147c   :  { %v4318_v14 = vadd.f32 %v6068_v53, %v4313_v51  ;;  %v4283_v50 = vpop.f32.mrb[87].mxu0  ;;  %v6710_v49 = vld [vmem:[%s8439_s18 + $0x1f4] ss:$72 sps:$4 sm:$0xff]   ;;  %v6708_v51 = vld [vmem:[%s8439_s18 + $0x1f0] ss:$72 sps:$4 sm:$0xff]  }
0x147d   :  { %v4316_v55 = vadd.f32 %v4303_v46, %v4283_v50  ;;  %v6707_v46 = vld [vmem:[%s8439_s18 + $0x164] ss:$72 sps:$4 sm:$0xff]   ;;  %v8410_v53 = vld.sshfl [vmem:[%s8440_s16] sm:$0x13 pattern:$0x75316420] }
0x147e   :  { %v8188_v56 = vpack.c.bf16 %v4318_v14, %v4317_v54  ;;  %v5286_v54 = vcombine.high %v8410_v53, %v8410_v53 }
0x147f   :  { %v8196_v60 = vpack.c.bf16 %v4316_v55, %v4315_v52 }
0x1480   :  { %v5300_v14 = vrot.slane %v5286_v54, %v7591_v17 }
0x1481   :  { %5827 = vmatmul.mubr.msk.bf16.vlgmr.msra.gmra.mrb[88].mxu1 %vm858_vm9, %v8196_v60  ;;  %5829 = vmatmul.mubr.msk.bf16.vlgmr.msra.gmra.mrb[88].mxu0 %vm858_vm9, %v8196_v60 }
0x1482   :  { %4870 = vmatpush1.bf16.msra.mxu1 %v6627_v58  ;;  %4923 = vmatpush1.bf16.msra.mxu0 %v6630_v59 }
0x1483   :  { %4871 = vmatprep.subr.bf16.mxu1 %v6635_v15  ;;  %4924 = vmatprep.subr.bf16.mxu0 %v6638_v21 }
0x1484   :  { %4805 = vmatprep.mubr.bf16.mxu1 %v6730_v34  ;;  %4858 = vmatprep.mubr.bf16.mxu0 %v6730_v34 }
0x1486   :  { %4872 = vmatpush1.bf16.msra.mxu1 %v6633_v61  ;;  %4925 = vmatpush1.bf16.msra.mxu0 %v6636_v16 }
0x1487   :  { %4873 = vmatprep.subr.bf16.mxu1 %v6641_v62  ;;  %4926 = vmatprep.subr.bf16.mxu0 %v6644_v63 }
0x1489   :  { %5828 = vmatmul.mubr.msk.bf16.gmra.mrb[92].mxu1 %vm858_vm9, %v8188_v56  ;;  %5830 = vmatmul.mubr.msk.bf16.gmra.mrb[92].mxu0 %vm858_vm9, %v8188_v56 }
0x148a   :  { %4874 = vmatpush1.bf16.msra.mxu1 %v6639_v0  ;;  %4927 = vmatpush1.bf16.msra.mxu0 %v6642_v20 }
0x148b   :  { %4875 = vmatprep.subr.bf16.mxu1 %v6647_v1  ;;  %4928 = vmatprep.subr.bf16.mxu0 %v6650_v3 }
0x148c   :  { %4901 = vmatprep.mubr.bf16.mxu1 %v6730_v34  ;;  %4954 = vmatprep.mubr.bf16.mxu0 %v6730_v34 }
0x148e   :  { %4876 = vmatpush1.bf16.msra.mxu1 %v6645_v4  ;;  %4929 = vmatpush1.bf16.msra.mxu0 %v6648_v5 }
0x148f   :  { %4975 = vmatprep.subr.bf16.mxu1 %v6653_v7  ;;  %5028 = vmatprep.subr.bf16.mxu0 %v6656_v8 }
0x1491   :  { %5831 = vmatmul.mubr.msk.bf16.vlgmr.msra.gmra.mrb[96].mxu1 %vm858_vm9, %v8196_v60  ;;  %5833 = vmatmul.mubr.msk.bf16.vlgmr.msra.gmra.mrb[96].mxu0 %vm858_vm9, %v8196_v60 }
0x1492   :  { %4976 = vmatpush1.bf16.msra.mxu1 %v6651_v6  ;;  %5029 = vmatpush1.bf16.msra.mxu0 %v6654_v10 }
0x1493   :  { %4977 = vmatprep.subr.bf16.mxu1 %v6659_v9  ;;  %5030 = vmatprep.subr.bf16.mxu0 %v6662_v11 }
0x1494   :  { %4911 = vmatprep.mubr.bf16.mxu1 %v6730_v34  ;;  %4964 = vmatprep.mubr.bf16.mxu0 %v6730_v34 }
0x1496   :  { %4978 = vmatpush1.bf16.msra.mxu1 %v6657_v12  ;;  %5031 = vmatpush1.bf16.msra.mxu0 %v6660_v13 }
0x1497   :  { %4979 = vmatprep.subr.bf16.mxu1 %v6665_v45  ;;  %5032 = vmatprep.subr.bf16.mxu0 %v6668_v22 }
0x1499   :  { %5832 = vmatmul.mubr.msk.bf16.gmra.mrb[100].mxu1 %vm858_vm9, %v8188_v56  ;;  %5834 = vmatmul.mubr.msk.bf16.gmra.mrb[100].mxu0 %vm858_vm9, %v8188_v56 }
0x149a   :  { %4980 = vmatpush1.bf16.msra.mxu1 %v6663_v23  ;;  %5033 = vmatpush1.bf16.msra.mxu0 %v6666_v24 }
0x149b   :  { %4981 = vmatprep.subr.bf16.mxu1 %v6671_v2  ;;  %5034 = vmatprep.subr.bf16.mxu0 %v6674_v57 }
0x149c   :  { %5007 = vmatprep.mubr.bf16.mxu1 %v6730_v34  ;;  %5060 = vmatprep.mubr.bf16.mxu0 %v6730_v34 }
0x149e   :  { %4982 = vmatpush1.bf16.msra.mxu1 %v6669_v25  ;;  %5035 = vmatpush1.bf16.msra.mxu0 %v6672_v26 }
0x149f   :  { %5081 = vmatprep.subr.bf16.mxu1 %v6677_v28  ;;  %5134 = vmatprep.subr.bf16.mxu0 %v6680_v27 }
0x14a1   :  { %5835 = vmatmul.mubr.msk.bf16.vlgmr.msra.gmra.mrb[104].mxu1 %vm858_vm9, %v8196_v60  ;;  %5837 = vmatmul.mubr.msk.bf16.vlgmr.msra.gmra.mrb[104].mxu0 %vm858_vm9, %v8196_v60 }
0x14a2   :  { %5082 = vmatpush1.bf16.msra.mxu1 %v6675_v29  ;;  %5135 = vmatpush1.bf16.msra.mxu0 %v6678_v30 }
0x14a3   :  { %5083 = vmatprep.subr.bf16.mxu1 %v6683_v48  ;;  %5136 = vmatprep.subr.bf16.mxu0 %v6686_v19 }
0x14a4   :  { %5017 = vmatprep.mubr.bf16.mxu1 %v6730_v34  ;;  %5070 = vmatprep.mubr.bf16.mxu0 %v6730_v34 }
0x14a6   :  { %5084 = vmatpush1.bf16.msra.mxu1 %v6681_v18  ;;  %5137 = vmatpush1.bf16.msra.mxu0 %v6684_v40 }
0x14a7   :  { %5085 = vmatprep.subr.bf16.mxu1 %v6689_v42  ;;  %5138 = vmatprep.subr.bf16.mxu0 %v6692_v37 }
0x14a9   :  { %5836 = vmatmul.mubr.msk.bf16.gmra.mrb[108].mxu1 %vm858_vm9, %v8188_v56  ;;  %5838 = vmatmul.mubr.msk.bf16.gmra.mrb[108].mxu0 %vm858_vm9, %v8188_v56 }
0x14aa   :  { %5086 = vmatpush1.bf16.msra.mxu1 %v6687_v31  ;;  %5139 = vmatpush1.bf16.msra.mxu0 %v6690_v32 }
0x14ab   :  { %5087 = vmatprep.subr.bf16.mxu1 %v6695_v33  ;;  %5140 = vmatprep.subr.bf16.mxu0 %v6698_v35 }
0x14ac   :  { %5113 = vmatprep.mubr.bf16.mxu1 %v6730_v34  ;;  %5166 = vmatprep.mubr.bf16.mxu0 %v6730_v34 }
0x14ae   :  { %5088 = vmatpush1.bf16.msra.mxu1 %v6693_v36  ;;  %5141 = vmatpush1.bf16.msra.mxu0 %v6696_v38 }
0x14af   :  { %5187 = vmatprep.subr.bf16.mxu1 %v6701_v39 }
0x14b1   :  { %5839 = vmatmul.mubr.msk.bf16.vlgmr.msra.gmra.mrb[112].mxu1 %vm858_vm9, %v8196_v60  ;;  %5841 = vmatmul.mubr.msk.bf16.vlgmr.msra.gmra.mrb[112].mxu0 %vm858_vm9, %v8196_v60 }
0x14b2   :  { %5188 = vmatpush1.bf16.msra.mxu1 %v6699_v41  ;;  %5123 = vmatprep.mubr.bf16.mxu1 %v6730_v34 }
0x14b3   :  { %5189 = vmatprep.subr.bf16.mxu1 %v6704_v43  ;;  %5176 = vmatprep.mubr.bf16.mxu0 %v6730_v34 }
0x14b6   :  { %5190 = vmatpush1.bf16.msra.mxu1 %v6702_v44 }
0x14b7   :  { %5191 = vmatprep.subr.bf16.mxu1 %v6707_v46 }
0x14b9   :  { %5840 = vmatmul.mubr.msk.bf16.gmra.mrb[116].mxu1 %vm858_vm9, %v8188_v56  ;;  %5842 = vmatmul.mubr.msk.bf16.gmra.mrb[116].mxu0 %vm858_vm9, %v8188_v56 }
0x14ba   :  { %5192 = vmatpush1.bf16.msra.mxu1 %v6705_v47  ;;  %5219 = vmatprep.mubr.bf16.mxu1 %v6730_v34 }
0x14bb   :  { %5193 = vmatprep.subr.bf16.mxu1 %v6710_v49  ;;  %5339 = vmatprep.mubr.bf16.mxu0 %v5300_v14 }
0x14be   :  { %5194 = vmatpush1.bf16.msra.mxu1 %v6708_v51 }
0x14c1   :  { %5843 = vmatmul.mubr.msk.bf16.vlgmr.msra.gmra.mrb[120].mxu1 %vm858_vm9, %v8196_v60 }
0x14c2   :  { %5229 = vmatprep.mubr.bf16.mxu1 %v6730_v34 }
0x14c9   :  { %5844 = vmatmul.mubr.msk.bf16.gmra.mrb[124].mxu1 %vm858_vm9, %v8188_v56 }
0x14ca   :  { %5380 = vmatprep.mubr.bf16.mxu1 %v6730_v34 }
0x1554   :  { %v4797_v50 = vpop.f32.mrb[88].mxu1  ;;  %v4850_v52 = vpop.f32.mrb[88].mxu0 }
0x1555   :  { %v4799_v55 = vpop.f32.mrb[89].mxu1  ;;  %v4852_v58 = vpop.f32.mrb[89].mxu0 }
0x1556   :  { %v4801_v59 = vpop.f32.mrb[90].mxu1  ;;  %v4854_v60 = vpop.f32.mrb[90].mxu0 }
0x1557   :  { %v5240_v56 = vpack.c.bf16 %v4801_v59, %v4797_v50  ;;  %v5244_v15 = vpack.c.bf16 %v4854_v60, %v4850_v52  ;;  %v4803_v34 = vpop.f32.mrb[91].mxu1  ;;  %v4856_v21 = vpop.f32.mrb[91].mxu0 }
0x1558   :  { %v5241_v61 = vpack.c.bf16 %v4803_v34, %v4799_v55  ;;  %v5245_v16 = vpack.c.bf16 %v4856_v21, %v4852_v58 }
0x155a   :  { %5307 = vmatprep.subr.bf16.mxu0 %v5241_v61 }
0x155b   :  { %5308 = vmatpush1.bf16.msra.mxu0 %v5240_v56 }
0x155c   :  { %v4807_v62 = vpop.f32.mrb[92].mxu1  ;;  %v4860_v63 = vpop.f32.mrb[92].mxu0 }
0x155d   :  { %v4809_v0 = vpop.f32.mrb[93].mxu1  ;;  %v4862_v20 = vpop.f32.mrb[93].mxu0 }
0x155e   :  { %v4811_v1 = vpop.f32.mrb[94].mxu1  ;;  %v4864_v3 = vpop.f32.mrb[94].mxu0 }
0x155f   :  { %v5242_v4 = vpack.c.bf16 %v4811_v1, %v4807_v62  ;;  %v5246_v5 = vpack.c.bf16 %v4864_v3, %v4860_v63  ;;  %v4813_v7 = vpop.f32.mrb[95].mxu1  ;;  %v4866_v8 = vpop.f32.mrb[95].mxu0 }
0x1560   :  { %v5243_v6 = vpack.c.bf16 %v4813_v7, %v4809_v0  ;;  %v5247_v10 = vpack.c.bf16 %v4866_v8, %v4862_v20 }
0x1562   :  { %5309 = vmatprep.subr.bf16.mxu0 %v5243_v6 }
0x1563   :  { %5310 = vmatpush1.bf16.msra.mxu0 %v5242_v4 }
0x1564   :  { %v4903_v9 = vpop.f32.mrb[96].mxu1  ;;  %v4956_v11 = vpop.f32.mrb[96].mxu0  ;;  %5311 = vmatprep.subr.bf16.mxu0 %v5245_v16 }
0x1565   :  { %v4905_v12 = vpop.f32.mrb[97].mxu1  ;;  %v4958_v13 = vpop.f32.mrb[97].mxu0 }
0x1566   :  { %v4907_v45 = vpop.f32.mrb[98].mxu1  ;;  %v4960_v22 = vpop.f32.mrb[98].mxu0 }
0x1567   :  { %v5248_v23 = vpack.c.bf16 %v4907_v45, %v4903_v9  ;;  %v5252_v24 = vpack.c.bf16 %v4960_v22, %v4956_v11  ;;  %v4909_v2 = vpop.f32.mrb[99].mxu1  ;;  %v4962_v57 = vpop.f32.mrb[99].mxu0  ;;  %5312 = vmatpush1.bf16.msra.mxu0 %v5244_v15 }
0x1568   :  { %v5249_v25 = vpack.c.bf16 %v4909_v2, %v4905_v12  ;;  %v5253_v26 = vpack.c.bf16 %v4962_v57, %v4958_v13  ;;  %5313 = vmatprep.subr.bf16.mxu0 %v5247_v10 }
0x156b   :  { %5314 = vmatpush1.bf16.msra.mxu0 %v5246_v5 }
0x156c   :  { %v4913_v28 = vpop.f32.mrb[100].mxu1  ;;  %v4966_v27 = vpop.f32.mrb[100].mxu0  ;;  %5315 = vmatprep.subr.bf16.mxu0 %v5249_v25 }
0x156d   :  { %v4915_v29 = vpop.f32.mrb[101].mxu1  ;;  %v4968_v30 = vpop.f32.mrb[101].mxu0 }
0x156e   :  { %v4917_v48 = vpop.f32.mrb[102].mxu1  ;;  %v4970_v19 = vpop.f32.mrb[102].mxu0 }
0x156f   :  { %v5250_v18 = vpack.c.bf16 %v4917_v48, %v4913_v28  ;;  %v5254_v40 = vpack.c.bf16 %v4970_v19, %v4966_v27  ;;  %v4919_v42 = vpop.f32.mrb[103].mxu1  ;;  %v4972_v37 = vpop.f32.mrb[103].mxu0  ;;  %5316 = vmatpush1.bf16.msra.mxu0 %v5248_v23  ;;  %v5293_v48 = vrot.slane %v8410_v53, %v7591_v17 }
0x1570   :  { %v5251_v31 = vpack.c.bf16 %v4919_v42, %v4915_v29  ;;  %v5255_v32 = vpack.c.bf16 %v4972_v37, %v4968_v30 }
0x1572   :  { %5317 = vmatprep.subr.bf16.mxu0 %v5251_v31 }
0x1573   :  { %5318 = vmatpush1.bf16.msra.mxu0 %v5250_v18 }
0x1574   :  { %v5009_v33 = vpop.f32.mrb[104].mxu1  ;;  %v5062_v35 = vpop.f32.mrb[104].mxu0  ;;  %5319 = vmatprep.subr.bf16.mxu0 %v5253_v26 }
0x1575   :  { %v5011_v36 = vpop.f32.mrb[105].mxu1  ;;  %v5064_v38 = vpop.f32.mrb[105].mxu0 }
0x1576   :  { %v5013_v39 = vpop.f32.mrb[106].mxu1  ;;  %v5066_v41 = vpop.f32.mrb[106].mxu0 }
0x1577   :  { %v5256_v43 = vpack.c.bf16 %v5013_v39, %v5009_v33  ;;  %v5260_v44 = vpack.c.bf16 %v5066_v41, %v5062_v35  ;;  %v5015_v46 = vpop.f32.mrb[107].mxu1  ;;  %v5068_v47 = vpop.f32.mrb[107].mxu0  ;;  %5320 = vmatpush1.bf16.msra.mxu0 %v5252_v24 }
0x1578   :  { %v5257_v49 = vpack.c.bf16 %v5015_v46, %v5011_v36  ;;  %v5261_v51 = vpack.c.bf16 %v5068_v47, %v5064_v38  ;;  %5321 = vmatprep.subr.bf16.mxu0 %v5255_v32  ;;  %v5301_v32 = vcombine.high %v5293_v48, %v5293_v48  ;;  %v5392_v41 = vpop.permute.xlu0 %5391 }
0x157b   :  { %5322 = vmatpush1.bf16.msra.mxu0 %v5254_v40 }
0x157c   :  { %v5019_v54 = vpop.f32.mrb[108].mxu1  ;;  %v5072_v14 = vpop.f32.mrb[108].mxu0  ;;  %5323 = vmatprep.subr.bf16.mxu0 %v5257_v49 }
0x157d   :  { %v5021_v50 = vpop.f32.mrb[109].mxu1  ;;  %v5074_v52 = vpop.f32.mrb[109].mxu0 }
0x157e   :  { %v5023_v55 = vpop.f32.mrb[110].mxu1  ;;  %v5076_v58 = vpop.f32.mrb[110].mxu0 }
0x157f   :  { %v5258_v59 = vpack.c.bf16 %v5023_v55, %v5019_v54  ;;  %v5262_v60 = vpack.c.bf16 %v5076_v58, %v5072_v14  ;;  %v5025_v56 = vpop.f32.mrb[111].mxu1  ;;  %v5078_v15 = vpop.f32.mrb[111].mxu0  ;;  %5324 = vmatpush1.bf16.msra.mxu0 %v5256_v43 }
0x1580   :  { %v5259_v34 = vpack.c.bf16 %v5025_v56, %v5021_v50  ;;  %v5263_v21 = vpack.c.bf16 %v5078_v15, %v5074_v52 }
0x1582   :  { %5325 = vmatprep.subr.bf16.mxu0 %v5259_v34 }
0x1583   :  { %5326 = vmatpush1.bf16.msra.mxu0 %v5258_v59 }
0x1584   :  { %v5115_v61 = vpop.f32.mrb[112].mxu1  ;;  %v5168_v16 = vpop.f32.mrb[112].mxu0  ;;  %5327 = vmatprep.subr.bf16.mxu0 %v5261_v51 }
0x1585   :  { %v5117_v62 = vpop.f32.mrb[113].mxu1  ;;  %v5170_v63 = vpop.f32.mrb[113].mxu0 }
0x1586   :  { %v5119_v0 = vpop.f32.mrb[114].mxu1  ;;  %v5172_v20 = vpop.f32.mrb[114].mxu0 }
0x1587   :  { %v5264_v1 = vpack.c.bf16 %v5119_v0, %v5115_v61  ;;  %v5268_v3 = vpack.c.bf16 %v5172_v20, %v5168_v16  ;;  %v5121_v4 = vpop.f32.mrb[115].mxu1  ;;  %v5174_v5 = vpop.f32.mrb[115].mxu0  ;;  %5328 = vmatpush1.bf16.msra.mxu0 %v5260_v44 }
0x1588   :  { %v5265_v7 = vpack.c.bf16 %v5121_v4, %v5117_v62  ;;  %v5269_v8 = vpack.c.bf16 %v5174_v5, %v5170_v63  ;;  %5329 = vmatprep.subr.bf16.mxu0 %v5263_v21 }
0x158b   :  { %5330 = vmatpush1.bf16.msra.mxu0 %v5262_v60 }
0x158c   :  { %v5125_v6 = vpop.f32.mrb[116].mxu1  ;;  %v5178_v10 = vpop.f32.mrb[116].mxu0  ;;  %5331 = vmatprep.subr.bf16.mxu0 %v5265_v7 }
0x158d   :  { %v5127_v9 = vpop.f32.mrb[117].mxu1  ;;  %v5180_v11 = vpop.f32.mrb[117].mxu0 }
0x158e   :  { %v5129_v12 = vpop.f32.mrb[118].mxu1  ;;  %v5182_v13 = vpop.f32.mrb[118].mxu0 }
0x158f   :  { %v5266_v45 = vpack.c.bf16 %v5129_v12, %v5125_v6  ;;  %v5270_v22 = vpack.c.bf16 %v5182_v13, %v5178_v10  ;;  %v5131_v23 = vpop.f32.mrb[119].mxu1  ;;  %v5184_v24 = vpop.f32.mrb[119].mxu0  ;;  %5332 = vmatpush1.bf16.msra.mxu0 %v5264_v1 }
0x1590   :  { %v5267_v2 = vpack.c.bf16 %v5131_v23, %v5127_v9  ;;  %v5271_v57 = vpack.c.bf16 %v5184_v24, %v5180_v11 }
0x1592   :  { %5333 = vmatprep.subr.bf16.mxu0 %v5267_v2 }
0x1593   :  { %5334 = vmatpush1.bf16.msra.mxu0 %v5266_v45 }
0x1594   :  { %v5221_v25 = vpop.f32.mrb[120].mxu1  ;;  %5335 = vmatprep.subr.bf16.mxu0 %v5269_v8 }
0x1595   :  { %v5223_v26 = vpop.f32.mrb[121].mxu1 }
0x1596   :  { %v5225_v28 = vpop.f32.mrb[122].mxu1 }
0x1597   :  { %v5272_v27 = vpack.c.bf16 %v5225_v28, %v5221_v25  ;;  %v5227_v29 = vpop.f32.mrb[123].mxu1  ;;  %5336 = vmatpush1.bf16.msra.mxu0 %v5268_v3 }
0x1598   :  { %v5273_v30 = vpack.c.bf16 %v5227_v29, %v5223_v26  ;;  %5337 = vmatprep.subr.bf16.mxu0 %v5271_v57 }
0x159a   :  { %5348 = vmatprep.subr.bf16.mxu1 %v5273_v30 }
0x159b   :  { %5338 = vmatpush1.bf16.msra.mxu0 %v5270_v22  ;;  %5349 = vmatpush1.bf16.msra.mxu1 %v5272_v27 }
0x159c   :  { %v5231_v19 = vpop.f32.mrb[124].mxu1 }
0x159d   :  { %v5233_v18 = vpop.f32.mrb[125].mxu1 }
0x159e   :  { %v5235_v40 = vpop.f32.mrb[126].mxu1  ;;  %5340 = vmatmul.mubr.bf16.vlgmr.msra.gmra.mrb[120].mxu0 %v5293_v48 }
0x159f   :  { %v5274_v42 = vpack.c.bf16 %v5235_v40, %v5231_v19  ;;  %v5237_v37 = vpop.f32.mrb[127].mxu1 }
0x15a0   :  { %v5275_v31 = vpack.c.bf16 %v5237_v37, %v5233_v18 }
0x15a2   :  { %5350 = vmatprep.subr.bf16.mxu1 %v5275_v31 }
0x15a3   :  { %5351 = vmatpush1.bf16.msra.mxu1 %v5274_v42 }
0x15a6   :  { %5846 = vmatmul.mubr.msk.bf16.vlgmr.msra.gmra.mrb[128].mxu1 %vm1243_vm12, %v5301_v32 }
0x1671   :  { %v5341_v33 = vpop.f32.mrb[120].mxu0 }
0x1672   :  { %v5343_v35 = vpop.f32.mrb[121].mxu0 }
0x1673   :  { %v5345_v36 = vpop.f32.mrb[122].mxu0 }
0x1674   :  { %v5346_v38 = vpop.f32.mrb[123].mxu0 }
0x1679   :  { %v5382_v39 = vpop.f32.mrb[128].mxu1 }
0x167a   :  { %v5383_v17 = vadd.f32 %v5382_v39, %v5341_v33  ;;  %v5384_v53 = vpop.f32.mrb[129].mxu1 }
0x167b   :  { %v5385_v43 = vadd.f32 %v5384_v53, %v5343_v35  ;;  %v5386_v44 = vpop.f32.mrb[130].mxu1 }
0x167c   :  { %v5394_v46 = vadd.f32 %v5392_v41, %v5383_v17  ;;  %v5387_v47 = vpop.f32.mrb[131].mxu1 }
0x167d   :  { %v5395_v49 = vadd.f32 %v5392_v41, %v5385_v43 }
0x167e   :  { %v5847_v51 = vmul.f32 -1.442695, %v5394_v46 }
0x167f   :  { %v5848_v54 = vmul.f32 -1.442695, %v5395_v49 }
0x1680   :  { %6719 = vpow2.f32 %v5847_v51 }
0x1681   :  { %6721 = vpow2.f32 %v5848_v54 }
0x168a   :  { %v6720_v14 = vpop.eup %6719 }
0x168b   :  { %v6722_v50 = vpop.eup %6721  ;;  %v5402_v52 = vadd.f32 1.0, %v6720_v14 }
0x168c   :  { %v5403_v55 = vadd.f32 1.0, %v6722_v50 }
0x168d   :  { %6723 = vrcp.f32 %v5402_v52 }
0x168e   :  { %6725 = vrcp.f32 %v5403_v55 }
0x1697   :  { %v6724_v58 = vpop.eup %6723 }
0x1698   :  { %v6726_v59 = vpop.eup %6725 }
0x1699   :  { %v5410_v60 = vcombine.low %v6724_v58, %v6726_v59 }
0x169b   :  { %5850 = vst.sshfl [vmem:[%s8495_s25 + $0x4] sm:$0x33 pattern:$0x76325410] %v5410_v60 }

</bundles_post_ra>
